<compile_context>
chip_gen: v6e
topology: v6e:2x2x1
jax: 0.10.0
libtpu: 0.0.40
codegen_flags: <defaults>
</compile_context>

<pallas_src>
import functools
import math

import jax
import jax.numpy as jnp
import numpy as np
from jax.experimental import pallas as pl
from jax.experimental.pallas import tpu as pltpu

H1 = 128      # lstm1 hidden size
H2 = 64       # lstm2 hidden size / attention embed dim
BN_EPS = 1e-5


def _round_up(n, m):
    return ((n + m - 1) // m) * m


# --------------------------------------------------------------------------------------- kernel
def custom_model_kernel(x_ref, w1_ref, bp_ref, w2_ref, wt_ref, out_ref, *, bf16_gates):
    """Batch-on-lanes fused forward.  x: (input_size, tb); gate slabs (3H, tb); out (1, tb)."""
    gate_dtype = jnp.bfloat16 if bf16_gates else jnp.float32

    def sigmoid(z):
        # tanh-form sigmoid: one EUP push (tanh) instead of exp + reciprocal (two pushes).
        return 0.5 * (jnp.tanh(0.5 * z) + 1.0)

    def lstm_gates(g, H):
        # Gates packed along sublanes as [i | g | o]; f-gate dropped because c0 == 0.
        i = sigmoid(g[0:H, :])
        c = jnp.tanh(g[H:2 * H, :])
        o = sigmoid(g[2 * H:3 * H, :])
        return o * jnp.tanh(i * c)

    x = x_ref[...].astype(jnp.bfloat16)                                   # (in, tb)

    # ---- LSTM1, single time step, h0 = c0 = 0. ----
    g1 = jnp.dot(w1_ref[...], x, preferred_element_type=jnp.float32) + bp_ref[:, 0:1]
    h1 = lstm_gates(g1.astype(gate_dtype), H1)                            # (128, tb)

    # ---- LSTM2, same single-step reduction. ----
    g2 = jnp.dot(w2_ref[...], h1.astype(jnp.bfloat16),
                 preferred_element_type=jnp.float32) + bp_ref[0:3 * H2, 1:2]
    h2 = lstm_gates(g2.astype(gate_dtype), H2)                            # (64, tb)

    # ---- fused affine tail: MHA(seq=1) + dense_1/BN1 + dense_2/BN2 + dense_3 -> (1, tb) ----
    # VPU multiply + sublane reduce (XLU) instead of a 1-valid-lane MXU matvec.
    out = jnp.sum(h2.astype(jnp.float32) * wt_ref[...], axis=0, keepdims=True)
    out_ref[...] = (out + bp_ref[3 * H2:3 * H2 + 1, 1:2]).astype(out_ref.dtype)


# ------------------------------------------------------------------------------------ parameters
def init_raw_params(key, input_size):
    """PyTorch-shaped raw parameters of CustomModel (eval mode, default BN running stats)."""
    ks = jax.random.split(key, 15)

    def u(k, shape, fan):
        b = 1.0 / math.sqrt(fan)
        return jax.random.uniform(k, shape, jnp.float32, -b, b)

    p = {}
    p["w_ih1"] = u(ks[0], (4 * H1, input_size), H1)
    p["b_ih1"] = u(ks[1], (4 * H1,), H1)
    p["b_hh1"] = u(ks[2], (4 * H1,), H1)
    p["w_ih2"] = u(ks[3], (4 * H2, H1), H2)
    p["b_ih2"] = u(ks[4], (4 * H2,), H2)
    p["b_hh2"] = u(ks[5], (4 * H2,), H2)
    # MultiheadAttention: value projection (rows 2E:3E of in_proj) and out_proj (bias init = 0).
    p["wv"], p["bv"] = u(ks[6], (H2, H2), H2), u(ks[7], (H2,), H2)
    p["wo"], p["bo"] = u(ks[8], (H2, H2), H2), jnp.zeros((H2,), jnp.float32)
    p["wd1"], p["bd1"] = u(ks[9], (32, H2), H2), u(ks[10], (32,), H2)
    p["wd2"], p["bd2"] = u(ks[11], (16, 32), 32), u(ks[12], (16,), 32)
    p["wd3"], p["bd3"] = u(ks[13], (1, 16), 16), u(ks[14], (1,), 16)
    for n, d in (("1", 32), ("2", 16)):
        p[f"bn{n}_gamma"] = jnp.ones((d,), jnp.float32)
        p[f"bn{n}_beta"] = jnp.zeros((d,), jnp.float32)
        p[f"bn{n}_mean"] = jnp.zeros((d,), jnp.float32)
        p[f"bn{n}_var"] = jnp.ones((d,), jnp.float32)
    return p


def fold_params(p, eps=BN_EPS):
    """Fold the PyTorch parameters into the 4 arrays the kernel consumes (all f32 here)."""
    def pack_gates(w_ih, b_ih, b_hh, H):
        # PyTorch gate order is [i, f, g, o]; the f-gate is dead because c0 == 0.
        rows = np.concatenate([np.arange(0, H), np.arange(2 * H, 3 * H), np.arange(3 * H, 4 * H)])
        return w_ih[rows], (b_ih + b_hh)[rows]                         # (3H, in), (3H,)

    w1, b1 = pack_gates(p["w_ih1"], p["b_ih1"], p["b_hh1"], H1)        # (384, in), (384,)
    w2, b2 = pack_gates(p["w_ih2"], p["b_ih2"], p["b_hh2"], H2)        # (192, 128), (192,)

    # Affine tail: attention(seq=1) == out_proj(value_proj(.)), eval-BN == affine, dropout == id,
    # and forward() never applies the declared ReLUs -> the whole tail is one (64,1) matvec.
    s1 = p["bn1_gamma"] / jnp.sqrt(p["bn1_var"] + eps)
    t1 = p["bn1_beta"] - s1 * p["bn1_mean"]
    s2 = p["bn2_gamma"] / jnp.sqrt(p["bn2_var"] + eps)
    t2 = p["bn2_beta"] - s2 * p["bn2_mean"]
    A = p["wv"].T @ p["wo"].T
    c = p["bv"] @ p["wo"].T + p["bo"]
    A = (A @ p["wd1"].T) * s1
    c = (c @ p["wd1"].T + p["bd1"]) * s1 + t1
    A = (A @ p["wd2"].T) * s2
    c = (c @ p["wd2"].T + p["bd2"]) * s2 + t2
    wt = A @ p["wd3"].T                                                # (64, 1)
    bt = c @ p["wd3"].T + p["bd3"]                                     # (1,)

    # Pack all biases into one small f32 array: col 0 = LSTM1 gates (384,), col 1 rows 0:192 =
    # LSTM2 gates, col 1 row 192 = fused tail bias.
    bp = jnp.zeros((3 * H1, 2), jnp.float32)
    bp = bp.at[:, 0].set(b1)
    bp = bp.at[:3 * H2, 1].set(b2)
    bp = bp.at[3 * H2, 1].set(bt[0])
    return {"w1": jnp.asarray(w1, jnp.float32), "w2": jnp.asarray(w2, jnp.float32),
            "wt": jnp.asarray(wt, jnp.float32), "bp": bp}


# --------------------------------------------------------------------------------------- wrapper
def custom_model_forward(x, fp, *, tb_target=1024, bf16_gates=None):
    """Fused forward pass in a batch-on-lanes layout.

    tb_target: batch tile (lane dim, multiple of 128); clamped so the parallel grid axis keeps
    >= 4 steps when the batch allows (>= 2 per TensorCore on v7x).  bf16_gates: compute the gate
    nonlinearities on bf16 slabs (v6e/v7x bf16 EUP); auto-detected from the device when None.
    """
    B, input_size = x.shape
    if bf16_gates is None:
        kind = jax.devices()[0].device_kind.lower()
        bf16_gates = ("v6" in kind) or ("v7" in kind)   # v5e & older: no bf16 EUP/VPU -> f32

    Bp = _round_up(B, 128)
    tb = min(int(tb_target), Bp)
    if Bp >= 4 * 128 and Bp // tb < 4:                  # keep >= 2 grid steps per v7x TC
        tb = max(128, ((Bp // 4) // 128) * 128)
    Bp = _round_up(B, tb)

    # Batch on lanes: (input_size, Bp), zero-padded in the lane (batch) dimension.
    xt = jnp.pad(x.T, ((0, 0), (0, Bp - B)))

    w1 = fp["w1"].astype(jnp.bfloat16)                  # bf16 weights on the MXU, f32 accumulate
    w2 = fp["w2"].astype(jnp.bfloat16)
    args = (w1, fp["bp"], w2, fp["wt"])

    in_specs = [pl.BlockSpec((input_size, tb), lambda i: (0, i))]
    in_specs += [pl.BlockSpec(a.shape, lambda i: (0, 0)) for a in args]   # VMEM-resident params

    out = pl.pallas_call(
        functools.partial(custom_model_kernel, bf16_gates=bf16_gates),
        out_shape=jax.ShapeDtypeStruct((1, Bp), jnp.float32),
        grid=(Bp // tb,),
        in_specs=in_specs,
        out_specs=pl.BlockSpec((1, tb), lambda i: (0, i)),
        compiler_params=pltpu.CompilerParams(dimension_semantics=("parallel",)),
    )(xt, *args)
    return out[0, :B].reshape(B, 1)


# ------------------------------------------------------------------------------------ references
def reference_forward(x, p, eps=BN_EPS):
    """Pure-JAX f32 reference of CustomModel.forward in eval mode (unfolded parameters)."""
    def lstm_step(h_in, w_ih, b_ih, b_hh, H):
        g = h_in @ w_ih.T + b_ih + b_hh
        i = jax.nn.sigmoid(g[:, 0:H])
        c = jnp.tanh(g[:, 2 * H:3 * H])
        o = jax.nn.sigmoid(g[:, 3 * H:4 * H])
        return o * jnp.tanh(i * c)            # f-gate multiplies c0 == 0

    h1 = lstm_step(x, p["w_ih1"], p["b_ih1"], p["b_hh1"], H1)
    h2 = lstm_step(h1, p["w_ih2"], p["b_ih2"], p["b_hh2"], H2)
    a = (h2 @ p["wv"].T + p["bv"]) @ p["wo"].T + p["bo"]     # MHA: softmax over one key == 1

    def bn(z, n):
        s = p[f"bn{n}_gamma"] / jnp.sqrt(p[f"bn{n}_var"] + eps)
        return (z - p[f"bn{n}_mean"]) * s + p[f"bn{n}_beta"]

    d1 = bn(a @ p["wd1"].T + p["bd1"], "1")
    d2 = bn(d1 @ p["wd2"].T + p["bd2"], "2")
    return d2 @ p["wd3"].T + p["bd3"]


def reference_fused_f32(x, fp):
    """Same math as the kernel but all-f32 (validates the algebraic folds)."""
    def gates(g, H):
        i = jax.nn.sigmoid(g[:, 0:H])
        c = jnp.tanh(g[:, H:2 * H])
        o = jax.nn.sigmoid(g[:, 2 * H:3 * H])
        return o * jnp.tanh(i * c)

    h1 = gates(x @ fp["w1"].T + fp["bp"][:, 0], H1)
    h2 = gates(h1 @ fp["w2"].T + fp["bp"][:3 * H2, 1], H2)
    return h2 @ fp["wt"] + fp["bp"][3 * H2, 1]


# ------------------------------------------------------------------------------------------ main
if __name__ == "__main__":
    num_heads = 4      # embed_dim 64 / 4 heads = 16 per head (math-irrelevant at seq_len == 1)
    input_size = 16
    batch = 500        # not a tile multiple -> exercises padding; Bp=512, 4 grid steps at tb=128

    key = jax.random.PRNGKey(0)
    kx, kp = jax.random.split(key)
    x = jax.random.normal(kx, (batch, input_size), jnp.float32)

    raw = init_raw_params(kp, input_size)
    fp = fold_params(raw)

    # 1) the gate-packing + affine-tail fold is numerically identical to the unfolded model (f32).
    np.testing.assert_allclose(np.asarray(reference_fused_f32(x, fp)),
                               np.asarray(reference_forward(x, raw)),
                               rtol=1e-4, atol=1e-5)

    # 2) Pallas kernel (bf16 MXU weights; bf16 gate math on v6e/v7x only) vs the f32 reference.
    try:
        out = jax.block_until_ready(custom_model_forward(x, fp))
    except Exception:
        # Defensive fallback: force the f32 gate path if bf16 transcendentals fail to lower.
        out = jax.block_until_ready(custom_model_forward(x, fp, bf16_gates=False))
    ref = reference_forward(x, raw)
    np.testing.assert_allclose(np.asarray(out), np.asarray(ref), rtol=3e-2, atol=1e-2)

    assert out.shape == (batch, 1)
    print("KERNEL_OK")
</pallas_src>

<mosaic_0001>
module attributes {stable_mosaic.version = 11 : i64} {
  func.func @custom_model_kernel(%arg0: i32, %arg1: memref<16x128xf32, #tpu.memory_space<vmem>>, %arg2: memref<384x16xbf16, #tpu.memory_space<vmem>>, %arg3: memref<384x2xf32, #tpu.memory_space<vmem>>, %arg4: memref<192x128xbf16, #tpu.memory_space<vmem>>, %arg5: memref<64x1xf32, #tpu.memory_space<vmem>>, %arg6: memref<1x128xf32, #tpu.memory_space<vmem>>) attributes {dimension_semantics = [#tpu.dimension_semantics<parallel>], iteration_bounds = array<i64: 4>, scalar_prefetch = 0 : i64, scratch_operands = 0 : i64, tpu.core_type = #tpu.core_type<tc>, window_params = [{transform_indices = @transform_0, window_bounds = array<i64: 16, 128>}, {pipeline_mode = #tpu.pipeline_mode<synchronous>, transform_indices = @transform_1, window_bounds = array<i64: 384, 16>}, {pipeline_mode = #tpu.pipeline_mode<synchronous>, transform_indices = @transform_2, window_bounds = array<i64: 384, 2>}, {pipeline_mode = #tpu.pipeline_mode<synchronous>, transform_indices = @transform_3, window_bounds = array<i64: 192, 128>}, {pipeline_mode = #tpu.pipeline_mode<synchronous>, transform_indices = @transform_4, window_bounds = array<i64: 64, 1>}, {transform_indices = @transform_5, window_bounds = array<i64: 1, 128>}]} {
    %c0 = arith.constant 0 : index
    %c0_0 = arith.constant 0 : index
    %0 = vector.load %arg1[%c0, %c0_0] : memref<16x128xf32, #tpu.memory_space<vmem>>, vector<16x128xf32>
    %1 = arith.truncf %0 : vector<16x128xf32> to vector<16x128xbf16>
    %c0_1 = arith.constant 0 : index
    %c0_2 = arith.constant 0 : index
    %2 = vector.load %arg2[%c0_1, %c0_2] : memref<384x16xbf16, #tpu.memory_space<vmem>>, vector<384x16xbf16>
    %cst = arith.constant dense<0.000000e+00> : vector<384x128xf32>
    %3 = tpu.matmul %2, %1, %cst {dimension_numbers = #tpu.dot_dimension_numbers<[1], [0], [0], [1], [0, 0, 1, 1], [], []>} : vector<384x16xbf16>, vector<16x128xbf16>, vector<384x128xf32> -> vector<384x128xf32>
    %c0_3 = arith.constant 0 : index
    %c0_4 = arith.constant 0 : index
    %4 = vector.load %arg3[%c0_3, %c0_4] : memref<384x2xf32, #tpu.memory_space<vmem>>, vector<384x1xf32>
    %5 = vector.broadcast %4 : vector<384x1xf32> to vector<384x128xf32>
    %6 = arith.addf %3, %5 : vector<384x128xf32>
    %7 = vector.extract_strided_slice %6 {offsets = [0, 0], sizes = [128, 128], strides = [1, 1]} : vector<384x128xf32> to vector<128x128xf32>
    %cst_5 = arith.constant 5.000000e-01 : f32
    %8 = vector.broadcast %cst_5 : f32 to vector<128x128xf32>
    %9 = arith.mulf %8, %7 : vector<128x128xf32>
    %10 = math.tanh %9 : vector<128x128xf32>
    %cst_6 = arith.constant 1.000000e+00 : f32
    %11 = vector.broadcast %cst_6 : f32 to vector<128x128xf32>
    %12 = arith.addf %10, %11 : vector<128x128xf32>
    %cst_7 = arith.constant 5.000000e-01 : f32
    %13 = vector.broadcast %cst_7 : f32 to vector<128x128xf32>
    %14 = arith.mulf %13, %12 : vector<128x128xf32>
    %15 = vector.extract_strided_slice %6 {offsets = [128, 0], sizes = [128, 128], strides = [1, 1]} : vector<384x128xf32> to vector<128x128xf32>
    %16 = math.tanh %15 : vector<128x128xf32>
    %17 = vector.extract_strided_slice %6 {offsets = [256, 0], sizes = [128, 128], strides = [1, 1]} : vector<384x128xf32> to vector<128x128xf32>
    %cst_8 = arith.constant 5.000000e-01 : f32
    %18 = vector.broadcast %cst_8 : f32 to vector<128x128xf32>
    %19 = arith.mulf %18, %17 : vector<128x128xf32>
    %20 = math.tanh %19 : vector<128x128xf32>
    %cst_9 = arith.constant 1.000000e+00 : f32
    %21 = vector.broadcast %cst_9 : f32 to vector<128x128xf32>
    %22 = arith.addf %20, %21 : vector<128x128xf32>
    %cst_10 = arith.constant 5.000000e-01 : f32
    %23 = vector.broadcast %cst_10 : f32 to vector<128x128xf32>
    %24 = arith.mulf %23, %22 : vector<128x128xf32>
    %25 = arith.mulf %14, %16 : vector<128x128xf32>
    %26 = math.tanh %25 : vector<128x128xf32>
    %27 = arith.mulf %24, %26 : vector<128x128xf32>
    %c0_11 = arith.constant 0 : index
    %c0_12 = arith.constant 0 : index
    %28 = vector.load %arg4[%c0_11, %c0_12] : memref<192x128xbf16, #tpu.memory_space<vmem>>, vector<192x128xbf16>
    %29 = arith.truncf %27 : vector<128x128xf32> to vector<128x128xbf16>
    %cst_13 = arith.constant dense<0.000000e+00> : vector<192x128xf32>
    %30 = tpu.matmul %28, %29, %cst_13 {dimension_numbers = #tpu.dot_dimension_numbers<[1], [0], [0], [1], [0, 0, 1, 1], [], []>} : vector<192x128xbf16>, vector<128x128xbf16>, vector<192x128xf32> -> vector<192x128xf32>
    %c0_14 = arith.constant 0 : index
    %c1 = arith.constant 1 : index
    %31 = vector.load %arg3[%c0_14, %c1] : memref<384x2xf32, #tpu.memory_space<vmem>>, vector<192x1xf32>
    %32 = vector.broadcast %31 : vector<192x1xf32> to vector<192x128xf32>
    %33 = arith.addf %30, %32 : vector<192x128xf32>
    %34 = vector.extract_strided_slice %33 {offsets = [0, 0], sizes = [64, 128], strides = [1, 1]} : vector<192x128xf32> to vector<64x128xf32>
    %cst_15 = arith.constant 5.000000e-01 : f32
    %35 = vector.broadcast %cst_15 : f32 to vector<64x128xf32>
    %36 = arith.mulf %35, %34 : vector<64x128xf32>
    %37 = math.tanh %36 : vector<64x128xf32>
    %cst_16 = arith.constant 1.000000e+00 : f32
    %38 = vector.broadcast %cst_16 : f32 to vector<64x128xf32>
    %39 = arith.addf %37, %38 : vector<64x128xf32>
    %cst_17 = arith.constant 5.000000e-01 : f32
    %40 = vector.broadcast %cst_17 : f32 to vector<64x128xf32>
    %41 = arith.mulf %40, %39 : vector<64x128xf32>
    %42 = vector.extract_strided_slice %33 {offsets = [64, 0], sizes = [64, 128], strides = [1, 1]} : vector<192x128xf32> to vector<64x128xf32>
    %43 = math.tanh %42 : vector<64x128xf32>
    %44 = vector.extract_strided_slice %33 {offsets = [128, 0], sizes = [64, 128], strides = [1, 1]} : vector<192x128xf32> to vector<64x128xf32>
    %cst_18 = arith.constant 5.000000e-01 : f32
    %45 = vector.broadcast %cst_18 : f32 to vector<64x128xf32>
    %46 = arith.mulf %45, %44 : vector<64x128xf32>
    %47 = math.tanh %46 : vector<64x128xf32>
    %cst_19 = arith.constant 1.000000e+00 : f32
    %48 = vector.broadcast %cst_19 : f32 to vector<64x128xf32>
    %49 = arith.addf %47, %48 : vector<64x128xf32>
    %cst_20 = arith.constant 5.000000e-01 : f32
    %50 = vector.broadcast %cst_20 : f32 to vector<64x128xf32>
    %51 = arith.mulf %50, %49 : vector<64x128xf32>
    %52 = arith.mulf %41, %43 : vector<64x128xf32>
    %53 = math.tanh %52 : vector<64x128xf32>
    %54 = arith.mulf %51, %53 : vector<64x128xf32>
    %c0_21 = arith.constant 0 : index
    %c0_22 = arith.constant 0 : index
    %55 = vector.load %arg5[%c0_21, %c0_22] : memref<64x1xf32, #tpu.memory_space<vmem>>, vector<64x1xf32>
    %56 = vector.broadcast %55 : vector<64x1xf32> to vector<64x128xf32>
    %57 = arith.mulf %54, %56 : vector<64x128xf32>
    %cst_23 = arith.constant dense<0.000000e+00> : vector<128xf32>
    %58 = vector.multi_reduction <add>, %57, %cst_23 [0] : vector<64x128xf32> to vector<128xf32>
    %59 = vector.shape_cast %58 : vector<128xf32> to vector<1x128xf32>
    %c192 = arith.constant 192 : index
    %c1_24 = arith.constant 1 : index
    %60 = vector.load %arg3[%c192, %c1_24] : memref<384x2xf32, #tpu.memory_space<vmem>>, vector<1x1xf32>
    %61 = vector.broadcast %60 : vector<1x1xf32> to vector<1x128xf32>
    %62 = arith.addf %59, %61 : vector<1x128xf32>
    %c0_25 = arith.constant 0 : index
    %c0_26 = arith.constant 0 : index
    %63 = vector.load %arg6[%c0_25, %c0_26] : memref<1x128xf32, #tpu.memory_space<vmem>>, vector<1x128xf32>
    tpu.vector_store %arg6[%c0_25, %c0_26], %62 {strides = array<i32>} : memref<1x128xf32, #tpu.memory_space<vmem>>, vector<1x128xf32>,
    return
  }
  func.func @transform_0(%arg0: i32) -> (i32, i32) {
    %c0_i32 = arith.constant 0 : i32
    %c0_i32_0 = arith.constant 0 : i32
    return %c0_i32, %arg0 : i32, i32
  }
  func.func @transform_1(%arg0: i32) -> (i32, i32) {
    %c0_i32 = arith.constant 0 : i32
    %c0_i32_0 = arith.constant 0 : i32
    %c0_i32_1 = arith.constant 0 : i32
    return %c0_i32, %c0_i32_0 : i32, i32
  }
  func.func @transform_2(%arg0: i32) -> (i32, i32) {
    %c0_i32 = arith.constant 0 : i32
    %c0_i32_0 = arith.constant 0 : i32
    %c0_i32_1 = arith.constant 0 : i32
    return %c0_i32, %c0_i32_0 : i32, i32
  }
  func.func @transform_3(%arg0: i32) -> (i32, i32) {
    %c0_i32 = arith.constant 0 : i32
    %c0_i32_0 = arith.constant 0 : i32
    %c0_i32_1 = arith.constant 0 : i32
    return %c0_i32, %c0_i32_0 : i32, i32
  }
  func.func @transform_4(%arg0: i32) -> (i32, i32) {
    %c0_i32 = arith.constant 0 : i32
    %c0_i32_0 = arith.constant 0 : i32
    %c0_i32_1 = arith.constant 0 : i32
    return %c0_i32, %c0_i32_0 : i32, i32
  }
  func.func @transform_5(%arg0: i32) -> (i32, i32) {
    %c0_i32 = arith.constant 0 : i32
    %c0_i32_0 = arith.constant 0 : i32
    return %c0_i32, %arg0 : i32, i32
  }
}

module attributes {stable_mosaic.version = 11 : i64} {
  func.func @custom_model_kernel(%arg0: i32, %arg1: memref<16x128xf32, #tpu.memory_space<vmem>>, %arg2: memref<384x16xbf16, #tpu.memory_space<vmem>>, %arg3: memref<384x2xf32, #tpu.memory_space<vmem>>, %arg4: memref<192x128xbf16, #tpu.memory_space<vmem>>, %arg5: memref<64x1xf32, #tpu.memory_space<vmem>>, %arg6: memref<1x128xf32, #tpu.memory_space<vmem>>) attributes {dimension_semantics = [#tpu.dimension_semantics<parallel>], iteration_bounds = array<i64: 4>, scalar_prefetch = 0 : i64, scratch_operands = 0 : i64, tpu.core_type = #tpu.core_type<tc>, window_params = [{transform_indices = @transform_0, window_bounds = array<i64: 16, 128>}, {pipeline_mode = #tpu.pipeline_mode<synchronous>, transform_indices = @transform_1, window_bounds = array<i64: 384, 16>}, {pipeline_mode = #tpu.pipeline_mode<synchronous>, transform_indices = @transform_2, window_bounds = array<i64: 384, 2>}, {pipeline_mode = #tpu.pipeline_mode<synchronous>, transform_indices = @transform_3, window_bounds = array<i64: 192, 128>}, {pipeline_mode = #tpu.pipeline_mode<synchronous>, transform_indices = @transform_4, window_bounds = array<i64: 64, 1>}, {transform_indices = @transform_5, window_bounds = array<i64: 1, 128>}]} {
    %c0 = arith.constant 0 : index
    %c0_0 = arith.constant 0 : index
    %0 = vector.load %arg1[%c0, %c0_0] : memref<16x128xf32, #tpu.memory_space<vmem>>, vector<16x128xf32>
    %1 = arith.truncf %0 : vector<16x128xf32> to vector<16x128xbf16>
    %c0_1 = arith.constant 0 : index
    %c0_2 = arith.constant 0 : index
    %2 = vector.load %arg2[%c0_1, %c0_2] : memref<384x16xbf16, #tpu.memory_space<vmem>>, vector<384x16xbf16>
    %cst = arith.constant dense<0.000000e+00> : vector<384x128xf32>
    %3 = tpu.matmul %2, %1, %cst {dimension_numbers = #tpu.dot_dimension_numbers<[1], [0], [0], [1], [0, 0, 1, 1], [], []>} : vector<384x16xbf16>, vector<16x128xbf16>, vector<384x128xf32> -> vector<384x128xf32>
    %c0_3 = arith.constant 0 : index
    %c0_4 = arith.constant 0 : index
    %4 = vector.load %arg3[%c0_3, %c0_4] : memref<384x2xf32, #tpu.memory_space<vmem>>, vector<384x1xf32>
    %5 = vector.broadcast %4 : vector<384x1xf32> to vector<384x128xf32>
    %6 = arith.addf %3, %5 : vector<384x128xf32>
    %7 = vector.extract_strided_slice %6 {offsets = [0, 0], sizes = [128, 128], strides = [1, 1]} : vector<384x128xf32> to vector<128x128xf32>
    %cst_5 = arith.constant 5.000000e-01 : f32
    %8 = vector.broadcast %cst_5 : f32 to vector<128x128xf32>
    %9 = arith.mulf %8, %7 : vector<128x128xf32>
    %10 = math.tanh %9 : vector<128x128xf32>
    %cst_6 = arith.constant 1.000000e+00 : f32
    %11 = vector.broadcast %cst_6 : f32 to vector<128x128xf32>
    %12 = arith.addf %10, %11 : vector<128x128xf32>
    %cst_7 = arith.constant 5.000000e-01 : f32
    %13 = vector.broadcast %cst_7 : f32 to vector<128x128xf32>
    %14 = arith.mulf %13, %12 : vector<128x128xf32>
    %15 = vector.extract_strided_slice %6 {offsets = [128, 0], sizes = [128, 128], strides = [1, 1]} : vector<384x128xf32> to vector<128x128xf32>
    %16 = math.tanh %15 : vector<128x128xf32>
    %17 = vector.extract_strided_slice %6 {offsets = [256, 0], sizes = [128, 128], strides = [1, 1]} : vector<384x128xf32> to vector<128x128xf32>
    %cst_8 = arith.constant 5.000000e-01 : f32
    %18 = vector.broadcast %cst_8 : f32 to vector<128x128xf32>
    %19 = arith.mulf %18, %17 : vector<128x128xf32>
    %20 = math.tanh %19 : vector<128x128xf32>
    %cst_9 = arith.constant 1.000000e+00 : f32
    %21 = vector.broadcast %cst_9 : f32 to vector<128x128xf32>
    %22 = arith.addf %20, %21 : vector<128x128xf32>
    %cst_10 = arith.constant 5.000000e-01 : f32
    %23 = vector.broadcast %cst_10 : f32 to vector<128x128xf32>
    %24 = arith.mulf %23, %22 : vector<128x128xf32>
    %25 = arith.mulf %14, %16 : vector<128x128xf32>
    %26 = math.tanh %25 : vector<128x128xf32>
    %27 = arith.mulf %24, %26 : vector<128x128xf32>
    %c0_11 = arith.constant 0 : index
    %c0_12 = arith.constant 0 : index
    %28 = vector.load %arg4[%c0_11, %c0_12] : memref<192x128xbf16, #tpu.memory_space<vmem>>, vector<192x128xbf16>
    %29 = arith.truncf %27 : vector<128x128xf32> to vector<128x128xbf16>
    %cst_13 = arith.constant dense<0.000000e+00> : vector<192x128xf32>
    %30 = tpu.matmul %28, %29, %cst_13 {dimension_numbers = #tpu.dot_dimension_numbers<[1], [0], [0], [1], [0, 0, 1, 1], [], []>} : vector<192x128xbf16>, vector<128x128xbf16>, vector<192x128xf32> -> vector<192x128xf32>
    %c0_14 = arith.constant 0 : index
    %c1 = arith.constant 1 : index
    %31 = vector.load %arg3[%c0_14, %c1] : memref<384x2xf32, #tpu.memory_space<vmem>>, vector<192x1xf32>
    %32 = vector.broadcast %31 : vector<192x1xf32> to vector<192x128xf32>
    %33 = arith.addf %30, %32 : vector<192x128xf32>
    %34 = vector.extract_strided_slice %33 {offsets = [0, 0], sizes = [64, 128], strides = [1, 1]} : vector<192x128xf32> to vector<64x128xf32>
    %cst_15 = arith.constant 5.000000e-01 : f32
    %35 = vector.broadcast %cst_15 : f32 to vector<64x128xf32>
    %36 = arith.mulf %35, %34 : vector<64x128xf32>
    %37 = math.tanh %36 : vector<64x128xf32>
    %cst_16 = arith.constant 1.000000e+00 : f32
    %38 = vector.broadcast %cst_16 : f32 to vector<64x128xf32>
    %39 = arith.addf %37, %38 : vector<64x128xf32>
    %cst_17 = arith.constant 5.000000e-01 : f32
    %40 = vector.broadcast %cst_17 : f32 to vector<64x128xf32>
    %41 = arith.mulf %40, %39 : vector<64x128xf32>
    %42 = vector.extract_strided_slice %33 {offsets = [64, 0], sizes = [64, 128], strides = [1, 1]} : vector<192x128xf32> to vector<64x128xf32>
    %43 = math.tanh %42 : vector<64x128xf32>
    %44 = vector.extract_strided_slice %33 {offsets = [128, 0], sizes = [64, 128], strides = [1, 1]} : vector<192x128xf32> to vector<64x128xf32>
    %cst_18 = arith.constant 5.000000e-01 : f32
    %45 = vector.broadcast %cst_18 : f32 to vector<64x128xf32>
    %46 = arith.mulf %45, %44 : vector<64x128xf32>
    %47 = math.tanh %46 : vector<64x128xf32>
    %cst_19 = arith.constant 1.000000e+00 : f32
    %48 = vector.broadcast %cst_19 : f32 to vector<64x128xf32>
    %49 = arith.addf %47, %48 : vector<64x128xf32>
    %cst_20 = arith.constant 5.000000e-01 : f32
    %50 = vector.broadcast %cst_20 : f32 to vector<64x128xf32>
    %51 = arith.mulf %50, %49 : vector<64x128xf32>
    %52 = arith.mulf %41, %43 : vector<64x128xf32>
    %53 = math.tanh %52 : vector<64x128xf32>
    %54 = arith.mulf %51, %53 : vector<64x128xf32>
    %c0_21 = arith.constant 0 : index
    %c0_22 = arith.constant 0 : index
    %55 = vector.load %arg5[%c0_21, %c0_22] : memref<64x1xf32, #tpu.memory_space<vmem>>, vector<64x1xf32>
    %56 = vector.broadcast %55 : vector<64x1xf32> to vector<64x128xf32>
    %57 = arith.mulf %54, %56 : vector<64x128xf32>
    %cst_23 = arith.constant dense<0.000000e+00> : vector<128xf32>
    %58 = vector.multi_reduction <add>, %57, %cst_23 [0] : vector<64x128xf32> to vector<128xf32>
    %59 = vector.shape_cast %58 : vector<128xf32> to vector<1x128xf32>
    %c192 = arith.constant 192 : index
    %c1_24 = arith.constant 1 : index
    %60 = vector.load %arg3[%c192, %c1_24] : memref<384x2xf32, #tpu.memory_space<vmem>>, vector<1x1xf32>
    %61 = vector.broadcast %60 : vector<1x1xf32> to vector<1x128xf32>
    %62 = arith.addf %59, %61 : vector<1x128xf32>
    %c0_25 = arith.constant 0 : index
    %c0_26 = arith.constant 0 : index
    %63 = vector.load %arg6[%c0_25, %c0_26] : memref<1x128xf32, #tpu.memory_space<vmem>>, vector<1x128xf32>
    tpu.vector_store %arg6[%c0_25, %c0_26], %62 {strides = array<i32>} : memref<1x128xf32, #tpu.memory_space<vmem>>, vector<1x128xf32>,
    return
  }
  func.func @transform_0(%arg0: i32) -> (i32, i32) {
    %c0_i32 = arith.constant 0 : i32
    %c0_i32_0 = arith.constant 0 : i32
    return %c0_i32, %arg0 : i32, i32
  }
  func.func @transform_1(%arg0: i32) -> (i32, i32) {
    %c0_i32 = arith.constant 0 : i32
    %c0_i32_0 = arith.constant 0 : i32
    %c0_i32_1 = arith.constant 0 : i32
    return %c0_i32, %c0_i32_0 : i32, i32
  }
  func.func @transform_2(%arg0: i32) -> (i32, i32) {
    %c0_i32 = arith.constant 0 : i32
    %c0_i32_0 = arith.constant 0 : i32
    %c0_i32_1 = arith.constant 0 : i32
    return %c0_i32, %c0_i32_0 : i32, i32
  }
  func.func @transform_3(%arg0: i32) -> (i32, i32) {
    %c0_i32 = arith.constant 0 : i32
    %c0_i32_0 = arith.constant 0 : i32
    %c0_i32_1 = arith.constant 0 : i32
    return %c0_i32, %c0_i32_0 : i32, i32
  }
  func.func @transform_4(%arg0: i32) -> (i32, i32) {
    %c0_i32 = arith.constant 0 : i32
    %c0_i32_0 = arith.constant 0 : i32
    %c0_i32_1 = arith.constant 0 : i32
    return %c0_i32, %c0_i32_0 : i32, i32
  }
  func.func @transform_5(%arg0: i32) -> (i32, i32) {
    %c0_i32 = arith.constant 0 : i32
    %c0_i32_0 = arith.constant 0 : i32
    return %c0_i32, %arg0 : i32, i32
  }
}

</mosaic_0001>

<bundles_post_ra>
// kernel: tpu_custom_call.1
= control target key start
LH: loop header
LB: loop body
LE: loop exit
PB: predicated region body
PF: predicated region fallthrough
CT: control target
= control target key end

     0   :  { %10 = vsyncpa [#allocation4], 0  ;;  %s3098_s0 = inlined_call_operand.vmem [shape: f32[16,512], index: 0, kind: input, shape index: {}]   ;;  %s3099_s1 = inlined_call_operand.vmem [shape: bf16[384,16], index: 1, kind: input, shape index: {}]   ;;  %s3100_s2 = inlined_call_operand.vmem [shape: f32[384,2], index: 2, kind: input, shape index: {}]   ;;  %s3101_s3 = inlined_call_operand.vmem [shape: bf16[192,128], index: 3, kind: input, shape index: {}]   ;;  %s3102_s4 = inlined_call_operand.vmem [shape: f32[64,1], index: 4, kind: input, shape index: {}]   ;;  %s3103_s5 = inlined_call_operand.hbm [shape: f32[1,512], index: 5, kind: output, shape index: {}]  }
   0x1   :  { %12 = vsyncpa [#allocation4 + $0x1], 0  ;;  %s2411_s18 = smov 0   ;;  %s2413_s19 = smov 0  }
   0x2   :  { %s2415_s20 = smov 0   ;;  %s2417_s21 = smov 0  }
   0x3 LB: > { %s1834_s22 = sadd.s32 4294967295, %s2376_s21   ;;  %s1835_s23 = sadd.s32 4294967294, %s2376_s21   ;;  %s2376_s21 = sphi %s2417_s21, %s3133_s21   ;;  %s2372_s20 = sphi %s2415_s20, %s3132_s20   ;;  %s2368_s19 = sphi %s2413_s19, %s3131_s19   ;;  %s2364_s18 = sphi %s2411_s18, %s3130_s18  }
   0x4   : > { %s2434_s24 = sadd.s32 1, %s2376_s21   ;;  %s25_s25 = sadd.s32 1, %s2372_s20 }
   0x5   : > { %s22_s26 = ssub.s32 %s2376_s21, %s2434_s24  ;;  %p32_p0 = scmp.ne.s32.totalorder %s2372_s20, %s2368_s19 }
   0x6   : > { %p23_p1 = scmp.eq.s32.totalorder %s22_s26, 0  ;;  %p33_p2 = scmp.eq.s32.totalorder %s2376_s21, 0 }
   0x7   : > { %p146_p3 = scmp.eq.s32.totalorder %s1834_s22, 3  ;;  %p151_p4 = scmp.ne.s32.totalorder %s2368_s19, %s2364_s18 }
   0x8   : > { %s2447_s27 = scalar_select %p23_p1, %s2372_s20, %s25_s25  }
   0x9   : > { %p34_p5 = por %p33_p2, %p32_p0  ;;  %p2449_p6 = por %p146_p3, %p32_p0 }
   0xa   : > { %p152_p7 = scmp.eq.s32.totalorder %s1835_s23, 3  ;;  %p1837_p9 = scmp.ge.s32.totalorder %s2376_s21, 4 }
   0xc   : > { %p2453_p8 = por %p152_p7, %p151_p4  ;;  %180 = sbr.rel (%p1837_p9) target bundleno = 23 (0x17), region = 32 }
  0x11   : > { %183 = sbr.rel (!%p34_p5) target bundleno = 23 (0x17), region = 36  ;;  %s185_s30 = sand.u32 (%p34_p5), 1, %s2372_s20  }
  0x12   : > { %s1839_s6 = sshll.u32 (%p34_p5), %s2376_s21, 3  ;;  %s1838_s7 = sshll.u32 (%p34_p5), %s185_s30, 4 }
  0x13   : > { %s189_s10 = scalar_lea.vmem (%p34_p5), %s3098_s0, %s1839_s6  ;;  %s187_s11 = scalar_lea.vmem (%p34_p5), [#allocation2], %s1838_s7 }
  0x14   : > { %v220_v0 = vld [vmem:[%s189_s10] sm:$0xff] (%p34_p5) }
  0x15   : > { %v222_v1 = vld [vmem:[%s189_s10 + $0x20] sm:$0xff] (%p34_p5)  ;;  %221 = vst [vmem:[%s187_s11] sm:$0xff] (%p34_p5), %v220_v0 }
  0x16   : > { %223 = vst [vmem:[%s187_s11 + $0x8] sm:$0xff] %v222_v1 }
  0x17 PF: > { %p1840_p10 = scmp.ge.s32.totalorder %s2376_s21, 1  ;;  %p228_p11 = scmp.lt.s32.totalorder %s2376_s21, 5 }
  0x19   : > { %p229_p12 = pnand %p1840_p10, %p228_p11 }
  0x1b   : > { %232 = sbr.rel (%p229_p12) target bundleno = 683 (0x2ab), region = 74 }
  0x20   : > { %s2466_s12 = sand.u32 1, %s2368_s19   ;;  %v2088_v2 = vld [vmem:[%s3099_s1] sm:$0xff]   ;;  %vm721_vm0 = vcmask 130048   ;;  %v327_v3 = vld [vmem:[%s3100_s2 + $0x70] sm:$0xff]  ;;  %v3104_v7 = vmov 0   ;;  %v328_v9 = vld [vmem:[%s3100_s2 + $0x78] sm:$0xff] }
  0x21   : > { %s1841_s15 = sshll.u32 %s2466_s12, 4  ;;  %1952 = vmatprep.mubr.msk.bf16.mxu0 %vm721_vm0, %v2088_v2  ;;  %v325_v4 = vld [vmem:[%s3100_s2 + $0x60] sm:$0xff]  ;;  %2082 = vset.pattern.permute.xlu1 %v3104_v7  ;;  %v2089_v10 = vld [vmem:[%s3099_s1 + $0x8] sm:$0xff]   ;;  %v2090_v12 = vld [vmem:[%s3099_s1 + $0x10] sm:$0xff]   ;;  %s1902_s30 = sshll.u32 %s1834_s22, 4 }
  0x22   : > { %s237_s26 = scalar_lea.vmem [#allocation2], %s1841_s15  ;;  %2081 = vset.pattern.permute.xlu0 %v3104_v7  ;;  %423 = vperm.xlu1 %2082, %v325_v4   ;;  %v326_v11 = vld [vmem:[%s3100_s2 + $0x68] sm:$0xff]  ;;  %v343_v13 = vld [vmem:[%s3100_s2 + $0xf0] sm:$0xff]  ;;  %v344_v14 = vld [vmem:[%s3100_s2 + $0xf8] sm:$0xff]  ;;  %s260_s6 = scalar_lea.vmem [#allocation3], %s2466_s12 }
  0x23   : > { %v262_v5 = vld [vmem:[%s237_s26] sm:$0xff]  ;;  %v263_v6 = vld [vmem:[%s237_s26 + $0x8] sm:$0xff]  ;;  %433 = vperm.xlu0 %2081, %v327_v3   ;;  %s1774_s7 = sshll.u32 %s260_s6, 4  ;;  %s1772_s10 = scalar_lea.hbm %s3103_s5, %s1902_s30  ;;  %s1775_s7 = int_to_ptr.vmem [resolvable:$true] %s1774_s7 }
  0x24   : > { %v264_v8 = vpack.c.bf16 %v263_v6, %v262_v5  ;;  %v324_v15 = vld [vmem:[%s3100_s2 + $0x58] sm:$0xff]  ;;  %v323_v16 = vld [vmem:[%s3100_s2 + $0x50] sm:$0xff]  ;;  %v2092_v18 = vld [vmem:[%s3099_s1 + $0x20] sm:$0xff]   ;;  %s1762_s11 = scalar_lea.sflag [#allocation4], %s2466_s12  ;;  %s2316_s13 = scalar_lea.vmem %s1775_s7, 16 }
  0x25   : > { %v2091_v17 = vld [vmem:[%s3099_s1 + $0x18] sm:$0xff]   ;;  %v342_v19 = vld [vmem:[%s3100_s2 + $0xe8] sm:$0xff]  ;;  %v341_v20 = vld [vmem:[%s3100_s2 + $0xe0] sm:$0xff]  ;;  %p2317_p13 = scmp.ne.s32.totalorder %s1775_s7, %s2316_s13  ;;  %s2380_s14 = smov [#allocation3]  }
  0x26   : > { %1950 = vmatprep.subr.bf16.mxu0 %v264_v8  ;;  %428 = vperm.xlu1 %2082, %v326_v11   ;;  %v322_v21 = vld [vmem:[%s3100_s2 + $0x48] sm:$0xff]  ;;  %v321_v22 = vld [vmem:[%s3100_s2 + $0x40] sm:$0xff]  ;;  %v2094_v24 = vld [vmem:[%s3099_s1 + $0x30] sm:$0xff]   ;;  %s2320_s15 = sshll.u32 %s2380_s14, 4  ;;  %s2321_s15 = int_to_ptr.vmem [resolvable:$false] %s2320_s15 }
  0x27   : > { %1951 = vmatpush3.bf16.msra.mxu0 %v264_v8  ;;  %438 = vperm.xlu0 %2081, %v328_v9   ;;  %v2093_v23 = vld [vmem:[%s3099_s1 + $0x28] sm:$0xff]   ;;  %v340_v25 = vld [vmem:[%s3100_s2 + $0xd8] sm:$0xff]  ;;  %v339_v26 = vld [vmem:[%s3100_s2 + $0xd0] sm:$0xff]  ;;  %p2318_p0 = pnand %p2317_p13, %p2449_p6  ;;  %s2322_s22 = scalar_lea.vmem %s2321_s15, 32 }
  0x28   : > { %v320_v27 = vld [vmem:[%s3100_s2 + $0x38] sm:$0xff]  ;;  %v319_v28 = vld [vmem:[%s3100_s2 + $0x30] sm:$0xff]  ;;  %v2096_v30 = vld [vmem:[%s3099_s1 + $0x40] sm:$0xff]   ;;  %p2323_p2 = scmp.lt.s32.totalorder %s1775_s7, %s2321_s15  ;;  %p2324_p3 = scmp.lt.s32.totalorder %s2322_s22, %s2316_s13 }
  0x29   : > { %v2095_v29 = vld [vmem:[%s3099_s1 + $0x38] sm:$0xff]   ;;  %v359_v32 = vld [vmem:[%s3100_s2 + $0x170] sm:$0xff]  ;;  %v338_v33 = vld [vmem:[%s3100_s2 + $0xc8] sm:$0xff]  ;;  %p2319_p1 = pneg %p2318_p0 }
  0x2a   : > { %1953 = vmatmul.mubr.msk.bf16.vlgmr.msra.gmra.mxu0 %vm721_vm0, %v2089_v10  ;;  %518 = vperm.xlu1 %2082, %v344_v14   ;;  %v360_v31 = vld [vmem:[%s3100_s2 + $0x178] sm:$0xff]  ;;  %v337_v34 = vld [vmem:[%s3100_s2 + $0xc0] sm:$0xff]  ;;  %v2097_v35 = vld [vmem:[%s3099_s1 + $0x48] sm:$0xff]   ;;  %p2325_p4 = por %p2324_p3, %p2323_p2 }
  0x2b   : > { %1956 = vmatprep.mubr.msk.bf16.mxu0 %vm721_vm0, %v2090_v12  ;;  %513 = vperm.xlu0 %2081, %v343_v13   ;;  %v2098_v36 = vld [vmem:[%s3099_s1 + $0x50] sm:$0xff]   ;;  %v318_v37 = vld [vmem:[%s3100_s2 + $0x28] sm:$0xff]  ;;  %v317_v38 = vld [vmem:[%s3100_s2 + $0x20] sm:$0xff] }
  0x2c   : > { %v358_v39 = vld [vmem:[%s3100_s2 + $0x168] sm:$0xff]  ;;  %v357_v40 = vld [vmem:[%s3100_s2 + $0x160] sm:$0xff]  ;;  %v2099_v41 = vld [vmem:[%s3099_s1 + $0x58] sm:$0xff]   ;;  %p2326_p5 = pnand %p2325_p4, %p2319_p1 }
  0x2d   : > { %v2100_v42 = vld [vmem:[%s3099_s1 + $0x60] sm:$0xff]   ;;  %v336_v43 = vld [vmem:[%s3100_s2 + $0xb8] sm:$0xff]  ;;  %v335_v44 = vld [vmem:[%s3100_s2 + $0xb0] sm:$0xff] }
  0x2e   : > { %418 = vperm.xlu1 %2082, %v324_v15   ;;  %v2604_v45 = vld [vmem:[%s3100_s2 + $0x18] sm:$0xff]  ;;  %v2609_v46 = vld [vmem:[%s3100_s2 + $0x10] sm:$0xff]  ;;  %v2101_v47 = vld [vmem:[%s3099_s1 + $0x68] sm:$0xff]  }
  0x2f   : > { %413 = vperm.xlu0 %2081, %v323_v16   ;;  %v2102_v48 = vld [vmem:[%s3099_s1 + $0x70] sm:$0xff]   ;;  %v356_v49 = vld [vmem:[%s3100_s2 + $0x158] sm:$0xff]  ;;  %v334_v51 = vld [vmem:[%s3100_s2 + $0xa8] sm:$0xff] }
  0x30   : > { %v355_v50 = vld [vmem:[%s3100_s2 + $0x150] sm:$0xff]  ;;  %v2633_v52 = vld [vmem:[%s3100_s2 + $0xa0] sm:$0xff]  ;;  %v2103_v53 = vld [vmem:[%s3099_s1 + $0x78] sm:$0xff]  }
  0x31   : > { %3111 = vst [vmem:[#allocation6_spill] sm:$0xff] %v2633_v52  ;;  %v2104_v54 = vld [vmem:[%s3099_s1 + $0x80] sm:$0xff]   ;;  %v2645_v55 = vld [vmem:[%s3100_s2 + $0x8] sm:$0xff]  ;;  %v2106_v60 = vld [vmem:[%s3099_s1 + $0x90] sm:$0xff]  }
  0x32   : > { %1957 = vmatmul.mubr.msk.bf16.gmra.mxu0 %vm721_vm0, %v2091_v17  ;;  %508 = vperm.xlu1 %2082, %v342_v19   ;;  %v2650_v56 = vld [vmem:[%s3100_s2] sm:$0xff]  ;;  %v354_v57 = vld [vmem:[%s3100_s2 + $0x148] sm:$0xff]  ;;  %v2671_v61 = vld [vmem:[%s3100_s2 + $0x98] sm:$0xff] }
  0x33   : > { %1960 = vmatprep.mubr.msk.bf16.mxu0 %vm721_vm0, %v2092_v18  ;;  %503 = vperm.xlu0 %2081, %v341_v20   ;;  %v353_v58 = vld [vmem:[%s3100_s2 + $0x140] sm:$0xff]  ;;  %v2105_v59 = vld [vmem:[%s3099_s1 + $0x88] sm:$0xff]   ;;  %3112 = vst [vmem:[#allocation7_spill] sm:$0xff] %v2671_v61  ;;  %v2676_v62 = vld [vmem:[%s3100_s2 + $0x90] sm:$0xff] }
  0x34   : > { %3113 = vst [vmem:[#allocation8_spill] sm:$0xff] %v2676_v62  ;;  %v352_v63 = vld [vmem:[%s3100_s2 + $0x138] sm:$0xff]  ;;  %v351_v0 = vld [vmem:[%s3100_s2 + $0x130] sm:$0xff]  ;;  %v2108_v2 = vld [vmem:[%s3099_s1 + $0xa0] sm:$0xff]  }
  0x35   : > { %v2107_v1 = vld [vmem:[%s3099_s1 + $0x98] sm:$0xff]   ;;  %v2697_v3 = vld [vmem:[%s3100_s2 + $0x88] sm:$0xff]  ;;  %v2702_v4 = vld [vmem:[%s3100_s2 + $0x80] sm:$0xff] }
  0x36   : > { %408 = vperm.xlu1 %2082, %v322_v21   ;;  %v350_v5 = vld [vmem:[%s3100_s2 + $0x128] sm:$0xff]  ;;  %v349_v6 = vld [vmem:[%s3100_s2 + $0x120] sm:$0xff]  ;;  %v2110_v9 = vld [vmem:[%s3099_s1 + $0xb0] sm:$0xff]  }
  0x37   : > { %403 = vperm.xlu0 %2081, %v321_v22   ;;  %v2109_v8 = vld [vmem:[%s3099_s1 + $0xa8] sm:$0xff]   ;;  %v348_v10 = vld [vmem:[%s3100_s2 + $0x118] sm:$0xff]  ;;  %v347_v11 = vld [vmem:[%s3100_s2 + $0x110] sm:$0xff] }
  0x38   : > { %v346_v12 = vld [vmem:[%s3100_s2 + $0x108] sm:$0xff]  ;;  %v345_v13 = vld [vmem:[%s3100_s2 + $0x100] sm:$0xff]  ;;  %v2111_v14 = vld [vmem:[%s3099_s1 + $0xb8] sm:$0xff]  }
  0x3a   : > { %1961 = vmatmul.mubr.msk.bf16.gmra.mxu0 %vm721_vm0, %v2093_v23  ;;  %498 = vperm.xlu1 %2082, %v340_v25  }
  0x3b   : > { %1964 = vmatprep.mubr.msk.bf16.mxu0 %vm721_vm0, %v2094_v24  ;;  %493 = vperm.xlu0 %2081, %v339_v26  }
  0x3e   : > { %398 = vperm.xlu1 %2082, %v320_v27  }
  0x3f   : > { %393 = vperm.xlu0 %2081, %v319_v28  }
  0x42   : > { %1965 = vmatmul.mubr.msk.bf16.gmra.mxu0 %vm721_vm0, %v2095_v29  ;;  %598 = vperm.xlu1 %2082, %v360_v31  }
  0x43   : > { %1968 = vmatprep.mubr.msk.bf16.mxu0 %vm721_vm0, %v2096_v30  ;;  %593 = vperm.xlu0 %2081, %v359_v32  }
  0x46   : > { %488 = vperm.xlu1 %2082, %v338_v33  }
  0x47   : > { %483 = vperm.xlu0 %2081, %v337_v34  }
  0x4a   : > { %1969 = vmatmul.mubr.msk.bf16.gmra.mxu0 %vm721_vm0, %v2097_v35  ;;  %388 = vperm.xlu1 %2082, %v318_v37  }
  0x4b   : > { %1972 = vmatprep.mubr.msk.bf16.mxu0 %vm721_vm0, %v2098_v36  ;;  %383 = vperm.xlu0 %2081, %v317_v38  }
  0x4e   : > { %588 = vperm.xlu1 %2082, %v358_v39  }
  0x4f   : > { %583 = vperm.xlu0 %2081, %v357_v40  }
  0x52   : > { %1973 = vmatmul.mubr.msk.bf16.gmra.mxu0 %vm721_vm0, %v2099_v41  ;;  %478 = vperm.xlu1 %2082, %v336_v43  }
  0x53   : > { %1976 = vmatprep.mubr.msk.bf16.mxu0 %vm721_vm0, %v2100_v42  ;;  %473 = vperm.xlu0 %2081, %v335_v44  }
  0x56   : > { %378 = vperm.xlu1 %2082, %v2604_v45  }
  0x57   : > { %373 = vperm.xlu0 %2081, %v2609_v46  }
  0x5a   : > { %1977 = vmatmul.mubr.msk.bf16.gmra.mxu0 %vm721_vm0, %v2101_v47  ;;  %578 = vperm.xlu1 %2082, %v356_v49  }
  0x5b   : > { %1980 = vmatprep.mubr.msk.bf16.mxu0 %vm721_vm0, %v2102_v48  ;;  %573 = vperm.xlu0 %2081, %v355_v50  }
  0x5e   : > { %468 = vperm.xlu1 %2082, %v334_v51  }
  0x5f   : > { %463 = vperm.xlu0 %2081, %v2633_v52  }
  0x62   : > { %1981 = vmatmul.mubr.msk.bf16.gmra.mxu0 %vm721_vm0, %v2103_v53  ;;  %368 = vperm.xlu1 %2082, %v2645_v55  }
  0x63   : > { %1984 = vmatprep.mubr.msk.bf16.mxu0 %vm721_vm0, %v2104_v54  ;;  %363 = vperm.xlu0 %2081, %v2650_v56  }
  0x66   : > { %568 = vperm.xlu1 %2082, %v354_v57  }
  0x67   : > { %563 = vperm.xlu0 %2081, %v353_v58  }
  0x6a   : > { %1985 = vmatmul.mubr.msk.bf16.gmra.mxu0 %vm721_vm0, %v2105_v59  ;;  %458 = vperm.xlu1 %2082, %v2671_v61  }
  0x6b   : > { %1988 = vmatprep.mubr.msk.bf16.mxu0 %vm721_vm0, %v2106_v60  ;;  %453 = vperm.xlu0 %2081, %v2676_v62  }
  0x6e   : > { %558 = vperm.xlu1 %2082, %v352_v63  }
  0x6f   : > { %553 = vperm.xlu0 %2081, %v351_v0  }
  0x72   : > { %1989 = vmatmul.mubr.msk.bf16.gmra.mxu0 %vm721_vm0, %v2107_v1  ;;  %448 = vperm.xlu1 %2082, %v2697_v3  }
  0x73   : > { %1992 = vmatprep.mubr.msk.bf16.mxu0 %vm721_vm0, %v2108_v2  ;;  %443 = vperm.xlu0 %2081, %v2702_v4  }
  0x76   : > { %548 = vperm.xlu1 %2082, %v350_v5  }
  0x77   : > { %543 = vperm.xlu0 %2081, %v349_v6  }
  0x7a   : > { %1993 = vmatmul.mubr.msk.bf16.gmra.mxu0 %vm721_vm0, %v2109_v8  ;;  %538 = vperm.xlu1 %2082, %v348_v10  }
  0x7b   : > { %1996 = vmatprep.mubr.msk.bf16.mxu0 %vm721_vm0, %v2110_v9  ;;  %533 = vperm.xlu0 %2081, %v347_v11   ;;  %v2112_v9 = vld [vmem:[%s3101_s3] sm:$0xff]  }
  0x7c   : > { %2016 = vmatprep.mubr.bf16.mxu1 %v2112_v9 }
  0x7e   : > { %528 = vperm.xlu1 %2082, %v346_v12  }
  0x7f   : > { %523 = vperm.xlu0 %2081, %v345_v13  }
  0x82   : > { %1997 = vmatmul.mubr.msk.bf16.gmra.mxu0 %vm721_vm0, %v2111_v14 }
  0x9d   : > { %v2740_v16 = vpop.permute.xlu1 %423 }
  0x9e   : > { %v2738_v15 = vpop.permute.xlu0 %433 }
  0xa1   : > { %v2744_v18 = vpop.permute.xlu1 %428 }
  0xa2   : > { %v2742_v17 = vpop.permute.xlu0 %438 }
  0xa5   : > { %v2748_v20 = vpop.permute.xlu1 %518 }
  0xa6   : > { %v2746_v19 = vpop.permute.xlu0 %513 }
  0xa9   : > { %v2750_v21 = vpop.permute.xlu1 %418 }
  0xaa   : > { %v2752_v22 = vpop.permute.xlu0 %413 }
  0xad   : > { %v2756_v24 = vpop.permute.xlu1 %508 }
  0xae   : > { %v2754_v23 = vpop.permute.xlu0 %503 }
  0xb1   : > { %v2760_v26 = vpop.permute.xlu1 %408 }
  0xb2   : > { %v2758_v25 = vpop.permute.xlu0 %403 }
  0xb5   : > { %v2764_v28 = vpop.permute.xlu1 %498 }
  0xb6   : > { %v2762_v27 = vpop.permute.xlu0 %493 }
  0xb9   : > { %v2766_v30 = vpop.permute.xlu1 %398 }
  0xba   : > { %v394_v29 = vpop.permute.xlu0 %393 }
  0xbd   : > { %v2770_v32 = vpop.permute.xlu1 %598 }
  0xbe   : > { %v2768_v31 = vpop.permute.xlu0 %593  ;;  %3115 = vst [vmem:[#allocation10_spill] sm:$0xff] %v2770_v32 }
  0xbf   : > { %3114 = vst [vmem:[#allocation9_spill] sm:$0xff] %v2768_v31 }
  0xc1   : > { %v2774_v34 = vpop.permute.xlu1 %488 }
  0xc2   : > { %v2772_v33 = vpop.permute.xlu0 %483 }
  0xc5   : > { %v2776_v36 = vpop.permute.xlu1 %388 }
  0xc6   : > { %v384_v35 = vpop.permute.xlu0 %383 }
  0xc9   : > { %v2780_v38 = vpop.permute.xlu1 %588 }
  0xca   : > { %v2778_v37 = vpop.permute.xlu0 %583  ;;  %3117 = vst [vmem:[#allocation12_spill] sm:$0xff] %v2780_v38 }
  0xcb   : > { %3116 = vst [vmem:[#allocation11_spill] sm:$0xff] %v2778_v37 }
  0xcd   : > { %v2784_v40 = vpop.permute.xlu1 %478 }
  0xce   : > { %v2782_v39 = vpop.permute.xlu0 %473 }
  0xd1   : > { %v379_v42 = vpop.permute.xlu1 %378 }
  0xd2   : > { %v374_v41 = vpop.permute.xlu0 %373 }
  0xd5   : > { %v2788_v47 = vpop.permute.xlu1 %578 }
  0xd6   : > { %v2786_v43 = vpop.permute.xlu0 %573  ;;  %3118 = vst [vmem:[#allocation13_spill] sm:$0xff] %v2788_v47 }
  0xd9   : > { %v2792_v53 = vpop.permute.xlu1 %468 }
  0xda   : > { %v2790_v49 = vpop.permute.xlu0 %463 }
  0xdd   : > { %v369_v60 = vpop.permute.xlu1 %368 }
  0xde   : > { %v364_v57 = vpop.permute.xlu0 %363 }
  0xe1   : > { %v2796_v6 = vpop.permute.xlu1 %568 }
  0xe2   : > { %v2794_v0 = vpop.permute.xlu0 %563  ;;  %3119 = vst [vmem:[#allocation14_spill] sm:$0xff] %v2796_v6 }
  0xe5   : > { %v459_v52 = vpop.permute.xlu1 %458 }
  0xe6   : > { %v454_v11 = vpop.permute.xlu0 %453 }
  0xea   : > { %v1954_v44 = vpop.f32.mrf.mxu0 }
  0xeb   : > { %v837_v5 = vadd.f32 %v1954_v44, %v374_v41  ;;  %v2803_v44 = vpop.permute.xlu0 %553 }
  0xec   : > { %v828_v48 = vpop.f32.mrf.mxu0 }
  0xed   : > { %v829_v10 = vadd.f32 %v828_v48, %v364_v57  ;;  %v1021_v14 = vmul.f32 0.5, %v837_v5  ;;  %v2809_v57 = vpop.permute.xlu1 %558 }
  0xee   : > { %v1955_v50 = vpop.f32.mrf.mxu0 }
  0xef   : > { %v840_v13 = vadd.f32 %v1955_v50, %v379_v42  ;;  %v1019_v38 = vmul.f32 0.5, %v829_v10  ;;  %2124 = vtanh.f32 %v1021_v14  ;;  %v444_v50 = vpop.permute.xlu0 %443 }
  0xf0   : > { %v831_v51 = vpop.f32.mrf.mxu0 }
  0xf1   : > { %v832_v32 = vadd.f32 %v831_v51, %v369_v60  ;;  %v1022_v41 = vmul.f32 0.5, %v840_v13  ;;  %2126 = vtanh.f32 %v1019_v38 }
  0xf2   : > { %v1958_v54 = vpop.f32.mrf.mxu0 }
  0xf3   : > { %v1020_v61 = vmul.f32 0.5, %v832_v32  ;;  %2128 = vtanh.f32 %v1022_v41  ;;  %v853_v9 = vadd.f32 %v1958_v54, %v394_v29  ;;  %v449_v32 = vpop.permute.xlu1 %448 }
  0xf4   : > { %v844_v58 = vpop.f32.mrf.mxu0 }
  0xf5   : > { %2130 = vtanh.f32 %v1020_v61  ;;  %v845_v13 = vadd.f32 %v844_v58, %v384_v35  ;;  %v1025_v47 = vmul.f32 0.5, %v853_v9 }
  0xf6   : > { %v1959_v59 = vpop.f32.mrf.mxu0 }
  0xf7   : > { %v856_v38 = vadd.f32 %v1959_v59, %v2766_v30 }
  0xf8   : > { %v847_v63 = vpop.f32.mrf.mxu0 }
  0xf9   : > { %v848_v41 = vadd.f32 %v847_v63, %v2776_v36  ;;  %v1026_v54 = vmul.f32 0.5, %v856_v38 }
  0xfa   : > { %v1962_v1 = vpop.f32.mrf.mxu0 }
  0xfb   : > { %v869_v61 = vadd.f32 %v1962_v1, %v2752_v22  ;;  %v1024_v58 = vmul.f32 0.5, %v848_v41 }
  0xfc   : > { %v860_v2 = vpop.f32.mrf.mxu0 }
  0xfd   : > { %v861_v35 = vadd.f32 %v860_v2, %v2758_v25 }
  0xfe   : > { %v1963_v8 = vpop.f32.mrf.mxu0 }
  0xff   : > { %v1027_v1 = vmul.f32 0.5, %v861_v35 }
 0x100   : > { %v863_v12 = vpop.f32.mrf.mxu0 }
 0x102   : > { %v1966_v7 = vpop.f32.mrf.mxu0 }
 0x103   : > { %v885_v25 = vadd.f32 %v1966_v7, %v2738_v15 }
 0x104   : > { %v2801_v37 = vpop.f32.mrf.mxu0 }
 0x105   : > { %v1033_v41 = vmul.f32 0.5, %v885_v25  ;;  %v1252_v25 = vld [vmem:[%s3100_s2 + $0x48] sm:$0xff] }
 0x106   : > { %v2805_v31 = vpop.f32.mrf.mxu0 }
 0x108   : > { %v2807_v48 = vpop.f32.mrf.mxu0 }
 0x10a   : > { %v1970_v42 = vpop.f32.mrf.mxu0 }
 0x10b   : > { %v901_v51 = vadd.f32 %v1970_v42, %v454_v11  ;;  %v2125_v42 = vpop.eup %2124 }
 0x10c   : > { %v892_v60 = vpop.f32.mrf.mxu0  ;;  %v2127_v29 = vpop.eup %2126  ;;  %v1053_v59 = vadd.f32 1.0, %v2125_v42 }
 0x10d   : > { %v893_v5 = vadd.f32 %v892_v60, %v444_v50  ;;  %2132 = vtanh.f32 %v901_v51  ;;  %v1023_v50 = vmul.f32 0.5, %v845_v13  ;;  %v2129_v30 = vpop.eup %2128  ;;  %v1029_v51 = vmul.f32 0.5, %v869_v61 }
 0x10e   : > { %v1971_v10 = vpop.f32.mrf.mxu0  ;;  %v1051_v63 = vadd.f32 1.0, %v2127_v29  ;;  %v2131_v22 = vpop.eup %2130  ;;  %v1069_v2 = vmul.f32 0.5, %v1053_v59  ;;  %v880_v61 = vadd.f32 %v2807_v48, %v2744_v18 }
 0x10f   : > { %2134 = vtanh.f32 %v893_v5  ;;  %v904_v14 = vadd.f32 %v1971_v10, %v459_v52  ;;  %v1054_v5 = vadd.f32 1.0, %v2129_v30  ;;  %v2379_v10 = vmov 1   ;;  %v2846_v59 = vpop.permute.xlu1 %548 }
 0x110   : > { %v895_v62 = vpop.f32.mrf.mxu0  ;;  %2084 = vset.pattern.permute.xlu1 %v2379_v10  ;;  %2083 = vset.pattern.permute.xlu0 %v2379_v10  ;;  %v1052_v13 = vadd.f32 1.0, %v2131_v22  ;;  %v1032_v48 = vmul.f32 0.5, %v880_v61 }
 0x111   : > { %2136 = vtanh.f32 %v904_v14  ;;  %v896_v6 = vadd.f32 %v895_v62, %v449_v32  ;;  %v872_v62 = vadd.f32 %v1963_v8, %v2750_v21  ;;  %v1067_v8 = vmul.f32 0.5, %v1051_v63  ;;  %1274 = vperm.xlu1 %2084, %v2645_v55   ;;  %1269 = vperm.xlu0 %2083, %v2650_v56  }
 0x112   : > { %v1974_v11 = vpop.f32.mrf.mxu0  ;;  %v1070_v32 = vmul.f32 0.5, %v1054_v5  ;;  %v1068_v56 = vmul.f32 0.5, %v1052_v13  ;;  %v1249_v13 = vld [vmem:[%s3100_s2 + $0x30] sm:$0xff] }
 0x113   : > { %2138 = vtanh.f32 %v896_v6  ;;  %v864_v6 = vadd.f32 %v863_v12, %v2760_v26  ;;  %v1030_v14 = vmul.f32 0.5, %v872_v62  ;;  %v877_v26 = vadd.f32 %v2801_v37, %v2740_v16 }
 0x114   : > { %v908_v52 = vpop.f32.mrf.mxu0  ;;  %2140 = vtanh.f32 %v1025_v47  ;;  %v917_v47 = vadd.f32 %v1974_v11, %v2782_v39  ;;  %v888_v39 = vadd.f32 %v2805_v31, %v2742_v17  ;;  %v2832_v31 = vpop.permute.xlu0 %543 }
 0x115   : > { %2142 = vtanh.f32 %v1023_v50  ;;  %v1028_v15 = vmul.f32 0.5, %v864_v6  ;;  %v909_v55 = vadd.f32 %v908_v52, %v2790_v49  ;;  %v1031_v37 = vmul.f32 0.5, %v877_v26  ;;  %1279 = vperm.xlu1 %2084, %v2609_v46   ;;  %1284 = vperm.xlu0 %2083, %v2604_v45   ;;  %v1247_v49 = vld [vmem:[%s3100_s2 + $0x20] sm:$0xff] }
 0x116   : > { %v1975_v36 = vpop.f32.mrf.mxu0  ;;  %2144 = vtanh.f32 %v1026_v54  ;;  %v1034_v29 = vmul.f32 0.5, %v888_v39  ;;  %v1251_v46 = vld [vmem:[%s3100_s2 + $0x40] sm:$0xff] }
 0x117   : > { %2146 = vtanh.f32 %v1024_v58  ;;  %v920_v45 = vadd.f32 %v1975_v36, %v2784_v40 }
 0x118   : > { %v911_v60 = vpop.f32.mrf.mxu0  ;;  %2148 = vtanh.f32 %v1029_v51  ;;  %v534_v36 = vpop.permute.xlu0 %533 }
 0x119   : > { %2150 = vtanh.f32 %v1027_v1  ;;  %v912_v58 = vadd.f32 %v911_v60, %v2792_v53  ;;  %1289 = vperm.xlu1 %2084, %v1247_v49   ;;  %1309 = vperm.xlu0 %2083, %v1251_v46  }
 0x11a   : > { %v1978_v9 = vpop.f32.mrf.mxu0  ;;  %v2133_v21 = vpop.eup %2132  ;;  %2152 = vtanh.f32 %v917_v47 }
 0x11b   : > { %v1165_v12 = vmul.f32 %v2133_v21, %v1069_v2  ;;  %2154 = vtanh.f32 %v1030_v14  ;;  %v933_v51 = vadd.f32 %v1978_v9, %v2762_v27  ;;  %v1248_v2 = vld [vmem:[%s3100_s2 + $0x28] sm:$0xff]  ;;  %v539_v47 = vpop.permute.xlu1 %538 }
 0x11c   : > { %v2135_v7 = vpop.eup %2134  ;;  %v924_v38 = vpop.f32.mrf.mxu0  ;;  %2156 = vtanh.f32 %v1028_v15 }
 0x11d   : > { %v1163_v11 = vmul.f32 %v2135_v7, %v1067_v8  ;;  %2158 = vtanh.f32 %v1033_v41  ;;  %v925_v1 = vadd.f32 %v924_v38, %v2772_v33  ;;  %1314 = vperm.xlu1 %2084, %v1252_v25   ;;  %1294 = vperm.xlu0 %2083, %v1248_v2   ;;  %v524_v15 = vpop.permute.xlu0 %523 }
 0x11e   : > { %v2137_v42 = vpop.eup %2136  ;;  %v1979_v16 = vpop.f32.mrf.mxu0  ;;  %2160 = vtanh.f32 %v909_v55 }
 0x11f   : > { %v1166_v50 = vmul.f32 %v2137_v42, %v1070_v32  ;;  %2162 = vtanh.f32 %v1031_v37  ;;  %v936_v5 = vadd.f32 %v1979_v16, %v2764_v28  ;;  %v1253_v28 = vld [vmem:[%s3100_s2 + $0x50] sm:$0xff]  ;;  %v1254_v16 = vld [vmem:[%s3100_s2 + $0x58] sm:$0xff] }
 0x120   : > { %v2139_v17 = vpop.eup %2138  ;;  %v927_v18 = vpop.f32.mrf.mxu0  ;;  %2164 = vtanh.f32 %v1034_v29 }
 0x121   : > { %v2834_v54 = vmul.f32 %v2139_v17, %v1068_v56  ;;  %v2141_v52 = vpop.eup %2140  ;;  %2166 = vtanh.f32 %v1032_v48  ;;  %v928_v33 = vadd.f32 %v927_v18, %v2774_v34  ;;  %1319 = vperm.xlu1 %2084, %v1253_v28   ;;  %1299 = vperm.xlu0 %2083, %v1249_v13   ;;  %v1250_v56 = vld [vmem:[%s3100_s2 + $0x38] sm:$0xff]  ;;  %v529_v17 = vpop.permute.xlu1 %528 }
 0x122   : > { %v2843_v35 = vpop.f32.mrf.mxu0  ;;  %v2143_v30 = vpop.eup %2142  ;;  %2168 = vtanh.f32 %v920_v45  ;;  %v1057_v6 = vadd.f32 1.0, %v2141_v52 }
 0x123   : > { %v2851_v62 = vpop.eup %2144  ;;  %2170 = vtanh.f32 %v912_v58  ;;  %v1055_v7 = vadd.f32 1.0, %v2143_v30  ;;  %v949_v29 = vadd.f32 %v2843_v35, %v2746_v19  ;;  %v1255_v19 = vld [vmem:[%s3100_s2 + $0x60] sm:$0xff]  ;;  %v1256_v35 = vld [vmem:[%s3100_s2 + $0x68] sm:$0xff] }
 0x124   : > { %v2849_v63 = vpop.f32.mrf.mxu0  ;;  %v2853_v40 = vpop.eup %2146  ;;  %2172 = vtanh.f32 %v933_v51  ;;  %v1073_v26 = vmul.f32 0.5, %v1057_v6 }
 0x125   : > { %v2857_v53 = vpop.eup %2148  ;;  %2174 = vtanh.f32 %v1165_v12  ;;  %1324 = vperm.xlu1 %2084, %v1254_v16   ;;  %1304 = vperm.xlu0 %2083, %v1250_v56   ;;  %v941_v6 = vadd.f32 %v2849_v63, %v2754_v23 }
 0x126   : > { %v2855_v22 = vpop.f32.mrf.mxu0  ;;  %v2862_v27 = vpop.eup %2150  ;;  %2176 = vtanh.f32 %v1163_v11 }
 0x127   : > { %v2153_v21 = vpop.eup %2152  ;;  %2178 = vtanh.f32 %v925_v1  ;;  %v1058_v1 = vadd.f32 1.0, %v2851_v62  ;;  %v952_v62 = vadd.f32 %v2855_v22, %v2748_v20 }
 0x128   : > { %v2860_v60 = vpop.f32.mrf.mxu0  ;;  %v2878_v14 = vpop.eup %2154  ;;  %2180 = vtanh.f32 %v1166_v50  ;;  %v1169_v41 = vmul.f32 %v2153_v21, %v1073_v26  ;;  %v1071_v50 = vmul.f32 0.5, %v1055_v7 }
 0x129   : > { %v2157_v39 = vpop.eup %2156  ;;  %2182 = vtanh.f32 %v936_v5  ;;  %1329 = vperm.xlu1 %2084, %v1255_v19   ;;  %1334 = vperm.xlu0 %2083, %v1256_v35   ;;  %v1074_v28 = vmul.f32 0.5, %v1058_v1  ;;  %v944_v20 = vadd.f32 %v2860_v60, %v2756_v24  ;;  %v2931_v24 = vadd.f32 1.0, %v2857_v53 }
 0x12a   : > { %v1986_v9 = vpop.f32.mrf.mxu0  ;;  %v2880_v32 = vpop.eup %2158  ;;  %2184 = vtanh.f32 %v928_v33 }
 0x12b   : > { %v965_v8 = vadd.f32 %v1986_v9, %v534_v36  ;;  %v2161_v11 = vpop.eup %2160  ;;  %v1059_v9 = vadd.f32 1.0, %v2862_v27  ;;  %v1060_v27 = vadd.f32 1.0, %v2157_v39  ;;  %v1065_v53 = vadd.f32 1.0, %v2880_v32 }
 0x12c   : > { %v956_v34 = vpop.f32.mrf.mxu0  ;;  %v2888_v37 = vpop.eup %2162  ;;  %v1167_v52 = vmul.f32 %v2161_v11, %v1071_v50 }
 0x12d   : > { %v1101_v12 = vmul.f32 0.5, %v965_v8  ;;  %v957_v38 = vadd.f32 %v956_v34, %v524_v15  ;;  %v2893_v48 = vpop.eup %2164  ;;  %v1075_v34 = vmul.f32 0.5, %v1059_v9  ;;  %1349 = vperm.xlu0 %2083, %v2702_v4   ;;  %v1076_v11 = vmul.f32 0.5, %v1060_v27 }
 0x12e   : > { %v1987_v61 = vpop.f32.mrf.mxu0  ;;  %v2895_v45 = vpop.eup %2166  ;;  %v2940_v4 = vadd.f32 1.0, %v2878_v14  ;;  %v1066_v14 = vadd.f32 1.0, %v2893_v48  ;;  %v1081_v35 = vmul.f32 0.5, %v1065_v53  ;;  %v3127_v53 = vld [vmem:[#allocation10_spill] sm:$0xff] }
 0x12f   : > { %2186 = vtanh.f32 %v1101_v12  ;;  %v1099_v42 = vmul.f32 0.5, %v957_v38  ;;  %v968_v55 = vadd.f32 %v1987_v61, %v539_v47  ;;  %v2169_v30 = vpop.eup %2168 }
 0x130   : > { %2188 = vtanh.f32 %v2834_v54  ;;  %v959_v18 = vpop.f32.mrf.mxu0  ;;  %v2171_v36 = vpop.eup %2170  ;;  %v1170_v12 = vmul.f32 %v2169_v30, %v1074_v28  ;;  %v1082_v27 = vmul.f32 0.5, %v1066_v14 }
 0x131   : > { %2190 = vtanh.f32 %v1099_v42  ;;  %v1102_v49 = vmul.f32 0.5, %v968_v55  ;;  %v960_v46 = vadd.f32 %v959_v18, %v529_v17  ;;  %v2907_v25 = vpop.eup %2172 }
 0x132   : > { %2192 = vtanh.f32 %v1169_v41  ;;  %v1990_v58 = vpop.f32.mrf.mxu0  ;;  %v2911_v33 = vpop.eup %2174 }
 0x133   : > { %2194 = vtanh.f32 %v1102_v49  ;;  %v1100_v51 = vmul.f32 0.5, %v960_v46  ;;  %v981_v54 = vadd.f32 %v1990_v58, %v2803_v44  ;;  %v1056_v44 = vadd.f32 1.0, %v2853_v40  ;;  %v2916_v23 = vpop.eup %2176 }
 0x134   : > { %2196 = vtanh.f32 %v949_v29  ;;  %v972_v5 = vpop.f32.mrf.mxu0  ;;  %v2179_v8 = vpop.eup %2178  ;;  %v1063_v29 = vadd.f32 1.0, %v2888_v37  ;;  %v3120_v37 = vld [vmem:[#allocation13_spill] sm:$0xff] }
 0x135   : > { %2198 = vtanh.f32 %v1100_v51  ;;  %v1105_v2 = vmul.f32 0.5, %v981_v54  ;;  %v973_v47 = vadd.f32 %v972_v5, %v2832_v31  ;;  %v1257_v31 = vld [vmem:[%s3100_s2 + $0x70] sm:$0xff]  ;;  %v2924_v13 = vpop.eup %2180  ;;  %v1072_v26 = vmul.f32 0.5, %v1056_v44 }
 0x136   : > { %2200 = vtanh.f32 %v1167_v52  ;;  %v1991_v21 = vpop.f32.mrf.mxu0  ;;  %1339 = vperm.xlu1 %2084, %v1257_v31   ;;  %v1171_v42 = vmul.f32 %v2179_v8, %v1075_v34  ;;  %v1064_v52 = vadd.f32 1.0, %v2895_v45  ;;  %v2952_v5 = vmul.f32 0.5, %v1063_v29  ;;  %v1264_v8 = vld [vmem:[%s3100_s2 + $0xa8] sm:$0xff]  ;;  %v1266_v29 = vld [vmem:[%s3100_s2 + $0xb8] sm:$0xff] }
 0x137   : > { %2202 = vtanh.f32 %v1105_v2  ;;  %v1103_v63 = vmul.f32 0.5, %v973_v47  ;;  %v984_v40 = vadd.f32 %v1991_v21, %v2809_v57  ;;  %v2927_v57 = vpop.eup %2182  ;;  %v1168_v60 = vmul.f32 %v2171_v36, %v1072_v26  ;;  %v3122_v2 = vld [vmem:[#allocation8_spill] sm:$0xff]  ;;  %v3123_v47 = vld [vmem:[#allocation7_spill] sm:$0xff] }
 0x138   : > { %2204 = vtanh.f32 %v941_v6  ;;  %v975_v22 = vpop.f32.mrf.mxu0  ;;  %v2185_v39 = vpop.eup %2184 }
 0x139   : > { %2206 = vtanh.f32 %v1103_v63  ;;  %v1106_v7 = vmul.f32 0.5, %v984_v40  ;;  %v976_v15 = vadd.f32 %v975_v22, %v2846_v59  ;;  %v1258_v59 = vld [vmem:[%s3100_s2 + $0x78] sm:$0xff]  ;;  %v1172_v18 = vmul.f32 %v2185_v39, %v1076_v11  ;;  %v3125_v39 = vld [vmem:[#allocation11_spill] sm:$0xff]  ;;  %v3126_v11 = vld [vmem:[#allocation6_spill] sm:$0xff] }
 0x13a   : > { %2208 = vtanh.f32 %v952_v62  ;;  %v1994_v38 = vpop.f32.mrf.mxu0  ;;  %1354 = vperm.xlu1 %2084, %v2697_v3   ;;  %1344 = vperm.xlu0 %2083, %v1258_v59   ;;  %v3121_v3 = vld [vmem:[#allocation14_spill] sm:$0xff]  ;;  %v3124_v40 = vld [vmem:[#allocation9_spill] sm:$0xff] }
 0x13b   : > { %2210 = vtanh.f32 %v1106_v7  ;;  %v1104_v41 = vmul.f32 0.5, %v976_v15  ;;  %v997_v55 = vadd.f32 %v1994_v38, %v2786_v43 }
 0x13c   : > { %v2187_v61 = vpop.eup %2186  ;;  %2212 = vtanh.f32 %v944_v20  ;;  %v988_v16 = vpop.f32.mrf.mxu0  ;;  %v1080_v20 = vmul.f32 0.5, %v1064_v52 }
 0x13d   : > { %v2937_v56 = vpop.eup %2188  ;;  %2214 = vtanh.f32 %v1104_v41  ;;  %v989_v50 = vadd.f32 %v988_v16, %v2794_v0  ;;  %v1133_v49 = vadd.f32 1.0, %v2187_v61  ;;  %v1109_v30 = vmul.f32 0.5, %v997_v55 }
 0x13e   : > { %v2191_v17 = vpop.eup %2190  ;;  %2216 = vtanh.f32 %v1170_v12  ;;  %v1995_v46 = vpop.f32.mrf.mxu0  ;;  %1359 = vperm.xlu1 %2084, %v3122_v2   ;;  %1364 = vperm.xlu0 %2083, %v3123_v47   ;;  %v1685_v2 = vld [vmem:[%s3102_s4 + $0x8] sm:$0xff] }
 0x13f   : > { %v2946_v43 = vpop.eup %2192  ;;  %2218 = vtanh.f32 %v1168_v60  ;;  %v1107_v32 = vmul.f32 0.5, %v989_v50  ;;  %v1131_v0 = vadd.f32 1.0, %v2191_v17  ;;  %v1000_v51 = vadd.f32 %v1995_v46, %v3120_v37  ;;  %v1265_v17 = vld [vmem:[%s3100_s2 + $0xb0] sm:$0xff] }
 0x140   : > { %v2195_v58 = vpop.eup %2194  ;;  %2220 = vtanh.f32 %v1171_v42  ;;  %v991_v54 = vpop.f32.mrf.mxu0  ;;  %v1149_v48 = vmul.f32 0.5, %v1133_v49 }
 0x141   : > { %v2197_v19 = vpop.eup %2196  ;;  %v1134_v36 = vadd.f32 1.0, %v2195_v58  ;;  %2222 = vtanh.f32 %v1107_v32  ;;  %v992_v1 = vadd.f32 %v991_v54, %v3121_v3  ;;  %v1110_v45 = vmul.f32 0.5, %v1000_v51 }
 0x142   : > { %v2199_v6 = vpop.eup %2198  ;;  %2224 = vtanh.f32 %v1172_v18  ;;  %v1998_v44 = vpop.f32.mrf.mxu0  ;;  %v1147_v22 = vmul.f32 0.5, %v1131_v0  ;;  %v1197_v59 = vmul.f32 %v2911_v33, %v1149_v48  ;;  %1369 = vperm.xlu1 %2084, %v3126_v11   ;;  %1374 = vperm.xlu0 %2083, %v1264_v8   ;;  %v1177_v55 = vmul.f32 %v2197_v19, %v1081_v35 }
 0x143   : > { %v2956_v9 = vpop.eup %2200  ;;  %v1150_v62 = vmul.f32 0.5, %v1134_v36  ;;  %v1132_v21 = vadd.f32 1.0, %v2199_v6  ;;  %v1108_v63 = vmul.f32 0.5, %v992_v1  ;;  %v1013_v31 = vadd.f32 %v1998_v44, %v3124_v40  ;;  %v1684_v44 = vld [vmem:[%s3102_s4] sm:$0xff] }
 0x144   : > { %v2203_v28 = vpop.eup %2202  ;;  %2226 = vtanh.f32 %v1109_v30  ;;  %v1004_v26 = vpop.f32.mrf.mxu0  ;;  %v1195_v46 = vmul.f32 %v2916_v23, %v1147_v22  ;;  %v3128_v30 = vld [vmem:[#allocation12_spill] sm:$0xff]  ;;  %v1078_v6 = vmul.f32 0.5, %v2940_v4  ;;  %v1077_v4 = vmul.f32 0.5, %v2931_v24 }
 0x145   : > { %v2205_v7 = vpop.eup %2204  ;;  %v1148_v15 = vmul.f32 0.5, %v1132_v21  ;;  %v1137_v34 = vadd.f32 1.0, %v2203_v28  ;;  %2228 = vtanh.f32 %v1108_v63  ;;  %v1113_v12 = vmul.f32 0.5, %v1013_v31  ;;  %v1686_v24 = vld [vmem:[%s3102_s4 + $0x10] sm:$0xff] }
 0x146   : > { %v2207_v38 = vpop.eup %2206  ;;  %2230 = vtanh.f32 %v1110_v45  ;;  %v1005_v60 = vadd.f32 %v1004_v26, %v3125_v39  ;;  %v1999_v41 = vpop.f32.mrf.mxu0  ;;  %v1198_v61 = vmul.f32 %v2924_v13, %v1150_v62  ;;  %1379 = vperm.xlu1 %2084, %v1265_v17   ;;  %1384 = vperm.xlu0 %2083, %v1266_v29   ;;  %v1175_v48 = vmul.f32 %v2205_v7, %v2952_v5  ;;  %v1687_v39 = vld [vmem:[%s3102_s4 + $0x18] sm:$0xff] }
 0x147   : > { %v2209_v42 = vpop.eup %2208  ;;  %v1135_v16 = vadd.f32 1.0, %v2207_v38  ;;  %2232 = vtanh.f32 %v1113_v12  ;;  %v1016_v50 = vadd.f32 %v1999_v41, %v3127_v53  ;;  %v1196_v14 = vmul.f32 %v2937_v56, %v1148_v15 }
 0x148   : > { %v2211_v33 = vpop.eup %2210  ;;  %v1111_v18 = vmul.f32 0.5, %v1005_v60  ;;  %v1007_v13 = vpop.f32.mrf.mxu0  ;;  %v2973_v49 = vpack.c.bf16 %v1198_v61, %v1197_v59  ;;  %v1153_v32 = vmul.f32 0.5, %v1137_v34  ;;  %v1178_v54 = vmul.f32 %v2209_v42, %v1082_v27  ;;  %v1690_v60 = vld [vmem:[%s3102_s4 + $0x30] sm:$0xff] }
 0x149   : > { %v2213_v52 = vpop.eup %2212  ;;  %v1138_v58 = vadd.f32 1.0, %v2211_v33  ;;  %v1114_v0 = vmul.f32 0.5, %v1016_v50  ;;  %v1008_v37 = vadd.f32 %v1007_v13, %v3128_v30  ;;  %v1151_v19 = vmul.f32 0.5, %v1135_v16  ;;  %v1689_v16 = vld [vmem:[%s3102_s4 + $0x28] sm:$0xff] }
 0x14a   : > { %v2215_v51 = vpop.eup %2214  ;;  %2234 = vtanh.f32 %v1111_v18  ;;  %v2978_v35 = vpack.c.bf16 %v1196_v14, %v1195_v46  ;;  %v1176_v45 = vmul.f32 %v2213_v52, %v1080_v20  ;;  %v1201_v21 = vmul.f32 %v2946_v43, %v1153_v32  ;;  %v1753_v18 = vld [vmem:[%s3100_s2 + $0xc0] sm:$0x1] }
 0x14b   : > { %v2217_v36 = vpop.eup %2216  ;;  %v1154_v3 = vmul.f32 0.5, %v1138_v58  ;;  %v1136_v1 = vadd.f32 1.0, %v2215_v51  ;;  %2236 = vtanh.f32 %v1114_v0  ;;  %v1112_v23 = vmul.f32 0.5, %v1008_v37  ;;  %v1691_v0 = vld [vmem:[%s3102_s4 + $0x38] sm:$0xff] }
 0x14c   : > { %v2219_v56 = vpop.eup %2218  ;;  %2238 = vtanh.f32 %v1177_v55  ;;  %v1174_v5 = vmul.f32 %v2927_v57, %v1078_v6  ;;  %v3129_v31 = vmov 0   ;;  %v1199_v20 = vmul.f32 %v2956_v9, %v1151_v19  ;;  %v1688_v57 = vld [vmem:[%s3102_s4 + $0x20] sm:$0xff] }
 0x14d   : > { %v2221_v47 = vpop.eup %2220  ;;  %v1152_v62 = vmul.f32 0.5, %v1136_v1  ;;  %2240 = vtanh.f32 %v1112_v23  ;;  %v1202_v63 = vmul.f32 %v2217_v36, %v1154_v3  ;;  %2085 = vset.pattern.permute.xlu1 %v3129_v31  ;;  %2086 = vset.pattern.permute.xlu0 %v3129_v31  ;;  %v1173_v26 = vmul.f32 %v2907_v25, %v1077_v4  ;;  %v2120_v4 = vld [vmem:[%s3101_s3 + $0x40] sm:$0xff]   ;;  %v2122_v31 = vld [vmem:[%s3101_s3 + $0x50] sm:$0xff]  }
 0x14e   : > { %v2223_v40 = vpop.eup %2222  ;;  %2242 = vtanh.f32 %v1178_v54  ;;  %1694 = vperm.xlu1 %2085, %v1684_v44   ;;  %1699 = vperm.xlu0 %2086, %v1685_v2  }
 0x14f   : > { %v2225_v8 = vpop.eup %2224  ;;  %v1139_v28 = vadd.f32 1.0, %v2223_v40  ;;  %v2993_v27 = vpack.c.bf16 %v1202_v63, %v1201_v21  ;;  %v1200_v22 = vmul.f32 %v2219_v56, %v1152_v62  ;;  %2244 = vtanh.f32 %v1175_v48  ;;  %v2114_v62 = vld [vmem:[%s3101_s3 + $0x10] sm:$0xff]   ;;  %v2115_v21 = vld [vmem:[%s3101_s3 + $0x18] sm:$0xff]  }
 0x150   : > { %2246 = vtanh.f32 %v1176_v45  ;;  %v2118_v63 = vld [vmem:[%s3101_s3 + $0x30] sm:$0xff]   ;;  %v2119_v40 = vld [vmem:[%s3101_s3 + $0x38] sm:$0xff]  }
 0x151   : > { %v2227_v43 = vpop.eup %2226  ;;  %v3003_v7 = vpack.c.bf16 %v1200_v22, %v1199_v20  ;;  %2248 = vtanh.f32 %v1174_v5  ;;  %v1155_v34 = vmul.f32 0.5, %v1139_v28  ;;  %v2121_v5 = vld [vmem:[%s3101_s3 + $0x48] sm:$0xff]  }
 0x152   : > { %v2229_v15 = vpop.eup %2228  ;;  %1704 = vperm.xlu1 %2085, %v1686_v24   ;;  %1714 = vperm.xlu0 %2086, %v1688_v57   ;;  %2250 = vtanh.f32 %v1173_v26  ;;  %v1141_v14 = vadd.f32 1.0, %v2227_v43 }
 0x153   : > { %v2231_v9 = vpop.eup %2230  ;;  %v1140_v12 = vadd.f32 1.0, %v2229_v15  ;;  %v1203_v61 = vmul.f32 %v2221_v47, %v1155_v34  ;;  %v2113_v47 = vld [vmem:[%s3101_s3 + $0x8] sm:$0xff]  }
 0x154   : > { %v2233_v38 = vpop.eup %2232  ;;  %v1142_v50 = vadd.f32 1.0, %v2231_v9  ;;  %v1157_v3 = vmul.f32 0.5, %v1141_v14 }
 0x155   : > { %v1156_v25 = vmul.f32 0.5, %v1140_v12  ;;  %v1145_v41 = vadd.f32 1.0, %v2233_v38 }
 0x156   : > { %1709 = vperm.xlu1 %2085, %v1687_v39   ;;  %1724 = vperm.xlu0 %2086, %v1690_v60   ;;  %v1158_v37 = vmul.f32 0.5, %v1142_v50 }
 0x157   : > { %v2235_v59 = vpop.eup %2234  ;;  %v1204_v11 = vmul.f32 %v2225_v8, %v1156_v25  ;;  %v1161_v29 = vmul.f32 0.5, %v1145_v41  ;;  %v2123_v8 = vld [vmem:[%s3101_s3 + $0x58] sm:$0xff]  }
 0x158   : > { %v2237_v42 = vpop.eup %2236  ;;  %v1143_v55 = vadd.f32 1.0, %v2235_v59 }
 0x159   : > { %v2239_v53 = vpop.eup %2238  ;;  %v1146_v17 = vadd.f32 1.0, %v2237_v42  ;;  %v1239_v33 = vpack.c.bf16 %v1204_v11, %v1203_v61 }
 0x15a   : > { %v2241_v13 = vpop.eup %2240  ;;  %v1159_v52 = vmul.f32 0.5, %v1143_v55  ;;  %1719 = vperm.xlu1 %2085, %v1689_v16   ;;  %2087 = vset.pattern.permute.xlu0 %v2379_v10  ;;  %v1209_v54 = vmul.f32 %v2239_v53, %v1161_v29 }
 0x15b   : > { %v2243_v46 = vpop.eup %2242  ;;  %v1144_v32 = vadd.f32 1.0, %v2241_v13  ;;  %v1162_v58 = vmul.f32 0.5, %v1146_v17  ;;  %1756 = vperm.xlu0 %2087, %v1753_v18  }
 0x15c   : > { %v2245_v30 = vpop.eup %2244 }
 0x15d   : > { %v1160_v51 = vmul.f32 0.5, %v1144_v32  ;;  %v1210_v19 = vmul.f32 %v2243_v46, %v1162_v58  ;;  %v2247_v36 = vpop.eup %2246  ;;  %v1207_v23 = vmul.f32 %v2245_v30, %v1159_v52 }
 0x15e   : > { %1729 = vperm.xlu1 %2085, %v1691_v0   ;;  %v2249_v6 = vpop.eup %2248 }
 0x15f   : > { %v1242_v1 = vpack.c.bf16 %v1210_v19, %v1209_v54  ;;  %v1208_v56 = vmul.f32 %v2247_v36, %v1160_v51  ;;  %v1206_v10 = vmul.f32 %v2249_v6, %v1158_v37  ;;  %v2251_v45 = vpop.eup %2250 }
 0x160   : > { %v1205_v44 = vmul.f32 %v2251_v45, %v1157_v3 }
 0x161   : > { %2000 = vmatprep.subr.bf16.mxu1 %v1242_v1  ;;  %v1241_v48 = vpack.c.bf16 %v1208_v56, %v1207_v23 }
 0x162   : > { %2001 = vmatpush3.bf16.msra.mxu1 %v1242_v1  ;;  %v1240_v2 = vpack.c.bf16 %v1206_v10, %v1205_v44 }
 0x163   : > { %2002 = vmatprep.subr.bf16.mxu1 %v1241_v48 }
 0x166   : > { %2003 = vmatpush3.bf16.msra.mxu1 %v1241_v48 }
 0x167   : > { %2004 = vmatprep.subr.bf16.mxu1 %v1240_v2 }
 0x16a   : > { %2005 = vmatpush3.bf16.msra.mxu1 %v1240_v2 }
 0x16b   : > { %2006 = vmatprep.subr.bf16.mxu1 %v1239_v33 }
 0x16e   : > { %2007 = vmatpush3.bf16.msra.mxu1 %v1239_v33 }
 0x16f   : > { %2008 = vmatprep.subr.bf16.mxu1 %v2993_v27 }
 0x172   : > { %2009 = vmatpush3.bf16.msra.mxu1 %v2993_v27 }
 0x173   : > { %2010 = vmatprep.subr.bf16.mxu1 %v3003_v7 }
 0x176   : > { %2011 = vmatpush3.bf16.msra.mxu1 %v3003_v7 }
 0x177   : > { %2012 = vmatprep.subr.bf16.mxu1 %v2973_v49 }
 0x17a   : > { %2013 = vmatpush3.bf16.msra.mxu1 %v2973_v49  ;;  %v2116_v49 = vld [vmem:[%s3101_s3 + $0x20] sm:$0xff]  }
 0x17b   : > { %2014 = vmatprep.subr.bf16.mxu1 %v2978_v35 }
 0x17e   : > { %2015 = vmatpush3.bf16.msra.mxu1 %v2978_v35  ;;  %v2117_v35 = vld [vmem:[%s3101_s3 + $0x28] sm:$0xff]  }
 0x181   : > { %2017 = vmatmul.mubr.bf16.vlgmr.msra.gmra.mxu1 %v2113_v47 }
 0x182   : > { %2020 = vmatprep.mubr.bf16.mxu1 %v2114_v62 }
 0x189   : > { %2021 = vmatmul.mubr.bf16.gmra.mxu1 %v2115_v21 }
 0x18a   : > { %2024 = vmatprep.mubr.bf16.mxu1 %v2116_v49 }
 0x18c   : > { %v1275_v28 = vpop.permute.xlu1 %1274  ;;  %v1270_v27 = vpop.permute.xlu0 %1269 }
 0x190   : > { %v1280_v20 = vpop.permute.xlu1 %1279  ;;  %v1285_v22 = vpop.permute.xlu0 %1284 }
 0x191   : > { %2025 = vmatmul.mubr.bf16.gmra.mxu1 %v2117_v35 }
 0x192   : > { %2028 = vmatprep.mubr.bf16.mxu1 %v2118_v63 }
 0x194   : > { %v1290_v24 = vpop.permute.xlu1 %1289  ;;  %v1310_v57 = vpop.permute.xlu0 %1309 }
 0x198   : > { %v1315_v43 = vpop.permute.xlu1 %1314  ;;  %v1295_v26 = vpop.permute.xlu0 %1294 }
 0x199   : > { %2029 = vmatmul.mubr.bf16.gmra.mxu1 %v2119_v40 }
 0x19a   : > { %2032 = vmatprep.mubr.bf16.mxu1 %v2120_v4 }
 0x19c   : > { %v1320_v7 = vpop.permute.xlu1 %1319  ;;  %v1300_v9 = vpop.permute.xlu0 %1299 }
 0x1a0   : > { %v1325_v12 = vpop.permute.xlu1 %1324  ;;  %v1305_v60 = vpop.permute.xlu0 %1304 }
 0x1a1   : > { %2033 = vmatmul.mubr.bf16.gmra.mxu1 %v2121_v5 }
 0x1a2   : > { %2036 = vmatprep.mubr.bf16.mxu1 %v2122_v31 }
 0x1a4   : > { %v1330_v59 = vpop.permute.xlu1 %1329  ;;  %v1335_v53 = vpop.permute.xlu0 %1334 }
 0x1a8   : > { %v1350_v58 = vpop.permute.xlu0 %1349 }
 0x1a9   : > { %2037 = vmatmul.mubr.bf16.gmra.mxu1 %v2123_v8 }
 0x1b1   : > { %v1340_v33 = vpop.permute.xlu1 %1339 }
 0x1b5   : > { %v1355_v51 = vpop.permute.xlu1 %1354  ;;  %v1345_v48 = vpop.permute.xlu0 %1344 }
 0x1b9   : > { %v1360_v2 = vpop.permute.xlu1 %1359  ;;  %v1365_v40 = vpop.permute.xlu0 %1364 }
 0x241   : > { %v2018_v15 = vpop.f32.mrf.mxu1 }
 0x242   : > { %v1502_v25 = vadd.f32 %v2018_v15, %v1280_v20  ;;  %v1370_v20 = vpop.permute.xlu1 %1369 }
 0x243   : > { %v1493_v34 = vpop.f32.mrf.mxu1 }
 0x244   : > { %v1494_v11 = vadd.f32 %v1493_v34, %v1270_v27  ;;  %v1590_v42 = vmul.f32 0.5, %v1502_v25 }
 0x245   : > { %v2019_v38 = vpop.f32.mrf.mxu1 }
 0x246   : > { %v1505_v50 = vadd.f32 %v2019_v38, %v1285_v22  ;;  %v1588_v29 = vmul.f32 0.5, %v1494_v11  ;;  %2252 = vtanh.f32 %v1590_v42 }
 0x247   : > { %v1496_v39 = vpop.f32.mrf.mxu1 }
 0x248   : > { %v1497_v16 = vadd.f32 %v1496_v39, %v1275_v28  ;;  %v1591_v46 = vmul.f32 0.5, %v1505_v50  ;;  %2254 = vtanh.f32 %v1588_v29 }
 0x249   : > { %v2022_v41 = vpop.f32.mrf.mxu1 }
 0x24a   : > { %v1589_v13 = vmul.f32 0.5, %v1497_v16  ;;  %v1518_v54 = vadd.f32 %v2022_v41, %v1300_v9 }
 0x24b   : > { %v1509_v61 = vpop.f32.mrf.mxu1 }
 0x24c   : > { %v1510_v14 = vadd.f32 %v1509_v61, %v1290_v24  ;;  %2256 = vtanh.f32 %v1589_v13  ;;  %v1594_v10 = vmul.f32 0.5, %v1518_v54 }
 0x24d   : > { %v2023_v55 = vpop.f32.mrf.mxu1  ;;  %2258 = vtanh.f32 %v1591_v46 }
 0x24e   : > { %v1592_v19 = vmul.f32 0.5, %v1510_v14  ;;  %v1521_v3 = vadd.f32 %v2023_v55, %v1305_v60  ;;  %v1375_v60 = vpop.permute.xlu0 %1374 }
 0x24f   : > { %v1512_v17 = vpop.f32.mrf.mxu1 }
 0x250   : > { %v1513_v0 = vadd.f32 %v1512_v17, %v1295_v26  ;;  %v1595_v44 = vmul.f32 0.5, %v1521_v3 }
 0x251   : > { %v2026_v18 = vpop.f32.mrf.mxu1 }
 0x252   : > { %v1534_v32 = vadd.f32 %v2026_v18, %v1320_v7  ;;  %v1593_v23 = vmul.f32 0.5, %v1513_v0  ;;  %v1385_v54 = vpop.permute.xlu0 %1384 }
 0x253   : > { %v1525_v52 = vpop.f32.mrf.mxu1  ;;  %v2253_v21 = vpop.eup %2252 }
 0x254   : > { %v1526_v37 = vadd.f32 %v1525_v52, %v1310_v57  ;;  %2260 = vtanh.f32 %v1534_v32  ;;  %v1606_v4 = vadd.f32 1.0, %v2253_v21 }
 0x255   : > { %v2027_v30 = vpop.f32.mrf.mxu1  ;;  %v2255_v63 = vpop.eup %2254 }
 0x256   : > { %2262 = vtanh.f32 %v1526_v37  ;;  %v1537_v6 = vadd.f32 %v2027_v30, %v1325_v12  ;;  %v1604_v57 = vadd.f32 1.0, %v2255_v63  ;;  %v1614_v15 = vmul.f32 0.5, %v1606_v4 }
 0x257   : > { %v1528_v36 = vpop.f32.mrf.mxu1  ;;  %2264 = vtanh.f32 %v1592_v19 }
 0x258   : > { %v1529_v1 = vadd.f32 %v1528_v36, %v1315_v43  ;;  %v1612_v61 = vmul.f32 0.5, %v1604_v57 }
 0x259   : > { %v2030_v56 = vpop.f32.mrf.mxu1  ;;  %v2257_v27 = vpop.eup %2256 }
 0x25a   : > { %2266 = vtanh.f32 %v1529_v1  ;;  %v1550_v5 = vadd.f32 %v2030_v56, %v1340_v33  ;;  %v2259_v24 = vpop.eup %2258  ;;  %v1605_v34 = vadd.f32 1.0, %v2257_v27 }
 0x25b   : > { %v1541_v45 = vpop.f32.mrf.mxu1  ;;  %2268 = vtanh.f32 %v1593_v23  ;;  %v1607_v25 = vadd.f32 1.0, %v2259_v24 }
 0x25c   : > { %v1542_v47 = vadd.f32 %v1541_v45, %v1330_v59  ;;  %2270 = vtanh.f32 %v1537_v6  ;;  %v1613_v29 = vmul.f32 0.5, %v1605_v34 }
 0x25d   : > { %v2031_v62 = vpop.f32.mrf.mxu1  ;;  %2272 = vtanh.f32 %v1594_v10  ;;  %v1615_v14 = vmul.f32 0.5, %v1607_v25 }
 0x25e   : > { %2274 = vtanh.f32 %v1595_v44  ;;  %v1553_v8 = vadd.f32 %v2031_v62, %v1345_v48 }
 0x25f   : > { %v1544_v49 = vpop.f32.mrf.mxu1  ;;  %2276 = vtanh.f32 %v1542_v47 }
 0x260   : > { %v1545_v35 = vadd.f32 %v1544_v49, %v1335_v53  ;;  %v1380_v53 = vpop.permute.xlu1 %1379 }
 0x261   : > { %v2034_v31 = vpop.f32.mrf.mxu1  ;;  %v2261_v7 = vpop.eup %2260 }
 0x262   : > { %v1566_v28 = vadd.f32 %v2034_v31, %v1360_v2  ;;  %2278 = vtanh.f32 %v1545_v35  ;;  %v1662_v11 = vmul.f32 %v2261_v7, %v1614_v15 }
 0x263   : > { %v1557_v22 = vpop.f32.mrf.mxu1  ;;  %2280 = vtanh.f32 %v1550_v5  ;;  %v2263_v39 = vpop.eup %2262 }
 0x264   : > { %v1630_v43 = vmul.f32 0.5, %v1566_v28  ;;  %v1558_v26 = vadd.f32 %v1557_v22, %v1350_v58  ;;  %2282 = vtanh.f32 %v1553_v8  ;;  %v2265_v59 = vpop.eup %2264  ;;  %v1660_v33 = vmul.f32 %v2263_v39, %v1612_v61  ;;  %v1695_v31 = vpop.permute.xlu1 %1694 }
 0x265   : > { %v2035_v9 = vpop.f32.mrf.mxu1  ;;  %v1608_v52 = vadd.f32 1.0, %v2265_v59 }
 0x266   : > { %v1628_v12 = vmul.f32 0.5, %v1558_v26  ;;  %v1569_v38 = vadd.f32 %v2035_v9, %v1365_v40  ;;  %2284 = vtanh.f32 %v1630_v43 }
 0x267   : > { %v1560_v41 = vpop.f32.mrf.mxu1  ;;  %v2267_v16 = vpop.eup %2266  ;;  %v1616_v48 = vmul.f32 0.5, %v1608_v52 }
 0x268   : > { %v1631_v42 = vmul.f32 0.5, %v1569_v38  ;;  %v1561_v55 = vadd.f32 %v1560_v41, %v1355_v51  ;;  %2286 = vtanh.f32 %v1628_v12  ;;  %v2269_v17 = vpop.eup %2268  ;;  %v1661_v0 = vmul.f32 %v2267_v16, %v1613_v29  ;;  %v1705_v9 = vpop.permute.xlu1 %1704 }
 0x269   : > { %v2038_v50 = vpop.f32.mrf.mxu1  ;;  %v2271_v46 = vpop.eup %2270  ;;  %v1609_v19 = vadd.f32 1.0, %v2269_v17 }
 0x26a   : > { %v1629_v18 = vmul.f32 0.5, %v1561_v55  ;;  %v1582_v13 = vadd.f32 %v2038_v50, %v1380_v53  ;;  %2288 = vtanh.f32 %v1631_v42  ;;  %v2273_v58 = vpop.eup %2272  ;;  %v1663_v1 = vmul.f32 %v2271_v46, %v1615_v14 }
 0x26b   : > { %v1573_v32 = vpop.f32.mrf.mxu1  ;;  %2290 = vtanh.f32 %v1662_v11  ;;  %v2275_v51 = vpop.eup %2274  ;;  %v1610_v6 = vadd.f32 1.0, %v2273_v58  ;;  %v1617_v49 = vmul.f32 0.5, %v1609_v19 }
 0x26c   : > { %v1634_v30 = vmul.f32 0.5, %v1582_v13  ;;  %v1574_v37 = vadd.f32 %v1573_v32, %v1370_v20  ;;  %2292 = vtanh.f32 %v1629_v18  ;;  %v2277_v3 = vpop.eup %2276  ;;  %v1611_v47 = vadd.f32 1.0, %v2275_v51  ;;  %v1700_v11 = vpop.permute.xlu0 %1699 }
 0x26d   : > { %v2039_v36 = vpop.f32.mrf.mxu1  ;;  %2294 = vtanh.f32 %v1660_v33  ;;  %v1664_v62 = vmul.f32 %v2277_v3, %v1616_v48  ;;  %v1618_v40 = vmul.f32 0.5, %v1610_v6  ;;  %v1710_v33 = vpop.permute.xlu1 %1709 }
 0x26e   : > { %v1632_v23 = vmul.f32 0.5, %v1574_v37  ;;  %v1585_v56 = vadd.f32 %v2039_v36, %v1385_v54  ;;  %2296 = vtanh.f32 %v1634_v30  ;;  %v1619_v8 = vmul.f32 0.5, %v1611_v47 }
 0x26f   : > { %v1576_v10 = vpop.f32.mrf.mxu1  ;;  %2298 = vtanh.f32 %v1661_v0  ;;  %v2279_v2 = vpop.eup %2278 }
 0x270   : > { %v1635_v45 = vmul.f32 0.5, %v1585_v56  ;;  %v1577_v44 = vadd.f32 %v1576_v10, %v1375_v60  ;;  %2300 = vtanh.f32 %v1632_v23  ;;  %v2281_v21 = vpop.eup %2280  ;;  %v1665_v5 = vmul.f32 %v2279_v2, %v1617_v49  ;;  %v1715_v19 = vpop.permute.xlu0 %1714 }
 0x271   : > { %2302 = vtanh.f32 %v1663_v1  ;;  %v2283_v63 = vpop.eup %2282  ;;  %v1666_v28 = vmul.f32 %v2281_v21, %v1618_v40  ;;  %v1720_v6 = vpop.permute.xlu1 %1719 }
 0x272   : > { %v1633_v35 = vmul.f32 0.5, %v1577_v44  ;;  %2304 = vtanh.f32 %v1635_v45  ;;  %v1667_v20 = vmul.f32 %v2283_v63, %v1619_v8 }
 0x273   : > { %v2285_v4 = vpop.eup %2284 }
 0x274   : > { %2306 = vtanh.f32 %v1633_v35  ;;  %v1646_v24 = vadd.f32 1.0, %v2285_v4  ;;  %v1725_v49 = vpop.permute.xlu0 %1724 }
 0x275   : > { %2308 = vtanh.f32 %v1664_v62  ;;  %v2287_v27 = vpop.eup %2286  ;;  %v1730_v40 = vpop.permute.xlu1 %1729 }
 0x276   : > { %v1644_v22 = vadd.f32 1.0, %v2287_v27  ;;  %2310 = vtanh.f32 %v1665_v5  ;;  %v1654_v12 = vmul.f32 0.5, %v1646_v24 }
 0x277   : > { %v2289_v57 = vpop.eup %2288  ;;  %2312 = vtanh.f32 %v1666_v28 }
 0x278   : > { %v2291_v43 = vpop.eup %2290  ;;  %v1652_v26 = vmul.f32 0.5, %v1644_v22  ;;  %v1647_v7 = vadd.f32 1.0, %v2289_v57  ;;  %2314 = vtanh.f32 %v1667_v20  ;;  %v1757_v24 = vpop.permute.xlu0 %1756 }
 0x279   : > { %v2293_v15 = vpop.eup %2292  ;;  %v1678_v55 = vmul.f32 %v2291_v43, %v1654_v12 }
 0x27a   : > { %v2295_v34 = vpop.eup %2294  ;;  %v1645_v38 = vadd.f32 1.0, %v2293_v15  ;;  %v1655_v41 = vmul.f32 0.5, %v1647_v7 }
 0x27b   : > { %v2297_v39 = vpop.eup %2296  ;;  %v1676_v60 = vmul.f32 %v2295_v34, %v1652_v26  ;;  %v1734_v0 = vmul.f32 %v1705_v9, %v1678_v55 }
 0x27c   : > { %v2299_v25 = vpop.eup %2298  ;;  %v1653_v59 = vmul.f32 0.5, %v1645_v38  ;;  %v1650_v50 = vadd.f32 1.0, %v2297_v39 }
 0x27d   : > { %v2301_v61 = vpop.eup %2300  ;;  %v1732_v29 = vmul.f32 %v1695_v31, %v1676_v60 }
 0x27e   : > { %v2303_v42 = vpop.eup %2302  ;;  %v1677_v16 = vmul.f32 %v2299_v25, %v1653_v59  ;;  %v1648_v53 = vadd.f32 1.0, %v2301_v61  ;;  %v1658_v51 = vmul.f32 0.5, %v1650_v50 }
 0x27f   : > { %v2305_v17 = vpop.eup %2304  ;;  %v1679_v13 = vmul.f32 %v2303_v42, %v1655_v41 }
 0x280   : > { %v1733_v46 = vmul.f32 %v1700_v11, %v1677_v16  ;;  %v1651_v14 = vadd.f32 1.0, %v2305_v17  ;;  %v1656_v52 = vmul.f32 0.5, %v1648_v53 }
 0x281   : > { %v2307_v18 = vpop.eup %2306  ;;  %v1735_v3 = vmul.f32 %v1710_v33, %v1679_v13 }
 0x282   : > { %v2309_v32 = vpop.eup %2308  ;;  %v1649_v58 = vadd.f32 1.0, %v2307_v18  ;;  %v1740_v30 = vadd.f32 %v1733_v46, %v1732_v29  ;;  %v1659_v23 = vmul.f32 0.5, %v1651_v14 }
 0x283   : > { %v1680_v37 = vmul.f32 %v2309_v32, %v1656_v52  ;;  %v2311_v36 = vpop.eup %2310 }
 0x284   : > { %v1657_v54 = vmul.f32 0.5, %v1649_v58  ;;  %v1741_v1 = vadd.f32 %v1740_v30, %v1734_v0  ;;  %v2313_v56 = vpop.eup %2312 }
 0x285   : > { %v1736_v10 = vmul.f32 %v1715_v19, %v1680_v37  ;;  %v1682_v44 = vmul.f32 %v2313_v56, %v1658_v51  ;;  %v2315_v2 = vpop.eup %2314 }
 0x286   : > { %v1681_v48 = vmul.f32 %v2311_v36, %v1657_v54  ;;  %v1742_v45 = vadd.f32 %v1741_v1, %v1735_v3  ;;  %v1683_v62 = vmul.f32 %v2315_v2, %v1659_v23 }
 0x287   : > { %v1738_v35 = vmul.f32 %v1725_v49, %v1682_v44 }
 0x288   : > { %v1737_v47 = vmul.f32 %v1720_v6, %v1681_v48  ;;  %v1743_v21 = vadd.f32 %v1742_v45, %v1736_v10  ;;  %v1739_v4 = vmul.f32 %v1730_v40, %v1683_v62 }
 0x28a   : > { %v1744_v63 = vadd.f32 %v1743_v21, %v1737_v47 }
 0x28c   : > { %v1745_v5 = vadd.f32 %v1744_v63, %v1738_v35 }
 0x28e   : > { %v1746_v31 = vadd.f32 %v1745_v5, %v1739_v4 }
 0x290   : > { %v1747_v8 = vrot.slane %v1746_v31, 4 }
 0x292   : > { %v1748_v28 = vadd.f32 %v1747_v8, %v1746_v31 }
 0x294   : > { %v1749_v27 = vrot.slane %v1748_v28, 2 }
 0x296   : > { %v1750_v20 = vadd.f32 %v1749_v27, %v1748_v28 }
 0x298   : > { %v1751_v22 = vrot.slane %v1750_v20, 1 }
 0x29a   : > { %v1752_v57 = vadd.f32 %v1751_v22, %v1750_v20 }
 0x29c   : > { %v1759_v43 = vadd.f32 %v1757_v24, %v1752_v57 }
 0x29e   : > { %1760 = vst [vmem:[%s260_s6] sm:$0x1] %v1759_v43 }
 0x29f   : > { %2329 = shalt.err (!%p2326_p5)
}
 0x2a0   : > { %s2330_s16 = scalar_lea.hbm %s1772_s10, 16  ;;  %s2334_s23 = scalar_lea.hbm %s3103_s5, 64 }
 0x2a1   : > { %p2331_p7 = scmp.ne.s32.totalorder %s1772_s10, %s2330_s16  ;;  %p2335_p11 = scmp.lt.s32.totalorder %s1772_s10, %s3103_s5 }
 0x2a2   : > { %p2336_p12 = scmp.lt.s32.totalorder %s2334_s23, %s2330_s16 }
 0x2a3   : > { %p2332_p9 = pnand %p2331_p7, %p2449_p6 }
 0x2a4   : > { %p2337_p13 = por %p2336_p12, %p2335_p11 }
 0x2a5   : > { %p2333_p10 = pneg %p2332_p9 }
 0x2a7   : > { %p2338_p0 = pnand %p2337_p13, %p2333_p10 }
 0x2a9   : > { %2341 = shalt.err (!%p2338_p0)
}
 0x2aa   : > { %2040 = dma.vmem_to_hbm [thread:$0]  (%p2449_p6), %s1775_s7, 16, %s1772_s10, %s1762_s11  }
 0x2ab PF: > { %p2046_p1 = scmp.ge.s32.totalorder %s2376_s21, 2  ;;  %s1786_s30 = sand.u32 1, %s2364_s18  }
 0x2ac   : > { %s1787_s6 = scalar_lea.sflag [#allocation4], %s1786_s30 }
 0x2ad   : > { %p2043_p2 = pnand %p2046_p1, %p2453_p8 }
 0x2af   : > { %p2044_p3 = pneg %p2043_p2 }
 0x2b1   : > { %2359 = dma.done.wait (%p2044_p3), %s1787_s6, 16  }
 0x2b2   : > { %2361 = vsyncadd (%p2044_p3), %s1787_s6, 4294967280  ;;  %p15_p4 = scmp.ge.s32.totalorder %s2434_s24, 6   ;;  %s3130_s18 = smov %s2368_s19 }
 0x2b3   : > { %s3131_s19 = smov %s2372_s20  ;;  %s3132_s20 = smov %s2447_s27 }
 0x2b4   : > { %s3133_s21 = smov %s2434_s24  ;;  %17 = sbr.rel (!%p15_p4) target bundleno = 3 (0x3), region = 118 }
 0x2b9   :  { %1791 = vsyncpa [#allocation4], 1 }
 0x2ba   :  { %1793 = vsyncpa [#allocation4 + $0x1], 1 }

// kernel: tpu_custom_call.1
= control target key start
LH: loop header
LB: loop body
LE: loop exit
PB: predicated region body
PF: predicated region fallthrough
CT: control target
= control target key end

     0   :  { %10 = vsyncpa [#allocation4], 0  ;;  %s3098_s0 = inlined_call_operand.vmem [shape: f32[16,512], index: 0, kind: input, shape index: {}]   ;;  %s3099_s1 = inlined_call_operand.vmem [shape: bf16[384,16], index: 1, kind: input, shape index: {}]   ;;  %s3100_s2 = inlined_call_operand.vmem [shape: f32[384,2], index: 2, kind: input, shape index: {}]   ;;  %s3101_s3 = inlined_call_operand.vmem [shape: bf16[192,128], index: 3, kind: input, shape index: {}]   ;;  %s3102_s4 = inlined_call_operand.vmem [shape: f32[64,1], index: 4, kind: input, shape index: {}]   ;;  %s3103_s5 = inlined_call_operand.hbm [shape: f32[1,512], index: 5, kind: output, shape index: {}]  }
   0x1   :  { %12 = vsyncpa [#allocation4 + $0x1], 0  ;;  %s2411_s18 = smov 0   ;;  %s2413_s19 = smov 0  }
   0x2   :  { %s2415_s20 = smov 0   ;;  %s2417_s21 = smov 0  }
   0x3 LB: > { %s1834_s22 = sadd.s32 4294967295, %s2376_s21   ;;  %s1835_s23 = sadd.s32 4294967294, %s2376_s21   ;;  %s2376_s21 = sphi %s2417_s21, %s3133_s21   ;;  %s2372_s20 = sphi %s2415_s20, %s3132_s20   ;;  %s2368_s19 = sphi %s2413_s19, %s3131_s19   ;;  %s2364_s18 = sphi %s2411_s18, %s3130_s18  }
   0x4   : > { %s2434_s24 = sadd.s32 1, %s2376_s21   ;;  %s25_s25 = sadd.s32 1, %s2372_s20 }
   0x5   : > { %s22_s26 = ssub.s32 %s2376_s21, %s2434_s24  ;;  %p32_p0 = scmp.ne.s32.totalorder %s2372_s20, %s2368_s19 }
   0x6   : > { %p23_p1 = scmp.eq.s32.totalorder %s22_s26, 0  ;;  %p33_p2 = scmp.eq.s32.totalorder %s2376_s21, 0 }
   0x7   : > { %p146_p3 = scmp.eq.s32.totalorder %s1834_s22, 3  ;;  %p151_p4 = scmp.ne.s32.totalorder %s2368_s19, %s2364_s18 }
   0x8   : > { %s2447_s27 = scalar_select %p23_p1, %s2372_s20, %s25_s25  }
   0x9   : > { %p34_p5 = por %p33_p2, %p32_p0  ;;  %p2449_p6 = por %p146_p3, %p32_p0 }
   0xa   : > { %p152_p7 = scmp.eq.s32.totalorder %s1835_s23, 3  ;;  %p1837_p9 = scmp.ge.s32.totalorder %s2376_s21, 4 }
   0xc   : > { %p2453_p8 = por %p152_p7, %p151_p4  ;;  %180 = sbr.rel (%p1837_p9) target bundleno = 23 (0x17), region = 32 }
  0x11   : > { %183 = sbr.rel (!%p34_p5) target bundleno = 23 (0x17), region = 36  ;;  %s185_s30 = sand.u32 (%p34_p5), 1, %s2372_s20  }
  0x12   : > { %s1839_s6 = sshll.u32 (%p34_p5), %s2376_s21, 3  ;;  %s1838_s7 = sshll.u32 (%p34_p5), %s185_s30, 4 }
  0x13   : > { %s189_s10 = scalar_lea.vmem (%p34_p5), %s3098_s0, %s1839_s6  ;;  %s187_s11 = scalar_lea.vmem (%p34_p5), [#allocation2], %s1838_s7 }
  0x14   : > { %v220_v0 = vld [vmem:[%s189_s10] sm:$0xff] (%p34_p5) }
  0x15   : > { %v222_v1 = vld [vmem:[%s189_s10 + $0x20] sm:$0xff] (%p34_p5)  ;;  %221 = vst [vmem:[%s187_s11] sm:$0xff] (%p34_p5), %v220_v0 }
  0x16   : > { %223 = vst [vmem:[%s187_s11 + $0x8] sm:$0xff] %v222_v1 }
  0x17 PF: > { %p1840_p10 = scmp.ge.s32.totalorder %s2376_s21, 1  ;;  %p228_p11 = scmp.lt.s32.totalorder %s2376_s21, 5 }
  0x19   : > { %p229_p12 = pnand %p1840_p10, %p228_p11 }
  0x1b   : > { %232 = sbr.rel (%p229_p12) target bundleno = 683 (0x2ab), region = 74 }
  0x20   : > { %s2466_s12 = sand.u32 1, %s2368_s19   ;;  %v2088_v2 = vld [vmem:[%s3099_s1] sm:$0xff]   ;;  %vm721_vm0 = vcmask 130048   ;;  %v327_v3 = vld [vmem:[%s3100_s2 + $0x70] sm:$0xff]  ;;  %v3104_v7 = vmov 0   ;;  %v328_v9 = vld [vmem:[%s3100_s2 + $0x78] sm:$0xff] }
  0x21   : > { %s1841_s15 = sshll.u32 %s2466_s12, 4  ;;  %1952 = vmatprep.mubr.msk.bf16.mxu0 %vm721_vm0, %v2088_v2  ;;  %v325_v4 = vld [vmem:[%s3100_s2 + $0x60] sm:$0xff]  ;;  %2082 = vset.pattern.permute.xlu1 %v3104_v7  ;;  %v2089_v10 = vld [vmem:[%s3099_s1 + $0x8] sm:$0xff]   ;;  %v2090_v12 = vld [vmem:[%s3099_s1 + $0x10] sm:$0xff]   ;;  %s1902_s30 = sshll.u32 %s1834_s22, 4 }
  0x22   : > { %s237_s26 = scalar_lea.vmem [#allocation2], %s1841_s15  ;;  %2081 = vset.pattern.permute.xlu0 %v3104_v7  ;;  %423 = vperm.xlu1 %2082, %v325_v4   ;;  %v326_v11 = vld [vmem:[%s3100_s2 + $0x68] sm:$0xff]  ;;  %v343_v13 = vld [vmem:[%s3100_s2 + $0xf0] sm:$0xff]  ;;  %v344_v14 = vld [vmem:[%s3100_s2 + $0xf8] sm:$0xff]  ;;  %s260_s6 = scalar_lea.vmem [#allocation3], %s2466_s12 }
  0x23   : > { %v262_v5 = vld [vmem:[%s237_s26] sm:$0xff]  ;;  %v263_v6 = vld [vmem:[%s237_s26 + $0x8] sm:$0xff]  ;;  %433 = vperm.xlu0 %2081, %v327_v3   ;;  %s1774_s7 = sshll.u32 %s260_s6, 4  ;;  %s1772_s10 = scalar_lea.hbm %s3103_s5, %s1902_s30  ;;  %s1775_s7 = int_to_ptr.vmem [resolvable:$true] %s1774_s7 }
  0x24   : > { %v264_v8 = vpack.c.bf16 %v263_v6, %v262_v5  ;;  %v324_v15 = vld [vmem:[%s3100_s2 + $0x58] sm:$0xff]  ;;  %v323_v16 = vld [vmem:[%s3100_s2 + $0x50] sm:$0xff]  ;;  %v2092_v18 = vld [vmem:[%s3099_s1 + $0x20] sm:$0xff]   ;;  %s1762_s11 = scalar_lea.sflag [#allocation4], %s2466_s12  ;;  %s2316_s13 = scalar_lea.vmem %s1775_s7, 16 }
  0x25   : > { %v2091_v17 = vld [vmem:[%s3099_s1 + $0x18] sm:$0xff]   ;;  %v342_v19 = vld [vmem:[%s3100_s2 + $0xe8] sm:$0xff]  ;;  %v341_v20 = vld [vmem:[%s3100_s2 + $0xe0] sm:$0xff]  ;;  %p2317_p13 = scmp.ne.s32.totalorder %s1775_s7, %s2316_s13  ;;  %s2380_s14 = smov [#allocation3]  }
  0x26   : > { %1950 = vmatprep.subr.bf16.mxu0 %v264_v8  ;;  %428 = vperm.xlu1 %2082, %v326_v11   ;;  %v322_v21 = vld [vmem:[%s3100_s2 + $0x48] sm:$0xff]  ;;  %v321_v22 = vld [vmem:[%s3100_s2 + $0x40] sm:$0xff]  ;;  %v2094_v24 = vld [vmem:[%s3099_s1 + $0x30] sm:$0xff]   ;;  %s2320_s15 = sshll.u32 %s2380_s14, 4  ;;  %s2321_s15 = int_to_ptr.vmem [resolvable:$false] %s2320_s15 }
  0x27   : > { %1951 = vmatpush3.bf16.msra.mxu0 %v264_v8  ;;  %438 = vperm.xlu0 %2081, %v328_v9   ;;  %v2093_v23 = vld [vmem:[%s3099_s1 + $0x28] sm:$0xff]   ;;  %v340_v25 = vld [vmem:[%s3100_s2 + $0xd8] sm:$0xff]  ;;  %v339_v26 = vld [vmem:[%s3100_s2 + $0xd0] sm:$0xff]  ;;  %p2318_p0 = pnand %p2317_p13, %p2449_p6  ;;  %s2322_s22 = scalar_lea.vmem %s2321_s15, 32 }
  0x28   : > { %v320_v27 = vld [vmem:[%s3100_s2 + $0x38] sm:$0xff]  ;;  %v319_v28 = vld [vmem:[%s3100_s2 + $0x30] sm:$0xff]  ;;  %v2096_v30 = vld [vmem:[%s3099_s1 + $0x40] sm:$0xff]   ;;  %p2323_p2 = scmp.lt.s32.totalorder %s1775_s7, %s2321_s15  ;;  %p2324_p3 = scmp.lt.s32.totalorder %s2322_s22, %s2316_s13 }
  0x29   : > { %v2095_v29 = vld [vmem:[%s3099_s1 + $0x38] sm:$0xff]   ;;  %v359_v32 = vld [vmem:[%s3100_s2 + $0x170] sm:$0xff]  ;;  %v338_v33 = vld [vmem:[%s3100_s2 + $0xc8] sm:$0xff]  ;;  %p2319_p1 = pneg %p2318_p0 }
  0x2a   : > { %1953 = vmatmul.mubr.msk.bf16.vlgmr.msra.gmra.mxu0 %vm721_vm0, %v2089_v10  ;;  %518 = vperm.xlu1 %2082, %v344_v14   ;;  %v360_v31 = vld [vmem:[%s3100_s2 + $0x178] sm:$0xff]  ;;  %v337_v34 = vld [vmem:[%s3100_s2 + $0xc0] sm:$0xff]  ;;  %v2097_v35 = vld [vmem:[%s3099_s1 + $0x48] sm:$0xff]   ;;  %p2325_p4 = por %p2324_p3, %p2323_p2 }
  0x2b   : > { %1956 = vmatprep.mubr.msk.bf16.mxu0 %vm721_vm0, %v2090_v12  ;;  %513 = vperm.xlu0 %2081, %v343_v13   ;;  %v2098_v36 = vld [vmem:[%s3099_s1 + $0x50] sm:$0xff]   ;;  %v318_v37 = vld [vmem:[%s3100_s2 + $0x28] sm:$0xff]  ;;  %v317_v38 = vld [vmem:[%s3100_s2 + $0x20] sm:$0xff] }
  0x2c   : > { %v358_v39 = vld [vmem:[%s3100_s2 + $0x168] sm:$0xff]  ;;  %v357_v40 = vld [vmem:[%s3100_s2 + $0x160] sm:$0xff]  ;;  %v2099_v41 = vld [vmem:[%s3099_s1 + $0x58] sm:$0xff]   ;;  %p2326_p5 = pnand %p2325_p4, %p2319_p1 }
  0x2d   : > { %v2100_v42 = vld [vmem:[%s3099_s1 + $0x60] sm:$0xff]   ;;  %v336_v43 = vld [vmem:[%s3100_s2 + $0xb8] sm:$0xff]  ;;  %v335_v44 = vld [vmem:[%s3100_s2 + $0xb0] sm:$0xff] }
  0x2e   : > { %418 = vperm.xlu1 %2082, %v324_v15   ;;  %v2604_v45 = vld [vmem:[%s3100_s2 + $0x18] sm:$0xff]  ;;  %v2609_v46 = vld [vmem:[%s3100_s2 + $0x10] sm:$0xff]  ;;  %v2101_v47 = vld [vmem:[%s3099_s1 + $0x68] sm:$0xff]  }
  0x2f   : > { %413 = vperm.xlu0 %2081, %v323_v16   ;;  %v2102_v48 = vld [vmem:[%s3099_s1 + $0x70] sm:$0xff]   ;;  %v356_v49 = vld [vmem:[%s3100_s2 + $0x158] sm:$0xff]  ;;  %v334_v51 = vld [vmem:[%s3100_s2 + $0xa8] sm:$0xff] }
  0x30   : > { %v355_v50 = vld [vmem:[%s3100_s2 + $0x150] sm:$0xff]  ;;  %v2633_v52 = vld [vmem:[%s3100_s2 + $0xa0] sm:$0xff]  ;;  %v2103_v53 = vld [vmem:[%s3099_s1 + $0x78] sm:$0xff]  }
  0x31   : > { %3111 = vst [vmem:[#allocation6_spill] sm:$0xff] %v2633_v52  ;;  %v2104_v54 = vld [vmem:[%s3099_s1 + $0x80] sm:$0xff]   ;;  %v2645_v55 = vld [vmem:[%s3100_s2 + $0x8] sm:$0xff]  ;;  %v2106_v60 = vld [vmem:[%s3099_s1 + $0x90] sm:$0xff]  }
  0x32   : > { %1957 = vmatmul.mubr.msk.bf16.gmra.mxu0 %vm721_vm0, %v2091_v17  ;;  %508 = vperm.xlu1 %2082, %v342_v19   ;;  %v2650_v56 = vld [vmem:[%s3100_s2] sm:$0xff]  ;;  %v354_v57 = vld [vmem:[%s3100_s2 + $0x148] sm:$0xff]  ;;  %v2671_v61 = vld [vmem:[%s3100_s2 + $0x98] sm:$0xff] }
  0x33   : > { %1960 = vmatprep.mubr.msk.bf16.mxu0 %vm721_vm0, %v2092_v18  ;;  %503 = vperm.xlu0 %2081, %v341_v20   ;;  %v353_v58 = vld [vmem:[%s3100_s2 + $0x140] sm:$0xff]  ;;  %v2105_v59 = vld [vmem:[%s3099_s1 + $0x88] sm:$0xff]   ;;  %3112 = vst [vmem:[#allocation7_spill] sm:$0xff] %v2671_v61  ;;  %v2676_v62 = vld [vmem:[%s3100_s2 + $0x90] sm:$0xff] }
  0x34   : > { %3113 = vst [vmem:[#allocation8_spill] sm:$0xff] %v2676_v62  ;;  %v352_v63 = vld [vmem:[%s3100_s2 + $0x138] sm:$0xff]  ;;  %v351_v0 = vld [vmem:[%s3100_s2 + $0x130] sm:$0xff]  ;;  %v2108_v2 = vld [vmem:[%s3099_s1 + $0xa0] sm:$0xff]  }
  0x35   : > { %v2107_v1 = vld [vmem:[%s3099_s1 + $0x98] sm:$0xff]   ;;  %v2697_v3 = vld [vmem:[%s3100_s2 + $0x88] sm:$0xff]  ;;  %v2702_v4 = vld [vmem:[%s3100_s2 + $0x80] sm:$0xff] }
  0x36   : > { %408 = vperm.xlu1 %2082, %v322_v21   ;;  %v350_v5 = vld [vmem:[%s3100_s2 + $0x128] sm:$0xff]  ;;  %v349_v6 = vld [vmem:[%s3100_s2 + $0x120] sm:$0xff]  ;;  %v2110_v9 = vld [vmem:[%s3099_s1 + $0xb0] sm:$0xff]  }
  0x37   : > { %403 = vperm.xlu0 %2081, %v321_v22   ;;  %v2109_v8 = vld [vmem:[%s3099_s1 + $0xa8] sm:$0xff]   ;;  %v348_v10 = vld [vmem:[%s3100_s2 + $0x118] sm:$0xff]  ;;  %v347_v11 = vld [vmem:[%s3100_s2 + $0x110] sm:$0xff] }
  0x38   : > { %v346_v12 = vld [vmem:[%s3100_s2 + $0x108] sm:$0xff]  ;;  %v345_v13 = vld [vmem:[%s3100_s2 + $0x100] sm:$0xff]  ;;  %v2111_v14 = vld [vmem:[%s3099_s1 + $0xb8] sm:$0xff]  }
  0x3a   : > { %1961 = vmatmul.mubr.msk.bf16.gmra.mxu0 %vm721_vm0, %v2093_v23  ;;  %498 = vperm.xlu1 %2082, %v340_v25  }
  0x3b   : > { %1964 = vmatprep.mubr.msk.bf16.mxu0 %vm721_vm0, %v2094_v24  ;;  %493 = vperm.xlu0 %2081, %v339_v26  }
  0x3e   : > { %398 = vperm.xlu1 %2082, %v320_v27  }
  0x3f   : > { %393 = vperm.xlu0 %2081, %v319_v28  }
  0x42   : > { %1965 = vmatmul.mubr.msk.bf16.gmra.mxu0 %vm721_vm0, %v2095_v29  ;;  %598 = vperm.xlu1 %2082, %v360_v31  }
  0x43   : > { %1968 = vmatprep.mubr.msk.bf16.mxu0 %vm721_vm0, %v2096_v30  ;;  %593 = vperm.xlu0 %2081, %v359_v32  }
  0x46   : > { %488 = vperm.xlu1 %2082, %v338_v33  }
  0x47   : > { %483 = vperm.xlu0 %2081, %v337_v34  }
  0x4a   : > { %1969 = vmatmul.mubr.msk.bf16.gmra.mxu0 %vm721_vm0, %v2097_v35  ;;  %388 = vperm.xlu1 %2082, %v318_v37  }
  0x4b   : > { %1972 = vmatprep.mubr.msk.bf16.mxu0 %vm721_vm0, %v2098_v36  ;;  %383 = vperm.xlu0 %2081, %v317_v38  }
  0x4e   : > { %588 = vperm.xlu1 %2082, %v358_v39  }
  0x4f   : > { %583 = vperm.xlu0 %2081, %v357_v40  }
  0x52   : > { %1973 = vmatmul.mubr.msk.bf16.gmra.mxu0 %vm721_vm0, %v2099_v41  ;;  %478 = vperm.xlu1 %2082, %v336_v43  }
  0x53   : > { %1976 = vmatprep.mubr.msk.bf16.mxu0 %vm721_vm0, %v2100_v42  ;;  %473 = vperm.xlu0 %2081, %v335_v44  }
  0x56   : > { %378 = vperm.xlu1 %2082, %v2604_v45  }
  0x57   : > { %373 = vperm.xlu0 %2081, %v2609_v46  }
  0x5a   : > { %1977 = vmatmul.mubr.msk.bf16.gmra.mxu0 %vm721_vm0, %v2101_v47  ;;  %578 = vperm.xlu1 %2082, %v356_v49  }
  0x5b   : > { %1980 = vmatprep.mubr.msk.bf16.mxu0 %vm721_vm0, %v2102_v48  ;;  %573 = vperm.xlu0 %2081, %v355_v50  }
  0x5e   : > { %468 = vperm.xlu1 %2082, %v334_v51  }
  0x5f   : > { %463 = vperm.xlu0 %2081, %v2633_v52  }
  0x62   : > { %1981 = vmatmul.mubr.msk.bf16.gmra.mxu0 %vm721_vm0, %v2103_v53  ;;  %368 = vperm.xlu1 %2082, %v2645_v55  }
  0x63   : > { %1984 = vmatprep.mubr.msk.bf16.mxu0 %vm721_vm0, %v2104_v54  ;;  %363 = vperm.xlu0 %2081, %v2650_v56  }
  0x66   : > { %568 = vperm.xlu1 %2082, %v354_v57  }
  0x67   : > { %563 = vperm.xlu0 %2081, %v353_v58  }
  0x6a   : > { %1985 = vmatmul.mubr.msk.bf16.gmra.mxu0 %vm721_vm0, %v2105_v59  ;;  %458 = vperm.xlu1 %2082, %v2671_v61  }
  0x6b   : > { %1988 = vmatprep.mubr.msk.bf16.mxu0 %vm721_vm0, %v2106_v60  ;;  %453 = vperm.xlu0 %2081, %v2676_v62  }
  0x6e   : > { %558 = vperm.xlu1 %2082, %v352_v63  }
  0x6f   : > { %553 = vperm.xlu0 %2081, %v351_v0  }
  0x72   : > { %1989 = vmatmul.mubr.msk.bf16.gmra.mxu0 %vm721_vm0, %v2107_v1  ;;  %448 = vperm.xlu1 %2082, %v2697_v3  }
  0x73   : > { %1992 = vmatprep.mubr.msk.bf16.mxu0 %vm721_vm0, %v2108_v2  ;;  %443 = vperm.xlu0 %2081, %v2702_v4  }
  0x76   : > { %548 = vperm.xlu1 %2082, %v350_v5  }
  0x77   : > { %543 = vperm.xlu0 %2081, %v349_v6  }
  0x7a   : > { %1993 = vmatmul.mubr.msk.bf16.gmra.mxu0 %vm721_vm0, %v2109_v8  ;;  %538 = vperm.xlu1 %2082, %v348_v10  }
  0x7b   : > { %1996 = vmatprep.mubr.msk.bf16.mxu0 %vm721_vm0, %v2110_v9  ;;  %533 = vperm.xlu0 %2081, %v347_v11   ;;  %v2112_v9 = vld [vmem:[%s3101_s3] sm:$0xff]  }
  0x7c   : > { %2016 = vmatprep.mubr.bf16.mxu1 %v2112_v9 }
  0x7e   : > { %528 = vperm.xlu1 %2082, %v346_v12  }
  0x7f   : > { %523 = vperm.xlu0 %2081, %v345_v13  }
  0x82   : > { %1997 = vmatmul.mubr.msk.bf16.gmra.mxu0 %vm721_vm0, %v2111_v14 }
  0x9d   : > { %v2740_v16 = vpop.permute.xlu1 %423 }
  0x9e   : > { %v2738_v15 = vpop.permute.xlu0 %433 }
  0xa1   : > { %v2744_v18 = vpop.permute.xlu1 %428 }
  0xa2   : > { %v2742_v17 = vpop.permute.xlu0 %438 }
  0xa5   : > { %v2748_v20 = vpop.permute.xlu1 %518 }
  0xa6   : > { %v2746_v19 = vpop.permute.xlu0 %513 }
  0xa9   : > { %v2750_v21 = vpop.permute.xlu1 %418 }
  0xaa   : > { %v2752_v22 = vpop.permute.xlu0 %413 }
  0xad   : > { %v2756_v24 = vpop.permute.xlu1 %508 }
  0xae   : > { %v2754_v23 = vpop.permute.xlu0 %503 }
  0xb1   : > { %v2760_v26 = vpop.permute.xlu1 %408 }
  0xb2   : > { %v2758_v25 = vpop.permute.xlu0 %403 }
  0xb5   : > { %v2764_v28 = vpop.permute.xlu1 %498 }
  0xb6   : > { %v2762_v27 = vpop.permute.xlu0 %493 }
  0xb9   : > { %v2766_v30 = vpop.permute.xlu1 %398 }
  0xba   : > { %v394_v29 = vpop.permute.xlu0 %393 }
  0xbd   : > { %v2770_v32 = vpop.permute.xlu1 %598 }
  0xbe   : > { %v2768_v31 = vpop.permute.xlu0 %593  ;;  %3115 = vst [vmem:[#allocation10_spill] sm:$0xff] %v2770_v32 }
  0xbf   : > { %3114 = vst [vmem:[#allocation9_spill] sm:$0xff] %v2768_v31 }
  0xc1   : > { %v2774_v34 = vpop.permute.xlu1 %488 }
  0xc2   : > { %v2772_v33 = vpop.permute.xlu0 %483 }
  0xc5   : > { %v2776_v36 = vpop.permute.xlu1 %388 }
  0xc6   : > { %v384_v35 = vpop.permute.xlu0 %383 }
  0xc9   : > { %v2780_v38 = vpop.permute.xlu1 %588 }
  0xca   : > { %v2778_v37 = vpop.permute.xlu0 %583  ;;  %3117 = vst [vmem:[#allocation12_spill] sm:$0xff] %v2780_v38 }
  0xcb   : > { %3116 = vst [vmem:[#allocation11_spill] sm:$0xff] %v2778_v37 }
  0xcd   : > { %v2784_v40 = vpop.permute.xlu1 %478 }
  0xce   : > { %v2782_v39 = vpop.permute.xlu0 %473 }
  0xd1   : > { %v379_v42 = vpop.permute.xlu1 %378 }
  0xd2   : > { %v374_v41 = vpop.permute.xlu0 %373 }
  0xd5   : > { %v2788_v47 = vpop.permute.xlu1 %578 }
  0xd6   : > { %v2786_v43 = vpop.permute.xlu0 %573  ;;  %3118 = vst [vmem:[#allocation13_spill] sm:$0xff] %v2788_v47 }
  0xd9   : > { %v2792_v53 = vpop.permute.xlu1 %468 }
  0xda   : > { %v2790_v49 = vpop.permute.xlu0 %463 }
  0xdd   : > { %v369_v60 = vpop.permute.xlu1 %368 }
  0xde   : > { %v364_v57 = vpop.permute.xlu0 %363 }
  0xe1   : > { %v2796_v6 = vpop.permute.xlu1 %568 }
  0xe2   : > { %v2794_v0 = vpop.permute.xlu0 %563  ;;  %3119 = vst [vmem:[#allocation14_spill] sm:$0xff] %v2796_v6 }
  0xe5   : > { %v459_v52 = vpop.permute.xlu1 %458 }
  0xe6   : > { %v454_v11 = vpop.permute.xlu0 %453 }
  0xea   : > { %v1954_v44 = vpop.f32.mrf.mxu0 }
  0xeb   : > { %v837_v5 = vadd.f32 %v1954_v44, %v374_v41  ;;  %v2803_v44 = vpop.permute.xlu0 %553 }
  0xec   : > { %v828_v48 = vpop.f32.mrf.mxu0 }
  0xed   : > { %v829_v10 = vadd.f32 %v828_v48, %v364_v57  ;;  %v1021_v14 = vmul.f32 0.5, %v837_v5  ;;  %v2809_v57 = vpop.permute.xlu1 %558 }
  0xee   : > { %v1955_v50 = vpop.f32.mrf.mxu0 }
  0xef   : > { %v840_v13 = vadd.f32 %v1955_v50, %v379_v42  ;;  %v1019_v38 = vmul.f32 0.5, %v829_v10  ;;  %2124 = vtanh.f32 %v1021_v14  ;;  %v444_v50 = vpop.permute.xlu0 %443 }
  0xf0   : > { %v831_v51 = vpop.f32.mrf.mxu0 }
  0xf1   : > { %v832_v32 = vadd.f32 %v831_v51, %v369_v60  ;;  %v1022_v41 = vmul.f32 0.5, %v840_v13  ;;  %2126 = vtanh.f32 %v1019_v38 }
  0xf2   : > { %v1958_v54 = vpop.f32.mrf.mxu0 }
  0xf3   : > { %v1020_v61 = vmul.f32 0.5, %v832_v32  ;;  %2128 = vtanh.f32 %v1022_v41  ;;  %v853_v9 = vadd.f32 %v1958_v54, %v394_v29  ;;  %v449_v32 = vpop.permute.xlu1 %448 }
  0xf4   : > { %v844_v58 = vpop.f32.mrf.mxu0 }
  0xf5   : > { %2130 = vtanh.f32 %v1020_v61  ;;  %v845_v13 = vadd.f32 %v844_v58, %v384_v35  ;;  %v1025_v47 = vmul.f32 0.5, %v853_v9 }
  0xf6   : > { %v1959_v59 = vpop.f32.mrf.mxu0 }
  0xf7   : > { %v856_v38 = vadd.f32 %v1959_v59, %v2766_v30 }
  0xf8   : > { %v847_v63 = vpop.f32.mrf.mxu0 }
  0xf9   : > { %v848_v41 = vadd.f32 %v847_v63, %v2776_v36  ;;  %v1026_v54 = vmul.f32 0.5, %v856_v38 }
  0xfa   : > { %v1962_v1 = vpop.f32.mrf.mxu0 }
  0xfb   : > { %v869_v61 = vadd.f32 %v1962_v1, %v2752_v22  ;;  %v1024_v58 = vmul.f32 0.5, %v848_v41 }
  0xfc   : > { %v860_v2 = vpop.f32.mrf.mxu0 }
  0xfd   : > { %v861_v35 = vadd.f32 %v860_v2, %v2758_v25 }
  0xfe   : > { %v1963_v8 = vpop.f32.mrf.mxu0 }
  0xff   : > { %v1027_v1 = vmul.f32 0.5, %v861_v35 }
 0x100   : > { %v863_v12 = vpop.f32.mrf.mxu0 }
 0x102   : > { %v1966_v7 = vpop.f32.mrf.mxu0 }
 0x103   : > { %v885_v25 = vadd.f32 %v1966_v7, %v2738_v15 }
 0x104   : > { %v2801_v37 = vpop.f32.mrf.mxu0 }
 0x105   : > { %v1033_v41 = vmul.f32 0.5, %v885_v25  ;;  %v1252_v25 = vld [vmem:[%s3100_s2 + $0x48] sm:$0xff] }
 0x106   : > { %v2805_v31 = vpop.f32.mrf.mxu0 }
 0x108   : > { %v2807_v48 = vpop.f32.mrf.mxu0 }
 0x10a   : > { %v1970_v42 = vpop.f32.mrf.mxu0 }
 0x10b   : > { %v901_v51 = vadd.f32 %v1970_v42, %v454_v11  ;;  %v2125_v42 = vpop.eup %2124 }
 0x10c   : > { %v892_v60 = vpop.f32.mrf.mxu0  ;;  %v2127_v29 = vpop.eup %2126  ;;  %v1053_v59 = vadd.f32 1.0, %v2125_v42 }
 0x10d   : > { %v893_v5 = vadd.f32 %v892_v60, %v444_v50  ;;  %2132 = vtanh.f32 %v901_v51  ;;  %v1023_v50 = vmul.f32 0.5, %v845_v13  ;;  %v2129_v30 = vpop.eup %2128  ;;  %v1029_v51 = vmul.f32 0.5, %v869_v61 }
 0x10e   : > { %v1971_v10 = vpop.f32.mrf.mxu0  ;;  %v1051_v63 = vadd.f32 1.0, %v2127_v29  ;;  %v2131_v22 = vpop.eup %2130  ;;  %v1069_v2 = vmul.f32 0.5, %v1053_v59  ;;  %v880_v61 = vadd.f32 %v2807_v48, %v2744_v18 }
 0x10f   : > { %2134 = vtanh.f32 %v893_v5  ;;  %v904_v14 = vadd.f32 %v1971_v10, %v459_v52  ;;  %v1054_v5 = vadd.f32 1.0, %v2129_v30  ;;  %v2379_v10 = vmov 1   ;;  %v2846_v59 = vpop.permute.xlu1 %548 }
 0x110   : > { %v895_v62 = vpop.f32.mrf.mxu0  ;;  %2084 = vset.pattern.permute.xlu1 %v2379_v10  ;;  %2083 = vset.pattern.permute.xlu0 %v2379_v10  ;;  %v1052_v13 = vadd.f32 1.0, %v2131_v22  ;;  %v1032_v48 = vmul.f32 0.5, %v880_v61 }
 0x111   : > { %2136 = vtanh.f32 %v904_v14  ;;  %v896_v6 = vadd.f32 %v895_v62, %v449_v32  ;;  %v872_v62 = vadd.f32 %v1963_v8, %v2750_v21  ;;  %v1067_v8 = vmul.f32 0.5, %v1051_v63  ;;  %1274 = vperm.xlu1 %2084, %v2645_v55   ;;  %1269 = vperm.xlu0 %2083, %v2650_v56  }
 0x112   : > { %v1974_v11 = vpop.f32.mrf.mxu0  ;;  %v1070_v32 = vmul.f32 0.5, %v1054_v5  ;;  %v1068_v56 = vmul.f32 0.5, %v1052_v13  ;;  %v1249_v13 = vld [vmem:[%s3100_s2 + $0x30] sm:$0xff] }
 0x113   : > { %2138 = vtanh.f32 %v896_v6  ;;  %v864_v6 = vadd.f32 %v863_v12, %v2760_v26  ;;  %v1030_v14 = vmul.f32 0.5, %v872_v62  ;;  %v877_v26 = vadd.f32 %v2801_v37, %v2740_v16 }
 0x114   : > { %v908_v52 = vpop.f32.mrf.mxu0  ;;  %2140 = vtanh.f32 %v1025_v47  ;;  %v917_v47 = vadd.f32 %v1974_v11, %v2782_v39  ;;  %v888_v39 = vadd.f32 %v2805_v31, %v2742_v17  ;;  %v2832_v31 = vpop.permute.xlu0 %543 }
 0x115   : > { %2142 = vtanh.f32 %v1023_v50  ;;  %v1028_v15 = vmul.f32 0.5, %v864_v6  ;;  %v909_v55 = vadd.f32 %v908_v52, %v2790_v49  ;;  %v1031_v37 = vmul.f32 0.5, %v877_v26  ;;  %1279 = vperm.xlu1 %2084, %v2609_v46   ;;  %1284 = vperm.xlu0 %2083, %v2604_v45   ;;  %v1247_v49 = vld [vmem:[%s3100_s2 + $0x20] sm:$0xff] }
 0x116   : > { %v1975_v36 = vpop.f32.mrf.mxu0  ;;  %2144 = vtanh.f32 %v1026_v54  ;;  %v1034_v29 = vmul.f32 0.5, %v888_v39  ;;  %v1251_v46 = vld [vmem:[%s3100_s2 + $0x40] sm:$0xff] }
 0x117   : > { %2146 = vtanh.f32 %v1024_v58  ;;  %v920_v45 = vadd.f32 %v1975_v36, %v2784_v40 }
 0x118   : > { %v911_v60 = vpop.f32.mrf.mxu0  ;;  %2148 = vtanh.f32 %v1029_v51  ;;  %v534_v36 = vpop.permute.xlu0 %533 }
 0x119   : > { %2150 = vtanh.f32 %v1027_v1  ;;  %v912_v58 = vadd.f32 %v911_v60, %v2792_v53  ;;  %1289 = vperm.xlu1 %2084, %v1247_v49   ;;  %1309 = vperm.xlu0 %2083, %v1251_v46  }
 0x11a   : > { %v1978_v9 = vpop.f32.mrf.mxu0  ;;  %v2133_v21 = vpop.eup %2132  ;;  %2152 = vtanh.f32 %v917_v47 }
 0x11b   : > { %v1165_v12 = vmul.f32 %v2133_v21, %v1069_v2  ;;  %2154 = vtanh.f32 %v1030_v14  ;;  %v933_v51 = vadd.f32 %v1978_v9, %v2762_v27  ;;  %v1248_v2 = vld [vmem:[%s3100_s2 + $0x28] sm:$0xff]  ;;  %v539_v47 = vpop.permute.xlu1 %538 }
 0x11c   : > { %v2135_v7 = vpop.eup %2134  ;;  %v924_v38 = vpop.f32.mrf.mxu0  ;;  %2156 = vtanh.f32 %v1028_v15 }
 0x11d   : > { %v1163_v11 = vmul.f32 %v2135_v7, %v1067_v8  ;;  %2158 = vtanh.f32 %v1033_v41  ;;  %v925_v1 = vadd.f32 %v924_v38, %v2772_v33  ;;  %1314 = vperm.xlu1 %2084, %v1252_v25   ;;  %1294 = vperm.xlu0 %2083, %v1248_v2   ;;  %v524_v15 = vpop.permute.xlu0 %523 }
 0x11e   : > { %v2137_v42 = vpop.eup %2136  ;;  %v1979_v16 = vpop.f32.mrf.mxu0  ;;  %2160 = vtanh.f32 %v909_v55 }
 0x11f   : > { %v1166_v50 = vmul.f32 %v2137_v42, %v1070_v32  ;;  %2162 = vtanh.f32 %v1031_v37  ;;  %v936_v5 = vadd.f32 %v1979_v16, %v2764_v28  ;;  %v1253_v28 = vld [vmem:[%s3100_s2 + $0x50] sm:$0xff]  ;;  %v1254_v16 = vld [vmem:[%s3100_s2 + $0x58] sm:$0xff] }
 0x120   : > { %v2139_v17 = vpop.eup %2138  ;;  %v927_v18 = vpop.f32.mrf.mxu0  ;;  %2164 = vtanh.f32 %v1034_v29 }
 0x121   : > { %v2834_v54 = vmul.f32 %v2139_v17, %v1068_v56  ;;  %v2141_v52 = vpop.eup %2140  ;;  %2166 = vtanh.f32 %v1032_v48  ;;  %v928_v33 = vadd.f32 %v927_v18, %v2774_v34  ;;  %1319 = vperm.xlu1 %2084, %v1253_v28   ;;  %1299 = vperm.xlu0 %2083, %v1249_v13   ;;  %v1250_v56 = vld [vmem:[%s3100_s2 + $0x38] sm:$0xff]  ;;  %v529_v17 = vpop.permute.xlu1 %528 }
 0x122   : > { %v2843_v35 = vpop.f32.mrf.mxu0  ;;  %v2143_v30 = vpop.eup %2142  ;;  %2168 = vtanh.f32 %v920_v45  ;;  %v1057_v6 = vadd.f32 1.0, %v2141_v52 }
 0x123   : > { %v2851_v62 = vpop.eup %2144  ;;  %2170 = vtanh.f32 %v912_v58  ;;  %v1055_v7 = vadd.f32 1.0, %v2143_v30  ;;  %v949_v29 = vadd.f32 %v2843_v35, %v2746_v19  ;;  %v1255_v19 = vld [vmem:[%s3100_s2 + $0x60] sm:$0xff]  ;;  %v1256_v35 = vld [vmem:[%s3100_s2 + $0x68] sm:$0xff] }
 0x124   : > { %v2849_v63 = vpop.f32.mrf.mxu0  ;;  %v2853_v40 = vpop.eup %2146  ;;  %2172 = vtanh.f32 %v933_v51  ;;  %v1073_v26 = vmul.f32 0.5, %v1057_v6 }
 0x125   : > { %v2857_v53 = vpop.eup %2148  ;;  %2174 = vtanh.f32 %v1165_v12  ;;  %1324 = vperm.xlu1 %2084, %v1254_v16   ;;  %1304 = vperm.xlu0 %2083, %v1250_v56   ;;  %v941_v6 = vadd.f32 %v2849_v63, %v2754_v23 }
 0x126   : > { %v2855_v22 = vpop.f32.mrf.mxu0  ;;  %v2862_v27 = vpop.eup %2150  ;;  %2176 = vtanh.f32 %v1163_v11 }
 0x127   : > { %v2153_v21 = vpop.eup %2152  ;;  %2178 = vtanh.f32 %v925_v1  ;;  %v1058_v1 = vadd.f32 1.0, %v2851_v62  ;;  %v952_v62 = vadd.f32 %v2855_v22, %v2748_v20 }
 0x128   : > { %v2860_v60 = vpop.f32.mrf.mxu0  ;;  %v2878_v14 = vpop.eup %2154  ;;  %2180 = vtanh.f32 %v1166_v50  ;;  %v1169_v41 = vmul.f32 %v2153_v21, %v1073_v26  ;;  %v1071_v50 = vmul.f32 0.5, %v1055_v7 }
 0x129   : > { %v2157_v39 = vpop.eup %2156  ;;  %2182 = vtanh.f32 %v936_v5  ;;  %1329 = vperm.xlu1 %2084, %v1255_v19   ;;  %1334 = vperm.xlu0 %2083, %v1256_v35   ;;  %v1074_v28 = vmul.f32 0.5, %v1058_v1  ;;  %v944_v20 = vadd.f32 %v2860_v60, %v2756_v24  ;;  %v2931_v24 = vadd.f32 1.0, %v2857_v53 }
 0x12a   : > { %v1986_v9 = vpop.f32.mrf.mxu0  ;;  %v2880_v32 = vpop.eup %2158  ;;  %2184 = vtanh.f32 %v928_v33 }
 0x12b   : > { %v965_v8 = vadd.f32 %v1986_v9, %v534_v36  ;;  %v2161_v11 = vpop.eup %2160  ;;  %v1059_v9 = vadd.f32 1.0, %v2862_v27  ;;  %v1060_v27 = vadd.f32 1.0, %v2157_v39  ;;  %v1065_v53 = vadd.f32 1.0, %v2880_v32 }
 0x12c   : > { %v956_v34 = vpop.f32.mrf.mxu0  ;;  %v2888_v37 = vpop.eup %2162  ;;  %v1167_v52 = vmul.f32 %v2161_v11, %v1071_v50 }
 0x12d   : > { %v1101_v12 = vmul.f32 0.5, %v965_v8  ;;  %v957_v38 = vadd.f32 %v956_v34, %v524_v15  ;;  %v2893_v48 = vpop.eup %2164  ;;  %v1075_v34 = vmul.f32 0.5, %v1059_v9  ;;  %1349 = vperm.xlu0 %2083, %v2702_v4   ;;  %v1076_v11 = vmul.f32 0.5, %v1060_v27 }
 0x12e   : > { %v1987_v61 = vpop.f32.mrf.mxu0  ;;  %v2895_v45 = vpop.eup %2166  ;;  %v2940_v4 = vadd.f32 1.0, %v2878_v14  ;;  %v1066_v14 = vadd.f32 1.0, %v2893_v48  ;;  %v1081_v35 = vmul.f32 0.5, %v1065_v53  ;;  %v3127_v53 = vld [vmem:[#allocation10_spill] sm:$0xff] }
 0x12f   : > { %2186 = vtanh.f32 %v1101_v12  ;;  %v1099_v42 = vmul.f32 0.5, %v957_v38  ;;  %v968_v55 = vadd.f32 %v1987_v61, %v539_v47  ;;  %v2169_v30 = vpop.eup %2168 }
 0x130   : > { %2188 = vtanh.f32 %v2834_v54  ;;  %v959_v18 = vpop.f32.mrf.mxu0  ;;  %v2171_v36 = vpop.eup %2170  ;;  %v1170_v12 = vmul.f32 %v2169_v30, %v1074_v28  ;;  %v1082_v27 = vmul.f32 0.5, %v1066_v14 }
 0x131   : > { %2190 = vtanh.f32 %v1099_v42  ;;  %v1102_v49 = vmul.f32 0.5, %v968_v55  ;;  %v960_v46 = vadd.f32 %v959_v18, %v529_v17  ;;  %v2907_v25 = vpop.eup %2172 }
 0x132   : > { %2192 = vtanh.f32 %v1169_v41  ;;  %v1990_v58 = vpop.f32.mrf.mxu0  ;;  %v2911_v33 = vpop.eup %2174 }
 0x133   : > { %2194 = vtanh.f32 %v1102_v49  ;;  %v1100_v51 = vmul.f32 0.5, %v960_v46  ;;  %v981_v54 = vadd.f32 %v1990_v58, %v2803_v44  ;;  %v1056_v44 = vadd.f32 1.0, %v2853_v40  ;;  %v2916_v23 = vpop.eup %2176 }
 0x134   : > { %2196 = vtanh.f32 %v949_v29  ;;  %v972_v5 = vpop.f32.mrf.mxu0  ;;  %v2179_v8 = vpop.eup %2178  ;;  %v1063_v29 = vadd.f32 1.0, %v2888_v37  ;;  %v3120_v37 = vld [vmem:[#allocation13_spill] sm:$0xff] }
 0x135   : > { %2198 = vtanh.f32 %v1100_v51  ;;  %v1105_v2 = vmul.f32 0.5, %v981_v54  ;;  %v973_v47 = vadd.f32 %v972_v5, %v2832_v31  ;;  %v1257_v31 = vld [vmem:[%s3100_s2 + $0x70] sm:$0xff]  ;;  %v2924_v13 = vpop.eup %2180  ;;  %v1072_v26 = vmul.f32 0.5, %v1056_v44 }
 0x136   : > { %2200 = vtanh.f32 %v1167_v52  ;;  %v1991_v21 = vpop.f32.mrf.mxu0  ;;  %1339 = vperm.xlu1 %2084, %v1257_v31   ;;  %v1171_v42 = vmul.f32 %v2179_v8, %v1075_v34  ;;  %v1064_v52 = vadd.f32 1.0, %v2895_v45  ;;  %v2952_v5 = vmul.f32 0.5, %v1063_v29  ;;  %v1264_v8 = vld [vmem:[%s3100_s2 + $0xa8] sm:$0xff]  ;;  %v1266_v29 = vld [vmem:[%s3100_s2 + $0xb8] sm:$0xff] }
 0x137   : > { %2202 = vtanh.f32 %v1105_v2  ;;  %v1103_v63 = vmul.f32 0.5, %v973_v47  ;;  %v984_v40 = vadd.f32 %v1991_v21, %v2809_v57  ;;  %v2927_v57 = vpop.eup %2182  ;;  %v1168_v60 = vmul.f32 %v2171_v36, %v1072_v26  ;;  %v3122_v2 = vld [vmem:[#allocation8_spill] sm:$0xff]  ;;  %v3123_v47 = vld [vmem:[#allocation7_spill] sm:$0xff] }
 0x138   : > { %2204 = vtanh.f32 %v941_v6  ;;  %v975_v22 = vpop.f32.mrf.mxu0  ;;  %v2185_v39 = vpop.eup %2184 }
 0x139   : > { %2206 = vtanh.f32 %v1103_v63  ;;  %v1106_v7 = vmul.f32 0.5, %v984_v40  ;;  %v976_v15 = vadd.f32 %v975_v22, %v2846_v59  ;;  %v1258_v59 = vld [vmem:[%s3100_s2 + $0x78] sm:$0xff]  ;;  %v1172_v18 = vmul.f32 %v2185_v39, %v1076_v11  ;;  %v3125_v39 = vld [vmem:[#allocation11_spill] sm:$0xff]  ;;  %v3126_v11 = vld [vmem:[#allocation6_spill] sm:$0xff] }
 0x13a   : > { %2208 = vtanh.f32 %v952_v62  ;;  %v1994_v38 = vpop.f32.mrf.mxu0  ;;  %1354 = vperm.xlu1 %2084, %v2697_v3   ;;  %1344 = vperm.xlu0 %2083, %v1258_v59   ;;  %v3121_v3 = vld [vmem:[#allocation14_spill] sm:$0xff]  ;;  %v3124_v40 = vld [vmem:[#allocation9_spill] sm:$0xff] }
 0x13b   : > { %2210 = vtanh.f32 %v1106_v7  ;;  %v1104_v41 = vmul.f32 0.5, %v976_v15  ;;  %v997_v55 = vadd.f32 %v1994_v38, %v2786_v43 }
 0x13c   : > { %v2187_v61 = vpop.eup %2186  ;;  %2212 = vtanh.f32 %v944_v20  ;;  %v988_v16 = vpop.f32.mrf.mxu0  ;;  %v1080_v20 = vmul.f32 0.5, %v1064_v52 }
 0x13d   : > { %v2937_v56 = vpop.eup %2188  ;;  %2214 = vtanh.f32 %v1104_v41  ;;  %v989_v50 = vadd.f32 %v988_v16, %v2794_v0  ;;  %v1133_v49 = vadd.f32 1.0, %v2187_v61  ;;  %v1109_v30 = vmul.f32 0.5, %v997_v55 }
 0x13e   : > { %v2191_v17 = vpop.eup %2190  ;;  %2216 = vtanh.f32 %v1170_v12  ;;  %v1995_v46 = vpop.f32.mrf.mxu0  ;;  %1359 = vperm.xlu1 %2084, %v3122_v2   ;;  %1364 = vperm.xlu0 %2083, %v3123_v47   ;;  %v1685_v2 = vld [vmem:[%s3102_s4 + $0x8] sm:$0xff] }
 0x13f   : > { %v2946_v43 = vpop.eup %2192  ;;  %2218 = vtanh.f32 %v1168_v60  ;;  %v1107_v32 = vmul.f32 0.5, %v989_v50  ;;  %v1131_v0 = vadd.f32 1.0, %v2191_v17  ;;  %v1000_v51 = vadd.f32 %v1995_v46, %v3120_v37  ;;  %v1265_v17 = vld [vmem:[%s3100_s2 + $0xb0] sm:$0xff] }
 0x140   : > { %v2195_v58 = vpop.eup %2194  ;;  %2220 = vtanh.f32 %v1171_v42  ;;  %v991_v54 = vpop.f32.mrf.mxu0  ;;  %v1149_v48 = vmul.f32 0.5, %v1133_v49 }
 0x141   : > { %v2197_v19 = vpop.eup %2196  ;;  %v1134_v36 = vadd.f32 1.0, %v2195_v58  ;;  %2222 = vtanh.f32 %v1107_v32  ;;  %v992_v1 = vadd.f32 %v991_v54, %v3121_v3  ;;  %v1110_v45 = vmul.f32 0.5, %v1000_v51 }
 0x142   : > { %v2199_v6 = vpop.eup %2198  ;;  %2224 = vtanh.f32 %v1172_v18  ;;  %v1998_v44 = vpop.f32.mrf.mxu0  ;;  %v1147_v22 = vmul.f32 0.5, %v1131_v0  ;;  %v1197_v59 = vmul.f32 %v2911_v33, %v1149_v48  ;;  %1369 = vperm.xlu1 %2084, %v3126_v11   ;;  %1374 = vperm.xlu0 %2083, %v1264_v8   ;;  %v1177_v55 = vmul.f32 %v2197_v19, %v1081_v35 }
 0x143   : > { %v2956_v9 = vpop.eup %2200  ;;  %v1150_v62 = vmul.f32 0.5, %v1134_v36  ;;  %v1132_v21 = vadd.f32 1.0, %v2199_v6  ;;  %v1108_v63 = vmul.f32 0.5, %v992_v1  ;;  %v1013_v31 = vadd.f32 %v1998_v44, %v3124_v40  ;;  %v1684_v44 = vld [vmem:[%s3102_s4] sm:$0xff] }
 0x144   : > { %v2203_v28 = vpop.eup %2202  ;;  %2226 = vtanh.f32 %v1109_v30  ;;  %v1004_v26 = vpop.f32.mrf.mxu0  ;;  %v1195_v46 = vmul.f32 %v2916_v23, %v1147_v22  ;;  %v3128_v30 = vld [vmem:[#allocation12_spill] sm:$0xff]  ;;  %v1078_v6 = vmul.f32 0.5, %v2940_v4  ;;  %v1077_v4 = vmul.f32 0.5, %v2931_v24 }
 0x145   : > { %v2205_v7 = vpop.eup %2204  ;;  %v1148_v15 = vmul.f32 0.5, %v1132_v21  ;;  %v1137_v34 = vadd.f32 1.0, %v2203_v28  ;;  %2228 = vtanh.f32 %v1108_v63  ;;  %v1113_v12 = vmul.f32 0.5, %v1013_v31  ;;  %v1686_v24 = vld [vmem:[%s3102_s4 + $0x10] sm:$0xff] }
 0x146   : > { %v2207_v38 = vpop.eup %2206  ;;  %2230 = vtanh.f32 %v1110_v45  ;;  %v1005_v60 = vadd.f32 %v1004_v26, %v3125_v39  ;;  %v1999_v41 = vpop.f32.mrf.mxu0  ;;  %v1198_v61 = vmul.f32 %v2924_v13, %v1150_v62  ;;  %1379 = vperm.xlu1 %2084, %v1265_v17   ;;  %1384 = vperm.xlu0 %2083, %v1266_v29   ;;  %v1175_v48 = vmul.f32 %v2205_v7, %v2952_v5  ;;  %v1687_v39 = vld [vmem:[%s3102_s4 + $0x18] sm:$0xff] }
 0x147   : > { %v2209_v42 = vpop.eup %2208  ;;  %v1135_v16 = vadd.f32 1.0, %v2207_v38  ;;  %2232 = vtanh.f32 %v1113_v12  ;;  %v1016_v50 = vadd.f32 %v1999_v41, %v3127_v53  ;;  %v1196_v14 = vmul.f32 %v2937_v56, %v1148_v15 }
 0x148   : > { %v2211_v33 = vpop.eup %2210  ;;  %v1111_v18 = vmul.f32 0.5, %v1005_v60  ;;  %v1007_v13 = vpop.f32.mrf.mxu0  ;;  %v2973_v49 = vpack.c.bf16 %v1198_v61, %v1197_v59  ;;  %v1153_v32 = vmul.f32 0.5, %v1137_v34  ;;  %v1178_v54 = vmul.f32 %v2209_v42, %v1082_v27  ;;  %v1690_v60 = vld [vmem:[%s3102_s4 + $0x30] sm:$0xff] }
 0x149   : > { %v2213_v52 = vpop.eup %2212  ;;  %v1138_v58 = vadd.f32 1.0, %v2211_v33  ;;  %v1114_v0 = vmul.f32 0.5, %v1016_v50  ;;  %v1008_v37 = vadd.f32 %v1007_v13, %v3128_v30  ;;  %v1151_v19 = vmul.f32 0.5, %v1135_v16  ;;  %v1689_v16 = vld [vmem:[%s3102_s4 + $0x28] sm:$0xff] }
 0x14a   : > { %v2215_v51 = vpop.eup %2214  ;;  %2234 = vtanh.f32 %v1111_v18  ;;  %v2978_v35 = vpack.c.bf16 %v1196_v14, %v1195_v46  ;;  %v1176_v45 = vmul.f32 %v2213_v52, %v1080_v20  ;;  %v1201_v21 = vmul.f32 %v2946_v43, %v1153_v32  ;;  %v1753_v18 = vld [vmem:[%s3100_s2 + $0xc0] sm:$0x1] }
 0x14b   : > { %v2217_v36 = vpop.eup %2216  ;;  %v1154_v3 = vmul.f32 0.5, %v1138_v58  ;;  %v1136_v1 = vadd.f32 1.0, %v2215_v51  ;;  %2236 = vtanh.f32 %v1114_v0  ;;  %v1112_v23 = vmul.f32 0.5, %v1008_v37  ;;  %v1691_v0 = vld [vmem:[%s3102_s4 + $0x38] sm:$0xff] }
 0x14c   : > { %v2219_v56 = vpop.eup %2218  ;;  %2238 = vtanh.f32 %v1177_v55  ;;  %v1174_v5 = vmul.f32 %v2927_v57, %v1078_v6  ;;  %v3129_v31 = vmov 0   ;;  %v1199_v20 = vmul.f32 %v2956_v9, %v1151_v19  ;;  %v1688_v57 = vld [vmem:[%s3102_s4 + $0x20] sm:$0xff] }
 0x14d   : > { %v2221_v47 = vpop.eup %2220  ;;  %v1152_v62 = vmul.f32 0.5, %v1136_v1  ;;  %2240 = vtanh.f32 %v1112_v23  ;;  %v1202_v63 = vmul.f32 %v2217_v36, %v1154_v3  ;;  %2085 = vset.pattern.permute.xlu1 %v3129_v31  ;;  %2086 = vset.pattern.permute.xlu0 %v3129_v31  ;;  %v1173_v26 = vmul.f32 %v2907_v25, %v1077_v4  ;;  %v2120_v4 = vld [vmem:[%s3101_s3 + $0x40] sm:$0xff]   ;;  %v2122_v31 = vld [vmem:[%s3101_s3 + $0x50] sm:$0xff]  }
 0x14e   : > { %v2223_v40 = vpop.eup %2222  ;;  %2242 = vtanh.f32 %v1178_v54  ;;  %1694 = vperm.xlu1 %2085, %v1684_v44   ;;  %1699 = vperm.xlu0 %2086, %v1685_v2  }
 0x14f   : > { %v2225_v8 = vpop.eup %2224  ;;  %v1139_v28 = vadd.f32 1.0, %v2223_v40  ;;  %v2993_v27 = vpack.c.bf16 %v1202_v63, %v1201_v21  ;;  %v1200_v22 = vmul.f32 %v2219_v56, %v1152_v62  ;;  %2244 = vtanh.f32 %v1175_v48  ;;  %v2114_v62 = vld [vmem:[%s3101_s3 + $0x10] sm:$0xff]   ;;  %v2115_v21 = vld [vmem:[%s3101_s3 + $0x18] sm:$0xff]  }
 0x150   : > { %2246 = vtanh.f32 %v1176_v45  ;;  %v2118_v63 = vld [vmem:[%s3101_s3 + $0x30] sm:$0xff]   ;;  %v2119_v40 = vld [vmem:[%s3101_s3 + $0x38] sm:$0xff]  }
 0x151   : > { %v2227_v43 = vpop.eup %2226  ;;  %v3003_v7 = vpack.c.bf16 %v1200_v22, %v1199_v20  ;;  %2248 = vtanh.f32 %v1174_v5  ;;  %v1155_v34 = vmul.f32 0.5, %v1139_v28  ;;  %v2121_v5 = vld [vmem:[%s3101_s3 + $0x48] sm:$0xff]  }
 0x152   : > { %v2229_v15 = vpop.eup %2228  ;;  %1704 = vperm.xlu1 %2085, %v1686_v24   ;;  %1714 = vperm.xlu0 %2086, %v1688_v57   ;;  %2250 = vtanh.f32 %v1173_v26  ;;  %v1141_v14 = vadd.f32 1.0, %v2227_v43 }
 0x153   : > { %v2231_v9 = vpop.eup %2230  ;;  %v1140_v12 = vadd.f32 1.0, %v2229_v15  ;;  %v1203_v61 = vmul.f32 %v2221_v47, %v1155_v34  ;;  %v2113_v47 = vld [vmem:[%s3101_s3 + $0x8] sm:$0xff]  }
 0x154   : > { %v2233_v38 = vpop.eup %2232  ;;  %v1142_v50 = vadd.f32 1.0, %v2231_v9  ;;  %v1157_v3 = vmul.f32 0.5, %v1141_v14 }
 0x155   : > { %v1156_v25 = vmul.f32 0.5, %v1140_v12  ;;  %v1145_v41 = vadd.f32 1.0, %v2233_v38 }
 0x156   : > { %1709 = vperm.xlu1 %2085, %v1687_v39   ;;  %1724 = vperm.xlu0 %2086, %v1690_v60   ;;  %v1158_v37 = vmul.f32 0.5, %v1142_v50 }
 0x157   : > { %v2235_v59 = vpop.eup %2234  ;;  %v1204_v11 = vmul.f32 %v2225_v8, %v1156_v25  ;;  %v1161_v29 = vmul.f32 0.5, %v1145_v41  ;;  %v2123_v8 = vld [vmem:[%s3101_s3 + $0x58] sm:$0xff]  }
 0x158   : > { %v2237_v42 = vpop.eup %2236  ;;  %v1143_v55 = vadd.f32 1.0, %v2235_v59 }
 0x159   : > { %v2239_v53 = vpop.eup %2238  ;;  %v1146_v17 = vadd.f32 1.0, %v2237_v42  ;;  %v1239_v33 = vpack.c.bf16 %v1204_v11, %v1203_v61 }
 0x15a   : > { %v2241_v13 = vpop.eup %2240  ;;  %v1159_v52 = vmul.f32 0.5, %v1143_v55  ;;  %1719 = vperm.xlu1 %2085, %v1689_v16   ;;  %2087 = vset.pattern.permute.xlu0 %v2379_v10  ;;  %v1209_v54 = vmul.f32 %v2239_v53, %v1161_v29 }
 0x15b   : > { %v2243_v46 = vpop.eup %2242  ;;  %v1144_v32 = vadd.f32 1.0, %v2241_v13  ;;  %v1162_v58 = vmul.f32 0.5, %v1146_v17  ;;  %1756 = vperm.xlu0 %2087, %v1753_v18  }
 0x15c   : > { %v2245_v30 = vpop.eup %2244 }
 0x15d   : > { %v1160_v51 = vmul.f32 0.5, %v1144_v32  ;;  %v1210_v19 = vmul.f32 %v2243_v46, %v1162_v58  ;;  %v2247_v36 = vpop.eup %2246  ;;  %v1207_v23 = vmul.f32 %v2245_v30, %v1159_v52 }
 0x15e   : > { %1729 = vperm.xlu1 %2085, %v1691_v0   ;;  %v2249_v6 = vpop.eup %2248 }
 0x15f   : > { %v1242_v1 = vpack.c.bf16 %v1210_v19, %v1209_v54  ;;  %v1208_v56 = vmul.f32 %v2247_v36, %v1160_v51  ;;  %v1206_v10 = vmul.f32 %v2249_v6, %v1158_v37  ;;  %v2251_v45 = vpop.eup %2250 }
 0x160   : > { %v1205_v44 = vmul.f32 %v2251_v45, %v1157_v3 }
 0x161   : > { %2000 = vmatprep.subr.bf16.mxu1 %v1242_v1  ;;  %v1241_v48 = vpack.c.bf16 %v1208_v56, %v1207_v23 }
 0x162   : > { %2001 = vmatpush3.bf16.msra.mxu1 %v1242_v1  ;;  %v1240_v2 = vpack.c.bf16 %v1206_v10, %v1205_v44 }
 0x163   : > { %2002 = vmatprep.subr.bf16.mxu1 %v1241_v48 }
 0x166   : > { %2003 = vmatpush3.bf16.msra.mxu1 %v1241_v48 }
 0x167   : > { %2004 = vmatprep.subr.bf16.mxu1 %v1240_v2 }
 0x16a   : > { %2005 = vmatpush3.bf16.msra.mxu1 %v1240_v2 }
 0x16b   : > { %2006 = vmatprep.subr.bf16.mxu1 %v1239_v33 }
 0x16e   : > { %2007 = vmatpush3.bf16.msra.mxu1 %v1239_v33 }
 0x16f   : > { %2008 = vmatprep.subr.bf16.mxu1 %v2993_v27 }
 0x172   : > { %2009 = vmatpush3.bf16.msra.mxu1 %v2993_v27 }
 0x173   : > { %2010 = vmatprep.subr.bf16.mxu1 %v3003_v7 }
 0x176   : > { %2011 = vmatpush3.bf16.msra.mxu1 %v3003_v7 }
 0x177   : > { %2012 = vmatprep.subr.bf16.mxu1 %v2973_v49 }
 0x17a   : > { %2013 = vmatpush3.bf16.msra.mxu1 %v2973_v49  ;;  %v2116_v49 = vld [vmem:[%s3101_s3 + $0x20] sm:$0xff]  }
 0x17b   : > { %2014 = vmatprep.subr.bf16.mxu1 %v2978_v35 }
 0x17e   : > { %2015 = vmatpush3.bf16.msra.mxu1 %v2978_v35  ;;  %v2117_v35 = vld [vmem:[%s3101_s3 + $0x28] sm:$0xff]  }
 0x181   : > { %2017 = vmatmul.mubr.bf16.vlgmr.msra.gmra.mxu1 %v2113_v47 }
 0x182   : > { %2020 = vmatprep.mubr.bf16.mxu1 %v2114_v62 }
 0x189   : > { %2021 = vmatmul.mubr.bf16.gmra.mxu1 %v2115_v21 }
 0x18a   : > { %2024 = vmatprep.mubr.bf16.mxu1 %v2116_v49 }
 0x18c   : > { %v1275_v28 = vpop.permute.xlu1 %1274  ;;  %v1270_v27 = vpop.permute.xlu0 %1269 }
 0x190   : > { %v1280_v20 = vpop.permute.xlu1 %1279  ;;  %v1285_v22 = vpop.permute.xlu0 %1284 }
 0x191   : > { %2025 = vmatmul.mubr.bf16.gmra.mxu1 %v2117_v35 }
 0x192   : > { %2028 = vmatprep.mubr.bf16.mxu1 %v2118_v63 }
 0x194   : > { %v1290_v24 = vpop.permute.xlu1 %1289  ;;  %v1310_v57 = vpop.permute.xlu0 %1309 }
 0x198   : > { %v1315_v43 = vpop.permute.xlu1 %1314  ;;  %v1295_v26 = vpop.permute.xlu0 %1294 }
 0x199   : > { %2029 = vmatmul.mubr.bf16.gmra.mxu1 %v2119_v40 }
 0x19a   : > { %2032 = vmatprep.mubr.bf16.mxu1 %v2120_v4 }
 0x19c   : > { %v1320_v7 = vpop.permute.xlu1 %1319  ;;  %v1300_v9 = vpop.permute.xlu0 %1299 }
 0x1a0   : > { %v1325_v12 = vpop.permute.xlu1 %1324  ;;  %v1305_v60 = vpop.permute.xlu0 %1304 }
 0x1a1   : > { %2033 = vmatmul.mubr.bf16.gmra.mxu1 %v2121_v5 }
 0x1a2   : > { %2036 = vmatprep.mubr.bf16.mxu1 %v2122_v31 }
 0x1a4   : > { %v1330_v59 = vpop.permute.xlu1 %1329  ;;  %v1335_v53 = vpop.permute.xlu0 %1334 }
 0x1a8   : > { %v1350_v58 = vpop.permute.xlu0 %1349 }
 0x1a9   : > { %2037 = vmatmul.mubr.bf16.gmra.mxu1 %v2123_v8 }
 0x1b1   : > { %v1340_v33 = vpop.permute.xlu1 %1339 }
 0x1b5   : > { %v1355_v51 = vpop.permute.xlu1 %1354  ;;  %v1345_v48 = vpop.permute.xlu0 %1344 }
 0x1b9   : > { %v1360_v2 = vpop.permute.xlu1 %1359  ;;  %v1365_v40 = vpop.permute.xlu0 %1364 }
 0x241   : > { %v2018_v15 = vpop.f32.mrf.mxu1 }
 0x242   : > { %v1502_v25 = vadd.f32 %v2018_v15, %v1280_v20  ;;  %v1370_v20 = vpop.permute.xlu1 %1369 }
 0x243   : > { %v1493_v34 = vpop.f32.mrf.mxu1 }
 0x244   : > { %v1494_v11 = vadd.f32 %v1493_v34, %v1270_v27  ;;  %v1590_v42 = vmul.f32 0.5, %v1502_v25 }
 0x245   : > { %v2019_v38 = vpop.f32.mrf.mxu1 }
 0x246   : > { %v1505_v50 = vadd.f32 %v2019_v38, %v1285_v22  ;;  %v1588_v29 = vmul.f32 0.5, %v1494_v11  ;;  %2252 = vtanh.f32 %v1590_v42 }
 0x247   : > { %v1496_v39 = vpop.f32.mrf.mxu1 }
 0x248   : > { %v1497_v16 = vadd.f32 %v1496_v39, %v1275_v28  ;;  %v1591_v46 = vmul.f32 0.5, %v1505_v50  ;;  %2254 = vtanh.f32 %v1588_v29 }
 0x249   : > { %v2022_v41 = vpop.f32.mrf.mxu1 }
 0x24a   : > { %v1589_v13 = vmul.f32 0.5, %v1497_v16  ;;  %v1518_v54 = vadd.f32 %v2022_v41, %v1300_v9 }
 0x24b   : > { %v1509_v61 = vpop.f32.mrf.mxu1 }
 0x24c   : > { %v1510_v14 = vadd.f32 %v1509_v61, %v1290_v24  ;;  %2256 = vtanh.f32 %v1589_v13  ;;  %v1594_v10 = vmul.f32 0.5, %v1518_v54 }
 0x24d   : > { %v2023_v55 = vpop.f32.mrf.mxu1  ;;  %2258 = vtanh.f32 %v1591_v46 }
 0x24e   : > { %v1592_v19 = vmul.f32 0.5, %v1510_v14  ;;  %v1521_v3 = vadd.f32 %v2023_v55, %v1305_v60  ;;  %v1375_v60 = vpop.permute.xlu0 %1374 }
 0x24f   : > { %v1512_v17 = vpop.f32.mrf.mxu1 }
 0x250   : > { %v1513_v0 = vadd.f32 %v1512_v17, %v1295_v26  ;;  %v1595_v44 = vmul.f32 0.5, %v1521_v3 }
 0x251   : > { %v2026_v18 = vpop.f32.mrf.mxu1 }
 0x252   : > { %v1534_v32 = vadd.f32 %v2026_v18, %v1320_v7  ;;  %v1593_v23 = vmul.f32 0.5, %v1513_v0  ;;  %v1385_v54 = vpop.permute.xlu0 %1384 }
 0x253   : > { %v1525_v52 = vpop.f32.mrf.mxu1  ;;  %v2253_v21 = vpop.eup %2252 }
 0x254   : > { %v1526_v37 = vadd.f32 %v1525_v52, %v1310_v57  ;;  %2260 = vtanh.f32 %v1534_v32  ;;  %v1606_v4 = vadd.f32 1.0, %v2253_v21 }
 0x255   : > { %v2027_v30 = vpop.f32.mrf.mxu1  ;;  %v2255_v63 = vpop.eup %2254 }
 0x256   : > { %2262 = vtanh.f32 %v1526_v37  ;;  %v1537_v6 = vadd.f32 %v2027_v30, %v1325_v12  ;;  %v1604_v57 = vadd.f32 1.0, %v2255_v63  ;;  %v1614_v15 = vmul.f32 0.5, %v1606_v4 }
 0x257   : > { %v1528_v36 = vpop.f32.mrf.mxu1  ;;  %2264 = vtanh.f32 %v1592_v19 }
 0x258   : > { %v1529_v1 = vadd.f32 %v1528_v36, %v1315_v43  ;;  %v1612_v61 = vmul.f32 0.5, %v1604_v57 }
 0x259   : > { %v2030_v56 = vpop.f32.mrf.mxu1  ;;  %v2257_v27 = vpop.eup %2256 }
 0x25a   : > { %2266 = vtanh.f32 %v1529_v1  ;;  %v1550_v5 = vadd.f32 %v2030_v56, %v1340_v33  ;;  %v2259_v24 = vpop.eup %2258  ;;  %v1605_v34 = vadd.f32 1.0, %v2257_v27 }
 0x25b   : > { %v1541_v45 = vpop.f32.mrf.mxu1  ;;  %2268 = vtanh.f32 %v1593_v23  ;;  %v1607_v25 = vadd.f32 1.0, %v2259_v24 }
 0x25c   : > { %v1542_v47 = vadd.f32 %v1541_v45, %v1330_v59  ;;  %2270 = vtanh.f32 %v1537_v6  ;;  %v1613_v29 = vmul.f32 0.5, %v1605_v34 }
 0x25d   : > { %v2031_v62 = vpop.f32.mrf.mxu1  ;;  %2272 = vtanh.f32 %v1594_v10  ;;  %v1615_v14 = vmul.f32 0.5, %v1607_v25 }
 0x25e   : > { %2274 = vtanh.f32 %v1595_v44  ;;  %v1553_v8 = vadd.f32 %v2031_v62, %v1345_v48 }
 0x25f   : > { %v1544_v49 = vpop.f32.mrf.mxu1  ;;  %2276 = vtanh.f32 %v1542_v47 }
 0x260   : > { %v1545_v35 = vadd.f32 %v1544_v49, %v1335_v53  ;;  %v1380_v53 = vpop.permute.xlu1 %1379 }
 0x261   : > { %v2034_v31 = vpop.f32.mrf.mxu1  ;;  %v2261_v7 = vpop.eup %2260 }
 0x262   : > { %v1566_v28 = vadd.f32 %v2034_v31, %v1360_v2  ;;  %2278 = vtanh.f32 %v1545_v35  ;;  %v1662_v11 = vmul.f32 %v2261_v7, %v1614_v15 }
 0x263   : > { %v1557_v22 = vpop.f32.mrf.mxu1  ;;  %2280 = vtanh.f32 %v1550_v5  ;;  %v2263_v39 = vpop.eup %2262 }
 0x264   : > { %v1630_v43 = vmul.f32 0.5, %v1566_v28  ;;  %v1558_v26 = vadd.f32 %v1557_v22, %v1350_v58  ;;  %2282 = vtanh.f32 %v1553_v8  ;;  %v2265_v59 = vpop.eup %2264  ;;  %v1660_v33 = vmul.f32 %v2263_v39, %v1612_v61  ;;  %v1695_v31 = vpop.permute.xlu1 %1694 }
 0x265   : > { %v2035_v9 = vpop.f32.mrf.mxu1  ;;  %v1608_v52 = vadd.f32 1.0, %v2265_v59 }
 0x266   : > { %v1628_v12 = vmul.f32 0.5, %v1558_v26  ;;  %v1569_v38 = vadd.f32 %v2035_v9, %v1365_v40  ;;  %2284 = vtanh.f32 %v1630_v43 }
 0x267   : > { %v1560_v41 = vpop.f32.mrf.mxu1  ;;  %v2267_v16 = vpop.eup %2266  ;;  %v1616_v48 = vmul.f32 0.5, %v1608_v52 }
 0x268   : > { %v1631_v42 = vmul.f32 0.5, %v1569_v38  ;;  %v1561_v55 = vadd.f32 %v1560_v41, %v1355_v51  ;;  %2286 = vtanh.f32 %v1628_v12  ;;  %v2269_v17 = vpop.eup %2268  ;;  %v1661_v0 = vmul.f32 %v2267_v16, %v1613_v29  ;;  %v1705_v9 = vpop.permute.xlu1 %1704 }
 0x269   : > { %v2038_v50 = vpop.f32.mrf.mxu1  ;;  %v2271_v46 = vpop.eup %2270  ;;  %v1609_v19 = vadd.f32 1.0, %v2269_v17 }
 0x26a   : > { %v1629_v18 = vmul.f32 0.5, %v1561_v55  ;;  %v1582_v13 = vadd.f32 %v2038_v50, %v1380_v53  ;;  %2288 = vtanh.f32 %v1631_v42  ;;  %v2273_v58 = vpop.eup %2272  ;;  %v1663_v1 = vmul.f32 %v2271_v46, %v1615_v14 }
 0x26b   : > { %v1573_v32 = vpop.f32.mrf.mxu1  ;;  %2290 = vtanh.f32 %v1662_v11  ;;  %v2275_v51 = vpop.eup %2274  ;;  %v1610_v6 = vadd.f32 1.0, %v2273_v58  ;;  %v1617_v49 = vmul.f32 0.5, %v1609_v19 }
 0x26c   : > { %v1634_v30 = vmul.f32 0.5, %v1582_v13  ;;  %v1574_v37 = vadd.f32 %v1573_v32, %v1370_v20  ;;  %2292 = vtanh.f32 %v1629_v18  ;;  %v2277_v3 = vpop.eup %2276  ;;  %v1611_v47 = vadd.f32 1.0, %v2275_v51  ;;  %v1700_v11 = vpop.permute.xlu0 %1699 }
 0x26d   : > { %v2039_v36 = vpop.f32.mrf.mxu1  ;;  %2294 = vtanh.f32 %v1660_v33  ;;  %v1664_v62 = vmul.f32 %v2277_v3, %v1616_v48  ;;  %v1618_v40 = vmul.f32 0.5, %v1610_v6  ;;  %v1710_v33 = vpop.permute.xlu1 %1709 }
 0x26e   : > { %v1632_v23 = vmul.f32 0.5, %v1574_v37  ;;  %v1585_v56 = vadd.f32 %v2039_v36, %v1385_v54  ;;  %2296 = vtanh.f32 %v1634_v30  ;;  %v1619_v8 = vmul.f32 0.5, %v1611_v47 }
 0x26f   : > { %v1576_v10 = vpop.f32.mrf.mxu1  ;;  %2298 = vtanh.f32 %v1661_v0  ;;  %v2279_v2 = vpop.eup %2278 }
 0x270   : > { %v1635_v45 = vmul.f32 0.5, %v1585_v56  ;;  %v1577_v44 = vadd.f32 %v1576_v10, %v1375_v60  ;;  %2300 = vtanh.f32 %v1632_v23  ;;  %v2281_v21 = vpop.eup %2280  ;;  %v1665_v5 = vmul.f32 %v2279_v2, %v1617_v49  ;;  %v1715_v19 = vpop.permute.xlu0 %1714 }
 0x271   : > { %2302 = vtanh.f32 %v1663_v1  ;;  %v2283_v63 = vpop.eup %2282  ;;  %v1666_v28 = vmul.f32 %v2281_v21, %v1618_v40  ;;  %v1720_v6 = vpop.permute.xlu1 %1719 }
 0x272   : > { %v1633_v35 = vmul.f32 0.5, %v1577_v44  ;;  %2304 = vtanh.f32 %v1635_v45  ;;  %v1667_v20 = vmul.f32 %v2283_v63, %v1619_v8 }
 0x273   : > { %v2285_v4 = vpop.eup %2284 }
 0x274   : > { %2306 = vtanh.f32 %v1633_v35  ;;  %v1646_v24 = vadd.f32 1.0, %v2285_v4  ;;  %v1725_v49 = vpop.permute.xlu0 %1724 }
 0x275   : > { %2308 = vtanh.f32 %v1664_v62  ;;  %v2287_v27 = vpop.eup %2286  ;;  %v1730_v40 = vpop.permute.xlu1 %1729 }
 0x276   : > { %v1644_v22 = vadd.f32 1.0, %v2287_v27  ;;  %2310 = vtanh.f32 %v1665_v5  ;;  %v1654_v12 = vmul.f32 0.5, %v1646_v24 }
 0x277   : > { %v2289_v57 = vpop.eup %2288  ;;  %2312 = vtanh.f32 %v1666_v28 }
 0x278   : > { %v2291_v43 = vpop.eup %2290  ;;  %v1652_v26 = vmul.f32 0.5, %v1644_v22  ;;  %v1647_v7 = vadd.f32 1.0, %v2289_v57  ;;  %2314 = vtanh.f32 %v1667_v20  ;;  %v1757_v24 = vpop.permute.xlu0 %1756 }
 0x279   : > { %v2293_v15 = vpop.eup %2292  ;;  %v1678_v55 = vmul.f32 %v2291_v43, %v1654_v12 }
 0x27a   : > { %v2295_v34 = vpop.eup %2294  ;;  %v1645_v38 = vadd.f32 1.0, %v2293_v15  ;;  %v1655_v41 = vmul.f32 0.5, %v1647_v7 }
 0x27b   : > { %v2297_v39 = vpop.eup %2296  ;;  %v1676_v60 = vmul.f32 %v2295_v34, %v1652_v26  ;;  %v1734_v0 = vmul.f32 %v1705_v9, %v1678_v55 }
 0x27c   : > { %v2299_v25 = vpop.eup %2298  ;;  %v1653_v59 = vmul.f32 0.5, %v1645_v38  ;;  %v1650_v50 = vadd.f32 1.0, %v2297_v39 }
 0x27d   : > { %v2301_v61 = vpop.eup %2300  ;;  %v1732_v29 = vmul.f32 %v1695_v31, %v1676_v60 }
 0x27e   : > { %v2303_v42 = vpop.eup %2302  ;;  %v1677_v16 = vmul.f32 %v2299_v25, %v1653_v59  ;;  %v1648_v53 = vadd.f32 1.0, %v2301_v61  ;;  %v1658_v51 = vmul.f32 0.5, %v1650_v50 }
 0x27f   : > { %v2305_v17 = vpop.eup %2304  ;;  %v1679_v13 = vmul.f32 %v2303_v42, %v1655_v41 }
 0x280   : > { %v1733_v46 = vmul.f32 %v1700_v11, %v1677_v16  ;;  %v1651_v14 = vadd.f32 1.0, %v2305_v17  ;;  %v1656_v52 = vmul.f32 0.5, %v1648_v53 }
 0x281   : > { %v2307_v18 = vpop.eup %2306  ;;  %v1735_v3 = vmul.f32 %v1710_v33, %v1679_v13 }
 0x282   : > { %v2309_v32 = vpop.eup %2308  ;;  %v1649_v58 = vadd.f32 1.0, %v2307_v18  ;;  %v1740_v30 = vadd.f32 %v1733_v46, %v1732_v29  ;;  %v1659_v23 = vmul.f32 0.5, %v1651_v14 }
 0x283   : > { %v1680_v37 = vmul.f32 %v2309_v32, %v1656_v52  ;;  %v2311_v36 = vpop.eup %2310 }
 0x284   : > { %v1657_v54 = vmul.f32 0.5, %v1649_v58  ;;  %v1741_v1 = vadd.f32 %v1740_v30, %v1734_v0  ;;  %v2313_v56 = vpop.eup %2312 }
 0x285   : > { %v1736_v10 = vmul.f32 %v1715_v19, %v1680_v37  ;;  %v1682_v44 = vmul.f32 %v2313_v56, %v1658_v51  ;;  %v2315_v2 = vpop.eup %2314 }
 0x286   : > { %v1681_v48 = vmul.f32 %v2311_v36, %v1657_v54  ;;  %v1742_v45 = vadd.f32 %v1741_v1, %v1735_v3  ;;  %v1683_v62 = vmul.f32 %v2315_v2, %v1659_v23 }
 0x287   : > { %v1738_v35 = vmul.f32 %v1725_v49, %v1682_v44 }
 0x288   : > { %v1737_v47 = vmul.f32 %v1720_v6, %v1681_v48  ;;  %v1743_v21 = vadd.f32 %v1742_v45, %v1736_v10  ;;  %v1739_v4 = vmul.f32 %v1730_v40, %v1683_v62 }
 0x28a   : > { %v1744_v63 = vadd.f32 %v1743_v21, %v1737_v47 }
 0x28c   : > { %v1745_v5 = vadd.f32 %v1744_v63, %v1738_v35 }
 0x28e   : > { %v1746_v31 = vadd.f32 %v1745_v5, %v1739_v4 }
 0x290   : > { %v1747_v8 = vrot.slane %v1746_v31, 4 }
 0x292   : > { %v1748_v28 = vadd.f32 %v1747_v8, %v1746_v31 }
 0x294   : > { %v1749_v27 = vrot.slane %v1748_v28, 2 }
 0x296   : > { %v1750_v20 = vadd.f32 %v1749_v27, %v1748_v28 }
 0x298   : > { %v1751_v22 = vrot.slane %v1750_v20, 1 }
 0x29a   : > { %v1752_v57 = vadd.f32 %v1751_v22, %v1750_v20 }
 0x29c   : > { %v1759_v43 = vadd.f32 %v1757_v24, %v1752_v57 }
 0x29e   : > { %1760 = vst [vmem:[%s260_s6] sm:$0x1] %v1759_v43 }
 0x29f   : > { %2329 = shalt.err (!%p2326_p5)
}
 0x2a0   : > { %s2330_s16 = scalar_lea.hbm %s1772_s10, 16  ;;  %s2334_s23 = scalar_lea.hbm %s3103_s5, 64 }
 0x2a1   : > { %p2331_p7 = scmp.ne.s32.totalorder %s1772_s10, %s2330_s16  ;;  %p2335_p11 = scmp.lt.s32.totalorder %s1772_s10, %s3103_s5 }
 0x2a2   : > { %p2336_p12 = scmp.lt.s32.totalorder %s2334_s23, %s2330_s16 }
 0x2a3   : > { %p2332_p9 = pnand %p2331_p7, %p2449_p6 }
 0x2a4   : > { %p2337_p13 = por %p2336_p12, %p2335_p11 }
 0x2a5   : > { %p2333_p10 = pneg %p2332_p9 }
 0x2a7   : > { %p2338_p0 = pnand %p2337_p13, %p2333_p10 }
 0x2a9   : > { %2341 = shalt.err (!%p2338_p0)
}
 0x2aa   : > { %2040 = dma.vmem_to_hbm [thread:$0]  (%p2449_p6), %s1775_s7, 16, %s1772_s10, %s1762_s11  }
 0x2ab PF: > { %p2046_p1 = scmp.ge.s32.totalorder %s2376_s21, 2  ;;  %s1786_s30 = sand.u32 1, %s2364_s18  }
 0x2ac   : > { %s1787_s6 = scalar_lea.sflag [#allocation4], %s1786_s30 }
 0x2ad   : > { %p2043_p2 = pnand %p2046_p1, %p2453_p8 }
 0x2af   : > { %p2044_p3 = pneg %p2043_p2 }
 0x2b1   : > { %2359 = dma.done.wait (%p2044_p3), %s1787_s6, 16  }
 0x2b2   : > { %2361 = vsyncadd (%p2044_p3), %s1787_s6, 4294967280  ;;  %p15_p4 = scmp.ge.s32.totalorder %s2434_s24, 6   ;;  %s3130_s18 = smov %s2368_s19 }
 0x2b3   : > { %s3131_s19 = smov %s2372_s20  ;;  %s3132_s20 = smov %s2447_s27 }
 0x2b4   : > { %s3133_s21 = smov %s2434_s24  ;;  %17 = sbr.rel (!%p15_p4) target bundleno = 3 (0x3), region = 118 }
 0x2b9   :  { %1791 = vsyncpa [#allocation4], 1 }
 0x2ba   :  { %1793 = vsyncpa [#allocation4 + $0x1], 1 }

</bundles_post_ra>
